<compile_context>
chip_gen: v7x
topology: tpu7x:2x2x1
jax: 0.10.0
libtpu: 0.0.40
codegen_flags: <defaults>
</compile_context>

<pallas_src>
import functools
import math

import jax
import jax.numpy as jnp
from jax.experimental import pallas as pl
from jax.experimental.pallas import tpu as pltpu

BN_EPS = 1e-5
LANE = 128


def conv_block_kernel(x_ref, scale_ref, shift_ref, w_ref,
                      out_ref, stats_ref, xp_ref, col_ref, *, apply_relu):
    """Per-image: y = scale*x + shift [+ relu]; a = conv3x3(y); emit a, (sum, sumsq).

    x_ref    : (H, W, Cp)      f32  input block (batch dim squeezed by BlockSpec)
    scale_ref: (1, Cp)         f32  per-channel scale (folded BN of prev stage)
    shift_ref: (1, Cp)         f32  per-channel shift
    w_ref    : (9*Cp, Cp)      bf16 tap-folded conv weights (HWIO flattened)
    out_ref  : (H, W, Cp)      f32  conv output
    stats_ref: (2, Cp)         f32  row0 = per-channel sum, row1 = sum of squares
    xp_ref   : (H+2, W+2, Cp)  f32  spatially padded activation (VMEM scratch)
    col_ref  : (H*W, 9*Cp)     bf16 im2col matrix (VMEM scratch)
    """
    H, W, C = x_ref.shape
    Hp, Wp = H + 2, W + 2
    M = H * W

    # ---- fused prologue: per-channel affine (+ optional ReLU).  (The affine is
    # the folded BN of the previous conv; pass 1 feeds scale=1, shift=0 — one
    # fused multiply-add over an already-loaded block, negligible.) ----
    scale = scale_ref[...].reshape(1, 1, C)
    shift = shift_ref[...].reshape(1, 1, C)
    y = x_ref[...] * scale + shift
    if apply_relu:
        y = jnp.maximum(y, 0.0)

    # ---- spatial "same" padding into VMEM scratch: write interior, zero only
    # the 1-pixel halo ring (no full-buffer zero fill). ----
    xp_ref[1:H + 1, 1:W + 1, :] = y
    zrow = jnp.zeros((1, Wp, C), jnp.float32)
    xp_ref[0:1, :, :] = zrow
    xp_ref[H + 1:H + 2, :, :] = zrow
    zcol = jnp.zeros((Hp, 1, C), jnp.float32)
    xp_ref[:, 0:1, :] = zcol
    xp_ref[:, W + 1:W + 2, :] = zcol

    # ---- im2col: fold the 9 taps into one (M, 9*Cp) bf16 operand ----
    for dy in range(3):
        for dx in range(3):
            k = dy * 3 + dx
            patch = xp_ref[dy:dy + H, dx:dx + W, :].reshape(M, C)
            col_ref[:, k * C:(k + 1) * C] = patch.astype(jnp.bfloat16)

    # ---- single deep-K MXU matmul: bf16 operands, f32 accumulation ----
    acc = jnp.dot(col_ref[...], w_ref[...], preferred_element_type=jnp.float32)

    out_ref[...] = acc.reshape(H, W, C)

    # ---- per-image BN partial stats, single pass (sum and sum of squares) ----
    stats_ref[0:1, :] = jnp.sum(acc, axis=0, keepdims=True)
    stats_ref[1:2, :] = jnp.sum(acc * acc, axis=0, keepdims=True)


def finalize_kernel(a2_ref, x_ref, scale_ref, shift_ref, out_ref):
    """out = relu(bn2(a2) + x) with bn2 pre-folded into (scale, shift)."""
    C = out_ref.shape[-1]
    scale = scale_ref[...].reshape(1, 1, C)
    shift = shift_ref[...].reshape(1, 1, C)
    out_ref[...] = jnp.maximum(a2_ref[...] * scale + shift + x_ref[...], 0.0)


def residual_forward(x_nchw, params):
    # Conv biases b1/b2 are accepted but ignored inside the kernels: a constant
    # per-channel bias before train-mode BN is exactly cancelled by the BN mean
    # subtraction (mean(a+b) = mean(a)+b, variance unchanged).
    w1, _b1, g1, be1, w2, _b2, g2, be2 = params
    N, Cin, H, W = x_nchw.shape
    C = w1.shape[-1]
    assert Cin == C, "identity shortcut requires input_channels == num_channels"

    Cp = ((C + LANE - 1) // LANE) * LANE
    Mtot = N * H * W

    # NCHW -> NHWC, zero-pad channels up to a multiple of 128 lanes.
    x = jnp.transpose(x_nchw, (0, 2, 3, 1)).astype(jnp.float32)
    x = jnp.pad(x, ((0, 0), (0, 0), (0, 0), (0, Cp - C)))

    def fold_weights(w):                       # HWIO (3,3,ci,co) -> (9*Cp, Cp) bf16
        ci, co = w.shape[2], w.shape[3]
        wp = jnp.zeros((3, 3, Cp, Cp), jnp.float32).at[:, :, :ci, :co].set(w)
        return wp.reshape(9 * Cp, Cp).astype(jnp.bfloat16)

    w1f = fold_weights(w1)
    w2f = fold_weights(w2)

    def pad_c(v):
        return jnp.pad(v.reshape(1, -1).astype(jnp.float32), ((0, 0), (0, Cp - C)))

    g1p, be1p, g2p, be2p = pad_c(g1), pad_c(be1), pad_c(g2), pad_c(be2)
    ones = jnp.ones((1, Cp), jnp.float32)
    zeros = jnp.zeros((1, Cp), jnp.float32)

    # VMEM budget for one per-image program (double-buffered IO + scratch).
    blk_io = H * W * Cp * 4
    vmem_est = (4 * blk_io                      # in + out blocks, double-buffered
                + (H + 2) * (W + 2) * Cp * 4    # padded activation scratch
                + H * W * 9 * Cp * 2            # im2col scratch (bf16)
                + 2 * 9 * Cp * Cp * 2           # weights, double-buffered
                + blk_io)                       # f32 matmul accumulator
    vmem_limit = int(max(8 << 20, min(int(vmem_est * 1.5), 100 << 20)))

    cparams = pltpu.CompilerParams(dimension_semantics=("parallel",),
                                   vmem_limit_bytes=vmem_limit)

    img_spec = pl.BlockSpec((None, H, W, Cp), lambda n: (n, 0, 0, 0))
    vec_spec = pl.BlockSpec((1, Cp), lambda n: (0, 0))
    wts_spec = pl.BlockSpec((9 * Cp, Cp), lambda n: (0, 0))
    sts_spec = pl.BlockSpec((None, 2, Cp), lambda n: (n, 0, 0))

    def conv_call(inp, scale, shift, wf, apply_relu):
        kernel = functools.partial(conv_block_kernel, apply_relu=apply_relu)
        flops = 2 * Mtot * (9 * Cp) * Cp
        bytes_accessed = inp.size * 4 + wf.size * 2 + Mtot * Cp * 4 + N * 2 * Cp * 4
        return pl.pallas_call(
            kernel,
            out_shape=(jax.ShapeDtypeStruct((N, H, W, Cp), jnp.float32),
                       jax.ShapeDtypeStruct((N, 2, Cp), jnp.float32)),
            grid=(N,),
            in_specs=[img_spec, vec_spec, vec_spec, wts_spec],
            out_specs=(img_spec, sts_spec),
            scratch_shapes=[pltpu.VMEM((H + 2, W + 2, Cp), jnp.float32),
                            pltpu.VMEM((H * W, 9 * Cp), jnp.bfloat16)],
            compiler_params=cparams,
            cost_estimate=pl.CostEstimate(flops=flops, transcendentals=0,
                                          bytes_accessed=bytes_accessed),
        )(inp, scale, shift, wf)

    def bn_fold(stats, gamma, beta):
        tot = jnp.sum(stats, axis=0)                          # (2, Cp)
        mean = tot[0] / Mtot
        var = jnp.maximum(tot[1] / Mtot - mean * mean, 0.0)   # E[x^2] - mean^2
        scale = gamma[0] * jax.lax.rsqrt(var + BN_EPS)
        shift = beta[0] - mean * scale
        return scale.reshape(1, Cp), shift.reshape(1, Cp)

    # ---- pass 1: conv1 (+ BN1 partial stats) ----
    a1, stats1 = conv_call(x, ones, zeros, w1f, apply_relu=False)
    s1, t1 = bn_fold(stats1, g1p, be1p)

    # ---- pass 2: bn1 + relu fused into conv2 prologue (+ BN2 partial stats) ----
    a2, stats2 = conv_call(a1, s1, t1, w2f, apply_relu=True)
    s2, t2 = bn_fold(stats2, g2p, be2p)

    # ---- pass 3: bn2 + identity residual add + relu ----
    out = pl.pallas_call(
        finalize_kernel,
        out_shape=jax.ShapeDtypeStruct((N, H, W, Cp), jnp.float32),
        grid=(N,),
        in_specs=[img_spec, img_spec, vec_spec, vec_spec],
        out_specs=img_spec,
        compiler_params=cparams,
    )(a2, x, s2, t2)

    out = out[..., :C]
    return jnp.transpose(out, (0, 3, 1, 2))                   # NHWC -> NCHW


def init_params(key, cin, c):
    ks = jax.random.split(key, 8)
    bound1 = 1.0 / math.sqrt(cin * 9)
    bound2 = 1.0 / math.sqrt(c * 9)
    w1 = jax.random.uniform(ks[0], (3, 3, cin, c), jnp.float32, -bound1, bound1)
    b1 = jax.random.uniform(ks[1], (1, c), jnp.float32, -bound1, bound1)
    w2 = jax.random.uniform(ks[2], (3, 3, c, c), jnp.float32, -bound2, bound2)
    b2 = jax.random.uniform(ks[3], (1, c), jnp.float32, -bound2, bound2)
    g1 = jax.random.uniform(ks[4], (1, c), jnp.float32, 0.5, 1.5)
    be1 = 0.1 * jax.random.normal(ks[5], (1, c), jnp.float32)
    g2 = jax.random.uniform(ks[6], (1, c), jnp.float32, 0.5, 1.5)
    be2 = 0.1 * jax.random.normal(ks[7], (1, c), jnp.float32)
    return (w1, b1, g1, be1, w2, b2, g2, be2)


def reference_forward(x_nchw, params):
    """Plain-JAX reference mirroring the PyTorch Residual forward (train-mode BN)."""
    w1, b1, g1, be1, w2, b2, g2, be2 = params
    x = jnp.transpose(x_nchw, (0, 2, 3, 1))

    def conv(h, w, b):
        y = jax.lax.conv_general_dilated(
            h, w, window_strides=(1, 1), padding="SAME",
            dimension_numbers=("NHWC", "HWIO", "NHWC"))
        return y + b.reshape(1, 1, 1, -1)

    def bn(y, g, b):
        m = jnp.mean(y, axis=(0, 1, 2), keepdims=True)
        v = jnp.mean((y - m) ** 2, axis=(0, 1, 2), keepdims=True)
        return ((y - m) * jax.lax.rsqrt(v + BN_EPS) * g.reshape(1, 1, 1, -1)
                + b.reshape(1, 1, 1, -1))

    y = jax.nn.relu(bn(conv(x, w1, b1), g1, be1))
    y = bn(conv(y, w2, b2), g2, be2)
    out = jax.nn.relu(y + x)
    return jnp.transpose(out, (0, 3, 1, 2))


if __name__ == "__main__":
    key = jax.random.PRNGKey(0)
    kx, kp = jax.random.split(key)

    N, Cin, H, W = 2, 4, 16, 16       # input_channels = num_channels = 4
    x = jax.random.normal(kx, (N, Cin, H, W), jnp.float32)
    params = init_params(kp, Cin, Cin)

    out = jax.jit(residual_forward)(x, params)
    out = jax.block_until_ready(out)

    ref = reference_forward(x, params)
    assert out.shape == (N, Cin, H, W), out.shape
    # Tolerance reflects bf16 MXU operands (f32 accumulation) amplified by the
    # train-mode BN normalization; the f32 reference stays exact.
    max_err = float(jnp.max(jnp.abs(out - ref)))
    assert max_err < 3e-2, f"mismatch vs reference: {max_err}"

    print("KERNEL_OK")
</pallas_src>

<mosaic_0001>
module attributes {stable_mosaic.version = 11 : i64} {
  func.func @conv_block_kernel(%arg0: i32, %arg1: memref<1x16x16x128xf32, #tpu.memory_space<vmem>>, %arg2: memref<1x128xf32, #tpu.memory_space<vmem>>, %arg3: memref<1x128xf32, #tpu.memory_space<vmem>>, %arg4: memref<1152x128xbf16, #tpu.memory_space<vmem>>, %arg5: memref<1x16x16x128xf32, #tpu.memory_space<vmem>>, %arg6: memref<1x2x128xf32, #tpu.memory_space<vmem>>, %arg7: memref<18x18x128xf32, #tpu.memory_space<vmem>>, %arg8: memref<256x1152xbf16, #tpu.memory_space<vmem>>) attributes {dimension_semantics = [#tpu.dimension_semantics<parallel>], iteration_bounds = array<i64: 2>, scalar_prefetch = 0 : i64, scratch_operands = 2 : i64, tpu.core_type = #tpu.core_type<tc>, window_params = [{transform_indices = @transform_0, window_bounds = array<i64: 1, 16, 16, 128>}, {pipeline_mode = #tpu.pipeline_mode<synchronous>, transform_indices = @transform_1, window_bounds = array<i64: 1, 128>}, {pipeline_mode = #tpu.pipeline_mode<synchronous>, transform_indices = @transform_2, window_bounds = array<i64: 1, 128>}, {pipeline_mode = #tpu.pipeline_mode<synchronous>, transform_indices = @transform_3, window_bounds = array<i64: 1152, 128>}, {transform_indices = @transform_4, window_bounds = array<i64: 1, 16, 16, 128>}, {transform_indices = @transform_5, window_bounds = array<i64: 1, 2, 128>}]} {
    %c0 = arith.constant 0 : index
    %c0_0 = arith.constant 0 : index
    %0 = vector.load %arg2[%c0, %c0_0] : memref<1x128xf32, #tpu.memory_space<vmem>>, vector<1x128xf32>
    %1 = vector.shape_cast %0 : vector<1x128xf32> to vector<1x1x128xf32>
    %c0_1 = arith.constant 0 : index
    %c0_2 = arith.constant 0 : index
    %2 = vector.load %arg3[%c0_1, %c0_2] : memref<1x128xf32, #tpu.memory_space<vmem>>, vector<1x128xf32>
    %3 = vector.shape_cast %2 : vector<1x128xf32> to vector<1x1x128xf32>
    %c0_3 = arith.constant 0 : index
    %c0_4 = arith.constant 0 : index
    %c0_5 = arith.constant 0 : index
    %c0_6 = arith.constant 0 : index
    %4 = vector.load %arg1[%c0_3, %c0_4, %c0_5, %c0_6] : memref<1x16x16x128xf32, #tpu.memory_space<vmem>>, vector<1x16x16x128xf32>
    %5 = vector.shape_cast %4 : vector<1x16x16x128xf32> to vector<16x16x128xf32>
    %6 = vector.broadcast %1 : vector<1x1x128xf32> to vector<16x16x128xf32>
    %7 = arith.mulf %5, %6 : vector<16x16x128xf32>
    %8 = vector.broadcast %3 : vector<1x1x128xf32> to vector<16x16x128xf32>
    %9 = arith.addf %7, %8 : vector<16x16x128xf32>
    %cst = arith.constant 0.000000e+00 : f32
    %10 = vector.broadcast %cst : f32 to vector<16x16x128xf32>
    %11 = arith.maximumf %9, %10 : vector<16x16x128xf32>
    %c1 = arith.constant 1 : index
    %c1_7 = arith.constant 1 : index
    %c0_8 = arith.constant 0 : index
    %12 = vector.load %arg7[%c1, %c1_7, %c0_8] : memref<18x18x128xf32, #tpu.memory_space<vmem>>, vector<16x16x128xf32>
    tpu.vector_store %arg7[%c1, %c1_7, %c0_8], %11 {strides = array<i32>} : memref<18x18x128xf32, #tpu.memory_space<vmem>>, vector<16x16x128xf32>,
    %cst_9 = arith.constant 0.000000e+00 : f32
    %13 = vector.broadcast %cst_9 : f32 to vector<1x18x128xf32>
    %c0_10 = arith.constant 0 : index
    %c0_11 = arith.constant 0 : index
    %c0_12 = arith.constant 0 : index
    %14 = vector.load %arg7[%c0_10, %c0_11, %c0_12] : memref<18x18x128xf32, #tpu.memory_space<vmem>>, vector<1x18x128xf32>
    tpu.vector_store %arg7[%c0_10, %c0_11, %c0_12], %13 {strides = array<i32>} : memref<18x18x128xf32, #tpu.memory_space<vmem>>, vector<1x18x128xf32>,
    %c17 = arith.constant 17 : index
    %c0_13 = arith.constant 0 : index
    %c0_14 = arith.constant 0 : index
    %15 = vector.load %arg7[%c17, %c0_13, %c0_14] : memref<18x18x128xf32, #tpu.memory_space<vmem>>, vector<1x18x128xf32>
    tpu.vector_store %arg7[%c17, %c0_13, %c0_14], %13 {strides = array<i32>} : memref<18x18x128xf32, #tpu.memory_space<vmem>>, vector<1x18x128xf32>,
    %cst_15 = arith.constant 0.000000e+00 : f32
    %16 = vector.broadcast %cst_15 : f32 to vector<18x1x128xf32>
    %c0_16 = arith.constant 0 : index
    %c0_17 = arith.constant 0 : index
    %c0_18 = arith.constant 0 : index
    %17 = vector.load %arg7[%c0_16, %c0_17, %c0_18] : memref<18x18x128xf32, #tpu.memory_space<vmem>>, vector<18x1x128xf32>
    tpu.vector_store %arg7[%c0_16, %c0_17, %c0_18], %16 {strides = array<i32>} : memref<18x18x128xf32, #tpu.memory_space<vmem>>, vector<18x1x128xf32>,
    %c0_19 = arith.constant 0 : index
    %c17_20 = arith.constant 17 : index
    %c0_21 = arith.constant 0 : index
    %18 = vector.load %arg7[%c0_19, %c17_20, %c0_21] : memref<18x18x128xf32, #tpu.memory_space<vmem>>, vector<18x1x128xf32>
    tpu.vector_store %arg7[%c0_19, %c17_20, %c0_21], %16 {strides = array<i32>} : memref<18x18x128xf32, #tpu.memory_space<vmem>>, vector<18x1x128xf32>,
    %c0_22 = arith.constant 0 : index
    %c0_23 = arith.constant 0 : index
    %c0_24 = arith.constant 0 : index
    %19 = vector.load %arg7[%c0_22, %c0_23, %c0_24] : memref<18x18x128xf32, #tpu.memory_space<vmem>>, vector<16x16x128xf32>
    %20 = vector.shape_cast %19 : vector<16x16x128xf32> to vector<256x128xf32>
    %21 = arith.truncf %20 : vector<256x128xf32> to vector<256x128xbf16>
    %c0_25 = arith.constant 0 : index
    %c0_26 = arith.constant 0 : index
    %22 = vector.load %arg8[%c0_25, %c0_26] : memref<256x1152xbf16, #tpu.memory_space<vmem>>, vector<256x128xbf16>
    tpu.vector_store %arg8[%c0_25, %c0_26], %21 {strides = array<i32>} : memref<256x1152xbf16, #tpu.memory_space<vmem>>, vector<256x128xbf16>,
    %c0_27 = arith.constant 0 : index
    %c1_28 = arith.constant 1 : index
    %c0_29 = arith.constant 0 : index
    %23 = vector.load %arg7[%c0_27, %c1_28, %c0_29] : memref<18x18x128xf32, #tpu.memory_space<vmem>>, vector<16x16x128xf32>
    %24 = vector.shape_cast %23 : vector<16x16x128xf32> to vector<256x128xf32>
    %25 = arith.truncf %24 : vector<256x128xf32> to vector<256x128xbf16>
    %c0_30 = arith.constant 0 : index
    %c128 = arith.constant 128 : index
    %26 = vector.load %arg8[%c0_30, %c128] : memref<256x1152xbf16, #tpu.memory_space<vmem>>, vector<256x128xbf16>
    tpu.vector_store %arg8[%c0_30, %c128], %25 {strides = array<i32>} : memref<256x1152xbf16, #tpu.memory_space<vmem>>, vector<256x128xbf16>,
    %c0_31 = arith.constant 0 : index
    %c2 = arith.constant 2 : index
    %c0_32 = arith.constant 0 : index
    %27 = vector.load %arg7[%c0_31, %c2, %c0_32] : memref<18x18x128xf32, #tpu.memory_space<vmem>>, vector<16x16x128xf32>
    %28 = vector.shape_cast %27 : vector<16x16x128xf32> to vector<256x128xf32>
    %29 = arith.truncf %28 : vector<256x128xf32> to vector<256x128xbf16>
    %c0_33 = arith.constant 0 : index
    %c256 = arith.constant 256 : index
    %30 = vector.load %arg8[%c0_33, %c256] : memref<256x1152xbf16, #tpu.memory_space<vmem>>, vector<256x128xbf16>
    tpu.vector_store %arg8[%c0_33, %c256], %29 {strides = array<i32>} : memref<256x1152xbf16, #tpu.memory_space<vmem>>, vector<256x128xbf16>,
    %c1_34 = arith.constant 1 : index
    %c0_35 = arith.constant 0 : index
    %c0_36 = arith.constant 0 : index
    %31 = vector.load %arg7[%c1_34, %c0_35, %c0_36] : memref<18x18x128xf32, #tpu.memory_space<vmem>>, vector<16x16x128xf32>
    %32 = vector.shape_cast %31 : vector<16x16x128xf32> to vector<256x128xf32>
    %33 = arith.truncf %32 : vector<256x128xf32> to vector<256x128xbf16>
    %c0_37 = arith.constant 0 : index
    %c384 = arith.constant 384 : index
    %34 = vector.load %arg8[%c0_37, %c384] : memref<256x1152xbf16, #tpu.memory_space<vmem>>, vector<256x128xbf16>
    tpu.vector_store %arg8[%c0_37, %c384], %33 {strides = array<i32>} : memref<256x1152xbf16, #tpu.memory_space<vmem>>, vector<256x128xbf16>,
    %c1_38 = arith.constant 1 : index
    %c1_39 = arith.constant 1 : index
    %c0_40 = arith.constant 0 : index
    %35 = vector.load %arg7[%c1_38, %c1_39, %c0_40] : memref<18x18x128xf32, #tpu.memory_space<vmem>>, vector<16x16x128xf32>
    %36 = vector.shape_cast %35 : vector<16x16x128xf32> to vector<256x128xf32>
    %37 = arith.truncf %36 : vector<256x128xf32> to vector<256x128xbf16>
    %c0_41 = arith.constant 0 : index
    %c512 = arith.constant 512 : index
    %38 = vector.load %arg8[%c0_41, %c512] : memref<256x1152xbf16, #tpu.memory_space<vmem>>, vector<256x128xbf16>
    tpu.vector_store %arg8[%c0_41, %c512], %37 {strides = array<i32>} : memref<256x1152xbf16, #tpu.memory_space<vmem>>, vector<256x128xbf16>,
    %c1_42 = arith.constant 1 : index
    %c2_43 = arith.constant 2 : index
    %c0_44 = arith.constant 0 : index
    %39 = vector.load %arg7[%c1_42, %c2_43, %c0_44] : memref<18x18x128xf32, #tpu.memory_space<vmem>>, vector<16x16x128xf32>
    %40 = vector.shape_cast %39 : vector<16x16x128xf32> to vector<256x128xf32>
    %41 = arith.truncf %40 : vector<256x128xf32> to vector<256x128xbf16>
    %c0_45 = arith.constant 0 : index
    %c640 = arith.constant 640 : index
    %42 = vector.load %arg8[%c0_45, %c640] : memref<256x1152xbf16, #tpu.memory_space<vmem>>, vector<256x128xbf16>
    tpu.vector_store %arg8[%c0_45, %c640], %41 {strides = array<i32>} : memref<256x1152xbf16, #tpu.memory_space<vmem>>, vector<256x128xbf16>,
    %c2_46 = arith.constant 2 : index
    %c0_47 = arith.constant 0 : index
    %c0_48 = arith.constant 0 : index
    %43 = vector.load %arg7[%c2_46, %c0_47, %c0_48] : memref<18x18x128xf32, #tpu.memory_space<vmem>>, vector<16x16x128xf32>
    %44 = vector.shape_cast %43 : vector<16x16x128xf32> to vector<256x128xf32>
    %45 = arith.truncf %44 : vector<256x128xf32> to vector<256x128xbf16>
    %c0_49 = arith.constant 0 : index
    %c768 = arith.constant 768 : index
    %46 = vector.load %arg8[%c0_49, %c768] : memref<256x1152xbf16, #tpu.memory_space<vmem>>, vector<256x128xbf16>
    tpu.vector_store %arg8[%c0_49, %c768], %45 {strides = array<i32>} : memref<256x1152xbf16, #tpu.memory_space<vmem>>, vector<256x128xbf16>,
    %c2_50 = arith.constant 2 : index
    %c1_51 = arith.constant 1 : index
    %c0_52 = arith.constant 0 : index
    %47 = vector.load %arg7[%c2_50, %c1_51, %c0_52] : memref<18x18x128xf32, #tpu.memory_space<vmem>>, vector<16x16x128xf32>
    %48 = vector.shape_cast %47 : vector<16x16x128xf32> to vector<256x128xf32>
    %49 = arith.truncf %48 : vector<256x128xf32> to vector<256x128xbf16>
    %c0_53 = arith.constant 0 : index
    %c896 = arith.constant 896 : index
    %50 = vector.load %arg8[%c0_53, %c896] : memref<256x1152xbf16, #tpu.memory_space<vmem>>, vector<256x128xbf16>
    tpu.vector_store %arg8[%c0_53, %c896], %49 {strides = array<i32>} : memref<256x1152xbf16, #tpu.memory_space<vmem>>, vector<256x128xbf16>,
    %c2_54 = arith.constant 2 : index
    %c2_55 = arith.constant 2 : index
    %c0_56 = arith.constant 0 : index
    %51 = vector.load %arg7[%c2_54, %c2_55, %c0_56] : memref<18x18x128xf32, #tpu.memory_space<vmem>>, vector<16x16x128xf32>
    %52 = vector.shape_cast %51 : vector<16x16x128xf32> to vector<256x128xf32>
    %53 = arith.truncf %52 : vector<256x128xf32> to vector<256x128xbf16>
    %c0_57 = arith.constant 0 : index
    %c1024 = arith.constant 1024 : index
    %54 = vector.load %arg8[%c0_57, %c1024] : memref<256x1152xbf16, #tpu.memory_space<vmem>>, vector<256x128xbf16>
    tpu.vector_store %arg8[%c0_57, %c1024], %53 {strides = array<i32>} : memref<256x1152xbf16, #tpu.memory_space<vmem>>, vector<256x128xbf16>,
    %c0_58 = arith.constant 0 : index
    %c0_59 = arith.constant 0 : index
    %55 = vector.load %arg8[%c0_58, %c0_59] : memref<256x1152xbf16, #tpu.memory_space<vmem>>, vector<256x1152xbf16>
    %c0_60 = arith.constant 0 : index
    %c0_61 = arith.constant 0 : index
    %56 = vector.load %arg4[%c0_60, %c0_61] : memref<1152x128xbf16, #tpu.memory_space<vmem>>, vector<1152x128xbf16>
    %cst_62 = arith.constant dense<0.000000e+00> : vector<256x128xf32>
    %57 = tpu.matmul %55, %56, %cst_62 {dimension_numbers = #tpu.dot_dimension_numbers<[1], [0], [0], [1], [0, 0, 1, 1], [], []>} : vector<256x1152xbf16>, vector<1152x128xbf16>, vector<256x128xf32> -> vector<256x128xf32>
    %58 = vector.shape_cast %57 : vector<256x128xf32> to vector<16x16x128xf32>
    %c0_63 = arith.constant 0 : index
    %c0_64 = arith.constant 0 : index
    %c0_65 = arith.constant 0 : index
    %c0_66 = arith.constant 0 : index
    %59 = vector.load %arg5[%c0_63, %c0_64, %c0_65, %c0_66] : memref<1x16x16x128xf32, #tpu.memory_space<vmem>>, vector<1x16x16x128xf32>
    %60 = vector.shape_cast %59 : vector<1x16x16x128xf32> to vector<16x16x128xf32>
    %61 = vector.shape_cast %58 : vector<16x16x128xf32> to vector<1x16x16x128xf32>
    tpu.vector_store %arg5[%c0_63, %c0_64, %c0_65, %c0_66], %61 {strides = array<i32>} : memref<1x16x16x128xf32, #tpu.memory_space<vmem>>, vector<1x16x16x128xf32>,
    %cst_67 = arith.constant dense<0.000000e+00> : vector<128xf32>
    %62 = vector.multi_reduction <add>, %57, %cst_67 [0] : vector<256x128xf32> to vector<128xf32>
    %63 = vector.shape_cast %62 : vector<128xf32> to vector<1x128xf32>
    %c0_68 = arith.constant 0 : index
    %c0_69 = arith.constant 0 : index
    %c0_70 = arith.constant 0 : index
    %64 = vector.load %arg6[%c0_68, %c0_69, %c0_70] : memref<1x2x128xf32, #tpu.memory_space<vmem>>, vector<1x1x128xf32>
    %65 = vector.shape_cast %64 : vector<1x1x128xf32> to vector<1x128xf32>
    %66 = vector.shape_cast %63 : vector<1x128xf32> to vector<1x1x128xf32>
    tpu.vector_store %arg6[%c0_68, %c0_69, %c0_70], %66 {strides = array<i32>} : memref<1x2x128xf32, #tpu.memory_space<vmem>>, vector<1x1x128xf32>,
    %67 = arith.mulf %57, %57 : vector<256x128xf32>
    %cst_71 = arith.constant dense<0.000000e+00> : vector<128xf32>
    %68 = vector.multi_reduction <add>, %67, %cst_71 [0] : vector<256x128xf32> to vector<128xf32>
    %69 = vector.shape_cast %68 : vector<128xf32> to vector<1x128xf32>
    %c0_72 = arith.constant 0 : index
    %c1_73 = arith.constant 1 : index
    %c0_74 = arith.constant 0 : index
    %70 = vector.load %arg6[%c0_72, %c1_73, %c0_74] : memref<1x2x128xf32, #tpu.memory_space<vmem>>, vector<1x1x128xf32>
    %71 = vector.shape_cast %70 : vector<1x1x128xf32> to vector<1x128xf32>
    %72 = vector.shape_cast %69 : vector<1x128xf32> to vector<1x1x128xf32>
    tpu.vector_store %arg6[%c0_72, %c1_73, %c0_74], %72 {strides = array<i32>} : memref<1x2x128xf32, #tpu.memory_space<vmem>>, vector<1x1x128xf32>,
    return
  }
  func.func @transform_0(%arg0: i32) -> (i32, i32, i32, i32) {
    %c0_i32 = arith.constant 0 : i32
    %c0_i32_0 = arith.constant 0 : i32
    %c0_i32_1 = arith.constant 0 : i32
    %c0_i32_2 = arith.constant 0 : i32
    return %arg0, %c0_i32, %c0_i32_0, %c0_i32_1 : i32, i32, i32, i32
  }
  func.func @transform_1(%arg0: i32) -> (i32, i32) {
    %c0_i32 = arith.constant 0 : i32
    %c0_i32_0 = arith.constant 0 : i32
    %c0_i32_1 = arith.constant 0 : i32
    return %c0_i32, %c0_i32_0 : i32, i32
  }
  func.func @transform_2(%arg0: i32) -> (i32, i32) {
    %c0_i32 = arith.constant 0 : i32
    %c0_i32_0 = arith.constant 0 : i32
    %c0_i32_1 = arith.constant 0 : i32
    return %c0_i32, %c0_i32_0 : i32, i32
  }
  func.func @transform_3(%arg0: i32) -> (i32, i32) {
    %c0_i32 = arith.constant 0 : i32
    %c0_i32_0 = arith.constant 0 : i32
    %c0_i32_1 = arith.constant 0 : i32
    return %c0_i32, %c0_i32_0 : i32, i32
  }
  func.func @transform_4(%arg0: i32) -> (i32, i32, i32, i32) {
    %c0_i32 = arith.constant 0 : i32
    %c0_i32_0 = arith.constant 0 : i32
    %c0_i32_1 = arith.constant 0 : i32
    %c0_i32_2 = arith.constant 0 : i32
    return %arg0, %c0_i32, %c0_i32_0, %c0_i32_1 : i32, i32, i32, i32
  }
  func.func @transform_5(%arg0: i32) -> (i32, i32, i32) {
    %c0_i32 = arith.constant 0 : i32
    %c0_i32_0 = arith.constant 0 : i32
    %c0_i32_1 = arith.constant 0 : i32
    return %arg0, %c0_i32, %c0_i32_0 : i32, i32, i32
  }
}

module attributes {stable_mosaic.version = 11 : i64} {
  func.func @conv_block_kernel(%arg0: i32, %arg1: memref<1x16x16x128xf32, #tpu.memory_space<vmem>>, %arg2: memref<1x128xf32, #tpu.memory_space<vmem>>, %arg3: memref<1x128xf32, #tpu.memory_space<vmem>>, %arg4: memref<1152x128xbf16, #tpu.memory_space<vmem>>, %arg5: memref<1x16x16x128xf32, #tpu.memory_space<vmem>>, %arg6: memref<1x2x128xf32, #tpu.memory_space<vmem>>, %arg7: memref<18x18x128xf32, #tpu.memory_space<vmem>>, %arg8: memref<256x1152xbf16, #tpu.memory_space<vmem>>) attributes {dimension_semantics = [#tpu.dimension_semantics<parallel>], iteration_bounds = array<i64: 2>, scalar_prefetch = 0 : i64, scratch_operands = 2 : i64, tpu.core_type = #tpu.core_type<tc>, window_params = [{transform_indices = @transform_0, window_bounds = array<i64: 1, 16, 16, 128>}, {pipeline_mode = #tpu.pipeline_mode<synchronous>, transform_indices = @transform_1, window_bounds = array<i64: 1, 128>}, {pipeline_mode = #tpu.pipeline_mode<synchronous>, transform_indices = @transform_2, window_bounds = array<i64: 1, 128>}, {pipeline_mode = #tpu.pipeline_mode<synchronous>, transform_indices = @transform_3, window_bounds = array<i64: 1152, 128>}, {transform_indices = @transform_4, window_bounds = array<i64: 1, 16, 16, 128>}, {transform_indices = @transform_5, window_bounds = array<i64: 1, 2, 128>}]} {
    %c0 = arith.constant 0 : index
    %c0_0 = arith.constant 0 : index
    %0 = vector.load %arg2[%c0, %c0_0] : memref<1x128xf32, #tpu.memory_space<vmem>>, vector<1x128xf32>
    %1 = vector.shape_cast %0 : vector<1x128xf32> to vector<1x1x128xf32>
    %c0_1 = arith.constant 0 : index
    %c0_2 = arith.constant 0 : index
    %2 = vector.load %arg3[%c0_1, %c0_2] : memref<1x128xf32, #tpu.memory_space<vmem>>, vector<1x128xf32>
    %3 = vector.shape_cast %2 : vector<1x128xf32> to vector<1x1x128xf32>
    %c0_3 = arith.constant 0 : index
    %c0_4 = arith.constant 0 : index
    %c0_5 = arith.constant 0 : index
    %c0_6 = arith.constant 0 : index
    %4 = vector.load %arg1[%c0_3, %c0_4, %c0_5, %c0_6] : memref<1x16x16x128xf32, #tpu.memory_space<vmem>>, vector<1x16x16x128xf32>
    %5 = vector.shape_cast %4 : vector<1x16x16x128xf32> to vector<16x16x128xf32>
    %6 = vector.broadcast %1 : vector<1x1x128xf32> to vector<16x16x128xf32>
    %7 = arith.mulf %5, %6 : vector<16x16x128xf32>
    %8 = vector.broadcast %3 : vector<1x1x128xf32> to vector<16x16x128xf32>
    %9 = arith.addf %7, %8 : vector<16x16x128xf32>
    %c1 = arith.constant 1 : index
    %c1_7 = arith.constant 1 : index
    %c0_8 = arith.constant 0 : index
    %10 = vector.load %arg7[%c1, %c1_7, %c0_8] : memref<18x18x128xf32, #tpu.memory_space<vmem>>, vector<16x16x128xf32>
    tpu.vector_store %arg7[%c1, %c1_7, %c0_8], %9 {strides = array<i32>} : memref<18x18x128xf32, #tpu.memory_space<vmem>>, vector<16x16x128xf32>,
    %cst = arith.constant 0.000000e+00 : f32
    %11 = vector.broadcast %cst : f32 to vector<1x18x128xf32>
    %c0_9 = arith.constant 0 : index
    %c0_10 = arith.constant 0 : index
    %c0_11 = arith.constant 0 : index
    %12 = vector.load %arg7[%c0_9, %c0_10, %c0_11] : memref<18x18x128xf32, #tpu.memory_space<vmem>>, vector<1x18x128xf32>
    tpu.vector_store %arg7[%c0_9, %c0_10, %c0_11], %11 {strides = array<i32>} : memref<18x18x128xf32, #tpu.memory_space<vmem>>, vector<1x18x128xf32>,
    %c17 = arith.constant 17 : index
    %c0_12 = arith.constant 0 : index
    %c0_13 = arith.constant 0 : index
    %13 = vector.load %arg7[%c17, %c0_12, %c0_13] : memref<18x18x128xf32, #tpu.memory_space<vmem>>, vector<1x18x128xf32>
    tpu.vector_store %arg7[%c17, %c0_12, %c0_13], %11 {strides = array<i32>} : memref<18x18x128xf32, #tpu.memory_space<vmem>>, vector<1x18x128xf32>,
    %cst_14 = arith.constant 0.000000e+00 : f32
    %14 = vector.broadcast %cst_14 : f32 to vector<18x1x128xf32>
    %c0_15 = arith.constant 0 : index
    %c0_16 = arith.constant 0 : index
    %c0_17 = arith.constant 0 : index
    %15 = vector.load %arg7[%c0_15, %c0_16, %c0_17] : memref<18x18x128xf32, #tpu.memory_space<vmem>>, vector<18x1x128xf32>
    tpu.vector_store %arg7[%c0_15, %c0_16, %c0_17], %14 {strides = array<i32>} : memref<18x18x128xf32, #tpu.memory_space<vmem>>, vector<18x1x128xf32>,
    %c0_18 = arith.constant 0 : index
    %c17_19 = arith.constant 17 : index
    %c0_20 = arith.constant 0 : index
    %16 = vector.load %arg7[%c0_18, %c17_19, %c0_20] : memref<18x18x128xf32, #tpu.memory_space<vmem>>, vector<18x1x128xf32>
    tpu.vector_store %arg7[%c0_18, %c17_19, %c0_20], %14 {strides = array<i32>} : memref<18x18x128xf32, #tpu.memory_space<vmem>>, vector<18x1x128xf32>,
    %c0_21 = arith.constant 0 : index
    %c0_22 = arith.constant 0 : index
    %c0_23 = arith.constant 0 : index
    %17 = vector.load %arg7[%c0_21, %c0_22, %c0_23] : memref<18x18x128xf32, #tpu.memory_space<vmem>>, vector<16x16x128xf32>
    %18 = vector.shape_cast %17 : vector<16x16x128xf32> to vector<256x128xf32>
    %19 = arith.truncf %18 : vector<256x128xf32> to vector<256x128xbf16>
    %c0_24 = arith.constant 0 : index
    %c0_25 = arith.constant 0 : index
    %20 = vector.load %arg8[%c0_24, %c0_25] : memref<256x1152xbf16, #tpu.memory_space<vmem>>, vector<256x128xbf16>
    tpu.vector_store %arg8[%c0_24, %c0_25], %19 {strides = array<i32>} : memref<256x1152xbf16, #tpu.memory_space<vmem>>, vector<256x128xbf16>,
    %c0_26 = arith.constant 0 : index
    %c1_27 = arith.constant 1 : index
    %c0_28 = arith.constant 0 : index
    %21 = vector.load %arg7[%c0_26, %c1_27, %c0_28] : memref<18x18x128xf32, #tpu.memory_space<vmem>>, vector<16x16x128xf32>
    %22 = vector.shape_cast %21 : vector<16x16x128xf32> to vector<256x128xf32>
    %23 = arith.truncf %22 : vector<256x128xf32> to vector<256x128xbf16>
    %c0_29 = arith.constant 0 : index
    %c128 = arith.constant 128 : index
    %24 = vector.load %arg8[%c0_29, %c128] : memref<256x1152xbf16, #tpu.memory_space<vmem>>, vector<256x128xbf16>
    tpu.vector_store %arg8[%c0_29, %c128], %23 {strides = array<i32>} : memref<256x1152xbf16, #tpu.memory_space<vmem>>, vector<256x128xbf16>,
    %c0_30 = arith.constant 0 : index
    %c2 = arith.constant 2 : index
    %c0_31 = arith.constant 0 : index
    %25 = vector.load %arg7[%c0_30, %c2, %c0_31] : memref<18x18x128xf32, #tpu.memory_space<vmem>>, vector<16x16x128xf32>
    %26 = vector.shape_cast %25 : vector<16x16x128xf32> to vector<256x128xf32>
    %27 = arith.truncf %26 : vector<256x128xf32> to vector<256x128xbf16>
    %c0_32 = arith.constant 0 : index
    %c256 = arith.constant 256 : index
    %28 = vector.load %arg8[%c0_32, %c256] : memref<256x1152xbf16, #tpu.memory_space<vmem>>, vector<256x128xbf16>
    tpu.vector_store %arg8[%c0_32, %c256], %27 {strides = array<i32>} : memref<256x1152xbf16, #tpu.memory_space<vmem>>, vector<256x128xbf16>,
    %c1_33 = arith.constant 1 : index
    %c0_34 = arith.constant 0 : index
    %c0_35 = arith.constant 0 : index
    %29 = vector.load %arg7[%c1_33, %c0_34, %c0_35] : memref<18x18x128xf32, #tpu.memory_space<vmem>>, vector<16x16x128xf32>
    %30 = vector.shape_cast %29 : vector<16x16x128xf32> to vector<256x128xf32>
    %31 = arith.truncf %30 : vector<256x128xf32> to vector<256x128xbf16>
    %c0_36 = arith.constant 0 : index
    %c384 = arith.constant 384 : index
    %32 = vector.load %arg8[%c0_36, %c384] : memref<256x1152xbf16, #tpu.memory_space<vmem>>, vector<256x128xbf16>
    tpu.vector_store %arg8[%c0_36, %c384], %31 {strides = array<i32>} : memref<256x1152xbf16, #tpu.memory_space<vmem>>, vector<256x128xbf16>,
    %c1_37 = arith.constant 1 : index
    %c1_38 = arith.constant 1 : index
    %c0_39 = arith.constant 0 : index
    %33 = vector.load %arg7[%c1_37, %c1_38, %c0_39] : memref<18x18x128xf32, #tpu.memory_space<vmem>>, vector<16x16x128xf32>
    %34 = vector.shape_cast %33 : vector<16x16x128xf32> to vector<256x128xf32>
    %35 = arith.truncf %34 : vector<256x128xf32> to vector<256x128xbf16>
    %c0_40 = arith.constant 0 : index
    %c512 = arith.constant 512 : index
    %36 = vector.load %arg8[%c0_40, %c512] : memref<256x1152xbf16, #tpu.memory_space<vmem>>, vector<256x128xbf16>
    tpu.vector_store %arg8[%c0_40, %c512], %35 {strides = array<i32>} : memref<256x1152xbf16, #tpu.memory_space<vmem>>, vector<256x128xbf16>,
    %c1_41 = arith.constant 1 : index
    %c2_42 = arith.constant 2 : index
    %c0_43 = arith.constant 0 : index
    %37 = vector.load %arg7[%c1_41, %c2_42, %c0_43] : memref<18x18x128xf32, #tpu.memory_space<vmem>>, vector<16x16x128xf32>
    %38 = vector.shape_cast %37 : vector<16x16x128xf32> to vector<256x128xf32>
    %39 = arith.truncf %38 : vector<256x128xf32> to vector<256x128xbf16>
    %c0_44 = arith.constant 0 : index
    %c640 = arith.constant 640 : index
    %40 = vector.load %arg8[%c0_44, %c640] : memref<256x1152xbf16, #tpu.memory_space<vmem>>, vector<256x128xbf16>
    tpu.vector_store %arg8[%c0_44, %c640], %39 {strides = array<i32>} : memref<256x1152xbf16, #tpu.memory_space<vmem>>, vector<256x128xbf16>,
    %c2_45 = arith.constant 2 : index
    %c0_46 = arith.constant 0 : index
    %c0_47 = arith.constant 0 : index
    %41 = vector.load %arg7[%c2_45, %c0_46, %c0_47] : memref<18x18x128xf32, #tpu.memory_space<vmem>>, vector<16x16x128xf32>
    %42 = vector.shape_cast %41 : vector<16x16x128xf32> to vector<256x128xf32>
    %43 = arith.truncf %42 : vector<256x128xf32> to vector<256x128xbf16>
    %c0_48 = arith.constant 0 : index
    %c768 = arith.constant 768 : index
    %44 = vector.load %arg8[%c0_48, %c768] : memref<256x1152xbf16, #tpu.memory_space<vmem>>, vector<256x128xbf16>
    tpu.vector_store %arg8[%c0_48, %c768], %43 {strides = array<i32>} : memref<256x1152xbf16, #tpu.memory_space<vmem>>, vector<256x128xbf16>,
    %c2_49 = arith.constant 2 : index
    %c1_50 = arith.constant 1 : index
    %c0_51 = arith.constant 0 : index
    %45 = vector.load %arg7[%c2_49, %c1_50, %c0_51] : memref<18x18x128xf32, #tpu.memory_space<vmem>>, vector<16x16x128xf32>
    %46 = vector.shape_cast %45 : vector<16x16x128xf32> to vector<256x128xf32>
    %47 = arith.truncf %46 : vector<256x128xf32> to vector<256x128xbf16>
    %c0_52 = arith.constant 0 : index
    %c896 = arith.constant 896 : index
    %48 = vector.load %arg8[%c0_52, %c896] : memref<256x1152xbf16, #tpu.memory_space<vmem>>, vector<256x128xbf16>
    tpu.vector_store %arg8[%c0_52, %c896], %47 {strides = array<i32>} : memref<256x1152xbf16, #tpu.memory_space<vmem>>, vector<256x128xbf16>,
    %c2_53 = arith.constant 2 : index
    %c2_54 = arith.constant 2 : index
    %c0_55 = arith.constant 0 : index
    %49 = vector.load %arg7[%c2_53, %c2_54, %c0_55] : memref<18x18x128xf32, #tpu.memory_space<vmem>>, vector<16x16x128xf32>
    %50 = vector.shape_cast %49 : vector<16x16x128xf32> to vector<256x128xf32>
    %51 = arith.truncf %50 : vector<256x128xf32> to vector<256x128xbf16>
    %c0_56 = arith.constant 0 : index
    %c1024 = arith.constant 1024 : index
    %52 = vector.load %arg8[%c0_56, %c1024] : memref<256x1152xbf16, #tpu.memory_space<vmem>>, vector<256x128xbf16>
    tpu.vector_store %arg8[%c0_56, %c1024], %51 {strides = array<i32>} : memref<256x1152xbf16, #tpu.memory_space<vmem>>, vector<256x128xbf16>,
    %c0_57 = arith.constant 0 : index
    %c0_58 = arith.constant 0 : index
    %53 = vector.load %arg8[%c0_57, %c0_58] : memref<256x1152xbf16, #tpu.memory_space<vmem>>, vector<256x1152xbf16>
    %c0_59 = arith.constant 0 : index
    %c0_60 = arith.constant 0 : index
    %54 = vector.load %arg4[%c0_59, %c0_60] : memref<1152x128xbf16, #tpu.memory_space<vmem>>, vector<1152x128xbf16>
    %cst_61 = arith.constant dense<0.000000e+00> : vector<256x128xf32>
    %55 = tpu.matmul %53, %54, %cst_61 {dimension_numbers = #tpu.dot_dimension_numbers<[1], [0], [0], [1], [0, 0, 1, 1], [], []>} : vector<256x1152xbf16>, vector<1152x128xbf16>, vector<256x128xf32> -> vector<256x128xf32>
    %56 = vector.shape_cast %55 : vector<256x128xf32> to vector<16x16x128xf32>
    %c0_62 = arith.constant 0 : index
    %c0_63 = arith.constant 0 : index
    %c0_64 = arith.constant 0 : index
    %c0_65 = arith.constant 0 : index
    %57 = vector.load %arg5[%c0_62, %c0_63, %c0_64, %c0_65] : memref<1x16x16x128xf32, #tpu.memory_space<vmem>>, vector<1x16x16x128xf32>
    %58 = vector.shape_cast %57 : vector<1x16x16x128xf32> to vector<16x16x128xf32>
    %59 = vector.shape_cast %56 : vector<16x16x128xf32> to vector<1x16x16x128xf32>
    tpu.vector_store %arg5[%c0_62, %c0_63, %c0_64, %c0_65], %59 {strides = array<i32>} : memref<1x16x16x128xf32, #tpu.memory_space<vmem>>, vector<1x16x16x128xf32>,
    %cst_66 = arith.constant dense<0.000000e+00> : vector<128xf32>
    %60 = vector.multi_reduction <add>, %55, %cst_66 [0] : vector<256x128xf32> to vector<128xf32>
    %61 = vector.shape_cast %60 : vector<128xf32> to vector<1x128xf32>
    %c0_67 = arith.constant 0 : index
    %c0_68 = arith.constant 0 : index
    %c0_69 = arith.constant 0 : index
    %62 = vector.load %arg6[%c0_67, %c0_68, %c0_69] : memref<1x2x128xf32, #tpu.memory_space<vmem>>, vector<1x1x128xf32>
    %63 = vector.shape_cast %62 : vector<1x1x128xf32> to vector<1x128xf32>
    %64 = vector.shape_cast %61 : vector<1x128xf32> to vector<1x1x128xf32>
    tpu.vector_store %arg6[%c0_67, %c0_68, %c0_69], %64 {strides = array<i32>} : memref<1x2x128xf32, #tpu.memory_space<vmem>>, vector<1x1x128xf32>,
    %65 = arith.mulf %55, %55 : vector<256x128xf32>
    %cst_70 = arith.constant dense<0.000000e+00> : vector<128xf32>
    %66 = vector.multi_reduction <add>, %65, %cst_70 [0] : vector<256x128xf32> to vector<128xf32>
    %67 = vector.shape_cast %66 : vector<128xf32> to vector<1x128xf32>
    %c0_71 = arith.constant 0 : index
    %c1_72 = arith.constant 1 : index
    %c0_73 = arith.constant 0 : index
    %68 = vector.load %arg6[%c0_71, %c1_72, %c0_73] : memref<1x2x128xf32, #tpu.memory_space<vmem>>, vector<1x1x128xf32>
    %69 = vector.shape_cast %68 : vector<1x1x128xf32> to vector<1x128xf32>
    %70 = vector.shape_cast %67 : vector<1x128xf32> to vector<1x1x128xf32>
    tpu.vector_store %arg6[%c0_71, %c1_72, %c0_73], %70 {strides = array<i32>} : memref<1x2x128xf32, #tpu.memory_space<vmem>>, vector<1x1x128xf32>,
    return
  }
  func.func @transform_0(%arg0: i32) -> (i32, i32, i32, i32) {
    %c0_i32 = arith.constant 0 : i32
    %c0_i32_0 = arith.constant 0 : i32
    %c0_i32_1 = arith.constant 0 : i32
    %c0_i32_2 = arith.constant 0 : i32
    return %arg0, %c0_i32, %c0_i32_0, %c0_i32_1 : i32, i32, i32, i32
  }
  func.func @transform_1(%arg0: i32) -> (i32, i32) {
    %c0_i32 = arith.constant 0 : i32
    %c0_i32_0 = arith.constant 0 : i32
    %c0_i32_1 = arith.constant 0 : i32
    return %c0_i32, %c0_i32_0 : i32, i32
  }
  func.func @transform_2(%arg0: i32) -> (i32, i32) {
    %c0_i32 = arith.constant 0 : i32
    %c0_i32_0 = arith.constant 0 : i32
    %c0_i32_1 = arith.constant 0 : i32
    return %c0_i32, %c0_i32_0 : i32, i32
  }
  func.func @transform_3(%arg0: i32) -> (i32, i32) {
    %c0_i32 = arith.constant 0 : i32
    %c0_i32_0 = arith.constant 0 : i32
    %c0_i32_1 = arith.constant 0 : i32
    return %c0_i32, %c0_i32_0 : i32, i32
  }
  func.func @transform_4(%arg0: i32) -> (i32, i32, i32, i32) {
    %c0_i32 = arith.constant 0 : i32
    %c0_i32_0 = arith.constant 0 : i32
    %c0_i32_1 = arith.constant 0 : i32
    %c0_i32_2 = arith.constant 0 : i32
    return %arg0, %c0_i32, %c0_i32_0, %c0_i32_1 : i32, i32, i32, i32
  }
  func.func @transform_5(%arg0: i32) -> (i32, i32, i32) {
    %c0_i32 = arith.constant 0 : i32
    %c0_i32_0 = arith.constant 0 : i32
    %c0_i32_1 = arith.constant 0 : i32
    return %arg0, %c0_i32, %c0_i32_0 : i32, i32, i32
  }
}

module attributes {stable_mosaic.version = 11 : i64} {
  func.func @finalize_kernel(%arg0: i32, %arg1: memref<1x16x16x128xf32, #tpu.memory_space<vmem>>, %arg2: memref<1x16x16x128xf32, #tpu.memory_space<vmem>>, %arg3: memref<1x128xf32, #tpu.memory_space<vmem>>, %arg4: memref<1x128xf32, #tpu.memory_space<vmem>>, %arg5: memref<1x16x16x128xf32, #tpu.memory_space<vmem>>) attributes {dimension_semantics = [#tpu.dimension_semantics<parallel>], iteration_bounds = array<i64: 2>, scalar_prefetch = 0 : i64, scratch_operands = 0 : i64, tpu.core_type = #tpu.core_type<tc>, window_params = [{transform_indices = @transform_0, window_bounds = array<i64: 1, 16, 16, 128>}, {transform_indices = @transform_1, window_bounds = array<i64: 1, 16, 16, 128>}, {pipeline_mode = #tpu.pipeline_mode<synchronous>, transform_indices = @transform_2, window_bounds = array<i64: 1, 128>}, {pipeline_mode = #tpu.pipeline_mode<synchronous>, transform_indices = @transform_3, window_bounds = array<i64: 1, 128>}, {transform_indices = @transform_4, window_bounds = array<i64: 1, 16, 16, 128>}]} {
    %c0 = arith.constant 0 : index
    %c0_0 = arith.constant 0 : index
    %0 = vector.load %arg3[%c0, %c0_0] : memref<1x128xf32, #tpu.memory_space<vmem>>, vector<1x128xf32>
    %1 = vector.shape_cast %0 : vector<1x128xf32> to vector<1x1x128xf32>
    %c0_1 = arith.constant 0 : index
    %c0_2 = arith.constant 0 : index
    %2 = vector.load %arg4[%c0_1, %c0_2] : memref<1x128xf32, #tpu.memory_space<vmem>>, vector<1x128xf32>
    %3 = vector.shape_cast %2 : vector<1x128xf32> to vector<1x1x128xf32>
    %c0_3 = arith.constant 0 : index
    %c0_4 = arith.constant 0 : index
    %c0_5 = arith.constant 0 : index
    %c0_6 = arith.constant 0 : index
    %4 = vector.load %arg1[%c0_3, %c0_4, %c0_5, %c0_6] : memref<1x16x16x128xf32, #tpu.memory_space<vmem>>, vector<1x16x16x128xf32>
    %5 = vector.shape_cast %4 : vector<1x16x16x128xf32> to vector<16x16x128xf32>
    %6 = vector.broadcast %1 : vector<1x1x128xf32> to vector<16x16x128xf32>
    %7 = arith.mulf %5, %6 : vector<16x16x128xf32>
    %8 = vector.broadcast %3 : vector<1x1x128xf32> to vector<16x16x128xf32>
    %9 = arith.addf %7, %8 : vector<16x16x128xf32>
    %c0_7 = arith.constant 0 : index
    %c0_8 = arith.constant 0 : index
    %c0_9 = arith.constant 0 : index
    %c0_10 = arith.constant 0 : index
    %10 = vector.load %arg2[%c0_7, %c0_8, %c0_9, %c0_10] : memref<1x16x16x128xf32, #tpu.memory_space<vmem>>, vector<1x16x16x128xf32>
    %11 = vector.shape_cast %10 : vector<1x16x16x128xf32> to vector<16x16x128xf32>
    %12 = arith.addf %9, %11 : vector<16x16x128xf32>
    %cst = arith.constant 0.000000e+00 : f32
    %13 = vector.broadcast %cst : f32 to vector<16x16x128xf32>
    %14 = arith.maximumf %12, %13 : vector<16x16x128xf32>
    %c0_11 = arith.constant 0 : index
    %c0_12 = arith.constant 0 : index
    %c0_13 = arith.constant 0 : index
    %c0_14 = arith.constant 0 : index
    %15 = vector.load %arg5[%c0_11, %c0_12, %c0_13, %c0_14] : memref<1x16x16x128xf32, #tpu.memory_space<vmem>>, vector<1x16x16x128xf32>
    %16 = vector.shape_cast %15 : vector<1x16x16x128xf32> to vector<16x16x128xf32>
    %17 = vector.shape_cast %14 : vector<16x16x128xf32> to vector<1x16x16x128xf32>
    tpu.vector_store %arg5[%c0_11, %c0_12, %c0_13, %c0_14], %17 {strides = array<i32>} : memref<1x16x16x128xf32, #tpu.memory_space<vmem>>, vector<1x16x16x128xf32>,
    return
  }
  func.func @transform_0(%arg0: i32) -> (i32, i32, i32, i32) {
    %c0_i32 = arith.constant 0 : i32
    %c0_i32_0 = arith.constant 0 : i32
    %c0_i32_1 = arith.constant 0 : i32
    %c0_i32_2 = arith.constant 0 : i32
    return %arg0, %c0_i32, %c0_i32_0, %c0_i32_1 : i32, i32, i32, i32
  }
  func.func @transform_1(%arg0: i32) -> (i32, i32, i32, i32) {
    %c0_i32 = arith.constant 0 : i32
    %c0_i32_0 = arith.constant 0 : i32
    %c0_i32_1 = arith.constant 0 : i32
    %c0_i32_2 = arith.constant 0 : i32
    return %arg0, %c0_i32, %c0_i32_0, %c0_i32_1 : i32, i32, i32, i32
  }
  func.func @transform_2(%arg0: i32) -> (i32, i32) {
    %c0_i32 = arith.constant 0 : i32
    %c0_i32_0 = arith.constant 0 : i32
    %c0_i32_1 = arith.constant 0 : i32
    return %c0_i32, %c0_i32_0 : i32, i32
  }
  func.func @transform_3(%arg0: i32) -> (i32, i32) {
    %c0_i32 = arith.constant 0 : i32
    %c0_i32_0 = arith.constant 0 : i32
    %c0_i32_1 = arith.constant 0 : i32
    return %c0_i32, %c0_i32_0 : i32, i32
  }
  func.func @transform_4(%arg0: i32) -> (i32, i32, i32, i32) {
    %c0_i32 = arith.constant 0 : i32
    %c0_i32_0 = arith.constant 0 : i32
    %c0_i32_1 = arith.constant 0 : i32
    %c0_i32_2 = arith.constant 0 : i32
    return %arg0, %c0_i32, %c0_i32_0, %c0_i32_1 : i32, i32, i32, i32
  }
}

</mosaic_0001>

<bundles_post_ra>
// kernel: residual_forward.5
= control target key start
LH: loop header
LB: loop body
LE: loop exit
PB: predicated region body
PF: predicated region fallthrough
CT: control target
= control target key end

     0   :  { %s582_s15 = smov 0   ;;  %s783_s0 = inlined_call_operand.vmem [shape: f32[2,16,16,128], index: 0, kind: input, shape index: {}]   ;;  %s784_s1 = inlined_call_operand.vmem [shape: f32[2,16,16,128], index: 1, kind: input, shape index: {}]   ;;  %s785_s2 = inlined_call_operand.vmem [shape: f32[1,128], index: 2, kind: input, shape index: {}]   ;;  %s786_s3 = inlined_call_operand.vmem [shape: f32[1,128], index: 3, kind: input, shape index: {}]   ;;  %s787_s4 = inlined_call_operand.vmem [shape: f32[2,16,16,128], index: 4, kind: output, shape index: {}]  }
   0x1 LB: > { %s523_s16 = sadd.s32 4294967295, %s555_s15   ;;  %p527_p0 = scmp.ge.s32.totalorder %s555_s15, 1  ;;  %s555_s15 = sphi %s582_s15, %s14_s15  }
   0x2   : > { %p172_p1 = scmp.lt.s32.totalorder %s555_s15, 3 }
   0x4   : > { %p173_p2 = pnand %p527_p0, %p172_p1 }
   0x5   : > { %p203_p3 = scmp.lt.s32.totalorder (!%p173_p2), %s523_s16, 1  ;;  %v595_v0 = vld [vmem:[%s785_s2] ss:$0 sm:$0xff] (!%p173_p2) }
   0x6   : > { %176 = sbr.rel (%p173_p2) target bundleno = 55 (0x37), region = 36  ;;  %v612_v1 = vld [vmem:[%s786_s3] ss:$0 sm:$0xff] (!%p173_p2) }
   0xd   : > { %s789_s16 = smov (!%p203_p3, %s523_s16), 1 }
   0xe   : > { %s590_s17 = sshll.u32 %s789_s16, 8 }
   0xf   : > { %s601_s22 = scalar_lea.vmem %s783_s0, %s590_s17  ;;  %s607_s25 = scalar_lea.vmem %s784_s1, %s590_s17 }
  0x10   : > { %v220_v2 = vld [vmem:[%s601_s22] sm:$0xff]  ;;  %v221_v3 = vld [vmem:[%s601_s22 + $0x8] sm:$0xff]  ;;  %v222_v7 = vld [vmem:[%s601_s22 + $0x10] sm:$0xff]  ;;  %s643_s30 = scalar_lea.vmem %s787_s4, %s590_s17 }
  0x11   : > { %v258_v4 = vmul.f32 %v595_v0, %v220_v2  ;;  %v328_v5 = vld [vmem:[%s607_s25] sm:$0xff]  ;;  %v259_v6 = vmul.f32 %v595_v0, %v221_v3  ;;  %v329_v8 = vld [vmem:[%s607_s25 + $0x8] sm:$0xff]  ;;  %v260_v9 = vmul.f32 %v595_v0, %v222_v7  ;;  %v223_v10 = vld [vmem:[%s601_s22 + $0x18] sm:$0xff] }
  0x12   : > { %v224_v11 = vld [vmem:[%s601_s22 + $0x20] sm:$0xff]  ;;  %v330_v14 = vld [vmem:[%s607_s25 + $0x10] sm:$0xff]  ;;  %v261_v15 = vmul.f32 %v595_v0, %v223_v10  ;;  %v331_v16 = vld [vmem:[%s607_s25 + $0x18] sm:$0xff] }
  0x13   : > { %v296_v12 = vadd.f32 %v612_v1, %v258_v4  ;;  %v297_v13 = vadd.f32 %v612_v1, %v259_v6  ;;  %v262_v17 = vmul.f32 %v595_v0, %v224_v11  ;;  %v225_v18 = vld [vmem:[%s601_s22 + $0x28] sm:$0xff]  ;;  %v298_v19 = vadd.f32 %v612_v1, %v260_v9  ;;  %v332_v20 = vld [vmem:[%s607_s25 + $0x20] sm:$0xff]  ;;  %v226_v22 = vld [vmem:[%s601_s22 + $0x30] sm:$0xff] }
  0x14   : > { %v263_v21 = vmul.f32 %v595_v0, %v225_v18  ;;  %v227_v23 = vld [vmem:[%s601_s22 + $0x38] sm:$0xff]  ;;  %v299_v26 = vadd.f32 %v612_v1, %v261_v15  ;;  %v333_v28 = vld [vmem:[%s607_s25 + $0x28] sm:$0xff]  ;;  %v264_v31 = vmul.f32 %v595_v0, %v226_v22  ;;  %v228_v33 = vld [vmem:[%s601_s22 + $0x40] sm:$0xff] }
  0x15   : > { %v360_v24 = vadd.f32 %v328_v5, %v296_v12  ;;  %v361_v25 = vadd.f32 %v329_v8, %v297_v13  ;;  %v300_v27 = vadd.f32 %v612_v1, %v262_v17  ;;  %v362_v29 = vadd.f32 %v330_v14, %v298_v19  ;;  %v229_v34 = vld [vmem:[%s601_s22 + $0x48] sm:$0xff]  ;;  %v334_v39 = vld [vmem:[%s607_s25 + $0x30] sm:$0xff]  ;;  %v335_v40 = vld [vmem:[%s607_s25 + $0x38] sm:$0xff] }
  0x16   : > { %v301_v30 = vadd.f32 %v612_v1, %v263_v21  ;;  %v265_v32 = vmul.f32 %v595_v0, %v227_v23  ;;  %v363_v37 = vadd.f32 %v331_v16, %v299_v26  ;;  %v230_v41 = vld [vmem:[%s601_s22 + $0x50] sm:$0xff]  ;;  %v302_v44 = vadd.f32 %v612_v1, %v264_v31  ;;  %v231_v46 = vld [vmem:[%s601_s22 + $0x58] sm:$0xff]  ;;  %v232_v47 = vld [vmem:[%s601_s22 + $0x60] sm:$0xff] }
  0x17   : > { %v392_v35 = vmax.f32 %v360_v24, 0.0  ;;  %v393_v36 = vmax.f32 %v361_v25, 0.0  ;;  %v364_v38 = vadd.f32 %v332_v20, %v300_v27  ;;  %v394_v42 = vmax.f32 %v362_v29, 0.0  ;;  %v233_v52 = vld [vmem:[%s601_s22 + $0x68] sm:$0xff]  ;;  %v336_v56 = vld [vmem:[%s607_s25 + $0x40] sm:$0xff]  ;;  %v338_v61 = vld [vmem:[%s607_s25 + $0x50] sm:$0xff] }
  0x18   : > { %v365_v43 = vadd.f32 %v333_v28, %v301_v30  ;;  %v303_v45 = vadd.f32 %v612_v1, %v265_v32  ;;  %v395_v48 = vmax.f32 %v363_v37, 0.0  ;;  %v266_v50 = vmul.f32 %v595_v0, %v228_v33  ;;  %v337_v57 = vld [vmem:[%s607_s25 + $0x48] sm:$0xff]  ;;  %v234_v2 = vld [vmem:[%s601_s22 + $0x70] sm:$0xff]  ;;  %v235_v3 = vld [vmem:[%s601_s22 + $0x78] sm:$0xff] }
  0x19   : > { %424 = vst [vmem:[%s643_s30] sm:$0xff] %v392_v35  ;;  %425 = vst [vmem:[%s643_s30 + $0x8] sm:$0xff] %v393_v36  ;;  %v396_v49 = vmax.f32 %v364_v38, 0.0  ;;  %v267_v51 = vmul.f32 %v595_v0, %v229_v34  ;;  %v366_v54 = vadd.f32 %v334_v39, %v302_v44  ;;  %v268_v58 = vmul.f32 %v595_v0, %v230_v41  ;;  %v339_v7 = vld [vmem:[%s607_s25 + $0x58] sm:$0xff]  ;;  %v340_v8 = vld [vmem:[%s607_s25 + $0x60] sm:$0xff] }
  0x1a   : > { %426 = vst [vmem:[%s643_s30 + $0x10] sm:$0xff] %v394_v42  ;;  %v397_v53 = vmax.f32 %v365_v43, 0.0  ;;  %v367_v55 = vadd.f32 %v335_v40, %v303_v45  ;;  %427 = vst [vmem:[%s643_s30 + $0x18] sm:$0xff] %v395_v48  ;;  %v304_v59 = vadd.f32 %v612_v1, %v266_v50  ;;  %v269_v62 = vmul.f32 %v595_v0, %v231_v46  ;;  %v341_v14 = vld [vmem:[%s607_s25 + $0x68] sm:$0xff]  ;;  %v236_v19 = vld [vmem:[%s601_s22 + $0x80] sm:$0xff] }
  0x1b   : > { %428 = vst [vmem:[%s643_s30 + $0x20] sm:$0xff] %v396_v49  ;;  %v305_v60 = vadd.f32 %v612_v1, %v267_v51  ;;  %v270_v63 = vmul.f32 %v595_v0, %v232_v47  ;;  %v398_v4 = vmax.f32 %v366_v54, 0.0  ;;  %v306_v6 = vadd.f32 %v612_v1, %v268_v58  ;;  %v237_v20 = vld [vmem:[%s601_s22 + $0x88] sm:$0xff]  ;;  %v342_v25 = vld [vmem:[%s607_s25 + $0x70] sm:$0xff]  ;;  %v343_v26 = vld [vmem:[%s607_s25 + $0x78] sm:$0xff] }
  0x1c   : > { %429 = vst [vmem:[%s643_s30 + $0x28] sm:$0xff] %v397_v53  ;;  %v399_v5 = vmax.f32 %v367_v55, 0.0  ;;  %v271_v9 = vmul.f32 %v595_v0, %v233_v52  ;;  %v368_v10 = vadd.f32 %v336_v56, %v304_v59  ;;  %v307_v12 = vadd.f32 %v612_v1, %v269_v62  ;;  %v238_v27 = vld [vmem:[%s601_s22 + $0x90] sm:$0xff]  ;;  %v239_v32 = vld [vmem:[%s601_s22 + $0x98] sm:$0xff]  ;;  %v240_v33 = vld [vmem:[%s601_s22 + $0xa0] sm:$0xff] }
  0x1d   : > { %v369_v11 = vadd.f32 %v337_v57, %v305_v60  ;;  %v308_v13 = vadd.f32 %v612_v1, %v270_v63  ;;  %430 = vst [vmem:[%s643_s30 + $0x30] sm:$0xff] %v398_v4  ;;  %v370_v15 = vadd.f32 %v338_v61, %v306_v6  ;;  %v272_v17 = vmul.f32 %v595_v0, %v234_v2  ;;  %v241_v38 = vld [vmem:[%s601_s22 + $0xa8] sm:$0xff]  ;;  %v344_v42 = vld [vmem:[%s607_s25 + $0x80] sm:$0xff]  ;;  %v346_v47 = vld [vmem:[%s607_s25 + $0x90] sm:$0xff] }
  0x1e   : > { %431 = vst [vmem:[%s643_s30 + $0x38] sm:$0xff] %v399_v5  ;;  %v309_v16 = vadd.f32 %v612_v1, %v271_v9  ;;  %v273_v18 = vmul.f32 %v595_v0, %v235_v3  ;;  %v400_v21 = vmax.f32 %v368_v10, 0.0  ;;  %v371_v23 = vadd.f32 %v339_v7, %v307_v12  ;;  %v345_v43 = vld [vmem:[%s607_s25 + $0x88] sm:$0xff]  ;;  %v242_v50 = vld [vmem:[%s601_s22 + $0xb0] sm:$0xff]  ;;  %v243_v51 = vld [vmem:[%s601_s22 + $0xb8] sm:$0xff] }
  0x1f   : > { %v401_v22 = vmax.f32 %v369_v11, 0.0  ;;  %v372_v24 = vadd.f32 %v340_v8, %v308_v13  ;;  %v402_v28 = vmax.f32 %v370_v15, 0.0  ;;  %v310_v30 = vadd.f32 %v612_v1, %v272_v17  ;;  %v347_v55 = vld [vmem:[%s607_s25 + $0x98] sm:$0xff]  ;;  %v348_v56 = vld [vmem:[%s607_s25 + $0xa0] sm:$0xff]  ;;  %v349_v62 = vld [vmem:[%s607_s25 + $0xa8] sm:$0xff] }
  0x20   : > { %v373_v29 = vadd.f32 %v341_v14, %v309_v16  ;;  %v311_v31 = vadd.f32 %v612_v1, %v273_v18  ;;  %432 = vst [vmem:[%s643_s30 + $0x40] sm:$0xff] %v400_v21  ;;  %v403_v34 = vmax.f32 %v371_v23, 0.0  ;;  %v274_v36 = vmul.f32 %v595_v0, %v236_v19  ;;  %v244_v5 = vld [vmem:[%s601_s22 + $0xc0] sm:$0xff]  ;;  %v245_v6 = vld [vmem:[%s601_s22 + $0xc8] sm:$0xff]  ;;  %v350_v11 = vld [vmem:[%s607_s25 + $0xb0] sm:$0xff] }
  0x21   : > { %433 = vst [vmem:[%s643_s30 + $0x48] sm:$0xff] %v401_v22  ;;  %v404_v35 = vmax.f32 %v372_v24, 0.0  ;;  %v275_v37 = vmul.f32 %v595_v0, %v237_v20  ;;  %434 = vst [vmem:[%s643_s30 + $0x50] sm:$0xff] %v402_v28  ;;  %v374_v40 = vadd.f32 %v342_v25, %v310_v30  ;;  %v276_v44 = vmul.f32 %v595_v0, %v238_v27  ;;  %v351_v12 = vld [vmem:[%s607_s25 + $0xb8] sm:$0xff]  ;;  %v246_v13 = vld [vmem:[%s601_s22 + $0xd0] sm:$0xff] }
  0x22   : > { %v405_v39 = vmax.f32 %v373_v29, 0.0  ;;  %v375_v41 = vadd.f32 %v343_v26, %v311_v31  ;;  %435 = vst [vmem:[%s643_s30 + $0x58] sm:$0xff] %v403_v34  ;;  %v312_v45 = vadd.f32 %v612_v1, %v274_v36  ;;  %v277_v48 = vmul.f32 %v595_v0, %v239_v32  ;;  %v247_v18 = vld [vmem:[%s601_s22 + $0xd8] sm:$0xff]  ;;  %v248_v19 = vld [vmem:[%s601_s22 + $0xe0] sm:$0xff]  ;;  %v249_v24 = vld [vmem:[%s601_s22 + $0xe8] sm:$0xff] }
  0x23   : > { %436 = vst [vmem:[%s643_s30 + $0x60] sm:$0xff] %v404_v35  ;;  %v313_v46 = vadd.f32 %v612_v1, %v275_v37  ;;  %v278_v49 = vmul.f32 %v595_v0, %v240_v33  ;;  %v406_v52 = vmax.f32 %v374_v40, 0.0  ;;  %v314_v54 = vadd.f32 %v612_v1, %v276_v44  ;;  %v352_v28 = vld [vmem:[%s607_s25 + $0xc0] sm:$0xff]  ;;  %v353_v29 = vld [vmem:[%s607_s25 + $0xc8] sm:$0xff]  ;;  %v354_v33 = vld [vmem:[%s607_s25 + $0xd0] sm:$0xff] }
  0x24   : > { %437 = vst [vmem:[%s643_s30 + $0x68] sm:$0xff] %v405_v39  ;;  %v407_v53 = vmax.f32 %v375_v41, 0.0  ;;  %v279_v57 = vmul.f32 %v595_v0, %v241_v38  ;;  %v376_v58 = vadd.f32 %v344_v42, %v312_v45  ;;  %v315_v60 = vadd.f32 %v612_v1, %v277_v48  ;;  %v250_v36 = vld [vmem:[%s601_s22 + $0xf0] sm:$0xff]  ;;  %v251_v37 = vld [vmem:[%s601_s22 + $0xf8] sm:$0xff]  ;;  %v356_v42 = vld [vmem:[%s607_s25 + $0xe0] sm:$0xff] }
  0x25   : > { %v377_v59 = vadd.f32 %v345_v43, %v313_v46  ;;  %v316_v61 = vadd.f32 %v612_v1, %v278_v49  ;;  %438 = vst [vmem:[%s643_s30 + $0x70] sm:$0xff] %v406_v52  ;;  %v378_v63 = vadd.f32 %v346_v47, %v314_v54  ;;  %v280_v3 = vmul.f32 %v595_v0, %v242_v50  ;;  %v355_v41 = vld [vmem:[%s607_s25 + $0xd8] sm:$0xff]  ;;  %v357_v48 = vld [vmem:[%s607_s25 + $0xe8] sm:$0xff] }
  0x26   : > { %439 = vst [vmem:[%s643_s30 + $0x78] sm:$0xff] %v407_v53  ;;  %v317_v2 = vadd.f32 %v612_v1, %v279_v57  ;;  %v281_v4 = vmul.f32 %v595_v0, %v243_v51  ;;  %v408_v7 = vmax.f32 %v376_v58, 0.0  ;;  %v379_v9 = vadd.f32 %v347_v55, %v315_v60  ;;  %v358_v57 = vld [vmem:[%s607_s25 + $0xf0] sm:$0xff]  ;;  %v359_v58 = vld [vmem:[%s607_s25 + $0xf8] sm:$0xff] }
  0x27   : > { %v409_v8 = vmax.f32 %v377_v59, 0.0  ;;  %v380_v10 = vadd.f32 %v348_v56, %v316_v61  ;;  %v410_v14 = vmax.f32 %v378_v63, 0.0  ;;  %v318_v16 = vadd.f32 %v612_v1, %v280_v3 }
  0x28   : > { %v381_v15 = vadd.f32 %v349_v62, %v317_v2  ;;  %v319_v17 = vadd.f32 %v612_v1, %v281_v4  ;;  %440 = vst [vmem:[%s643_s30 + $0x80] sm:$0xff] %v408_v7  ;;  %v411_v20 = vmax.f32 %v379_v9, 0.0  ;;  %v282_v22 = vmul.f32 %v595_v0, %v244_v5 }
  0x29   : > { %441 = vst [vmem:[%s643_s30 + $0x88] sm:$0xff] %v409_v8  ;;  %v412_v21 = vmax.f32 %v380_v10, 0.0  ;;  %v283_v23 = vmul.f32 %v595_v0, %v245_v6  ;;  %442 = vst [vmem:[%s643_s30 + $0x90] sm:$0xff] %v410_v14  ;;  %v382_v26 = vadd.f32 %v350_v11, %v318_v16  ;;  %v284_v30 = vmul.f32 %v595_v0, %v246_v13 }
  0x2a   : > { %v413_v25 = vmax.f32 %v381_v15, 0.0  ;;  %v383_v27 = vadd.f32 %v351_v12, %v319_v17  ;;  %443 = vst [vmem:[%s643_s30 + $0x98] sm:$0xff] %v411_v20  ;;  %v320_v31 = vadd.f32 %v612_v1, %v282_v22  ;;  %v285_v34 = vmul.f32 %v595_v0, %v247_v18 }
  0x2b   : > { %444 = vst [vmem:[%s643_s30 + $0xa0] sm:$0xff] %v412_v21  ;;  %v321_v32 = vadd.f32 %v612_v1, %v283_v23  ;;  %v286_v35 = vmul.f32 %v595_v0, %v248_v19  ;;  %v414_v38 = vmax.f32 %v382_v26, 0.0  ;;  %v322_v40 = vadd.f32 %v612_v1, %v284_v30 }
  0x2c   : > { %445 = vst [vmem:[%s643_s30 + $0xa8] sm:$0xff] %v413_v25  ;;  %v415_v39 = vmax.f32 %v383_v27, 0.0  ;;  %v287_v43 = vmul.f32 %v595_v0, %v249_v24  ;;  %v384_v44 = vadd.f32 %v352_v28, %v320_v31  ;;  %v323_v46 = vadd.f32 %v612_v1, %v285_v34 }
  0x2d   : > { %v385_v45 = vadd.f32 %v353_v29, %v321_v32  ;;  %v324_v47 = vadd.f32 %v612_v1, %v286_v35  ;;  %446 = vst [vmem:[%s643_s30 + $0xb0] sm:$0xff] %v414_v38  ;;  %v386_v49 = vadd.f32 %v354_v33, %v322_v40  ;;  %v288_v51 = vmul.f32 %v595_v0, %v250_v36 }
  0x2e   : > { %447 = vst [vmem:[%s643_s30 + $0xb8] sm:$0xff] %v415_v39  ;;  %v325_v50 = vadd.f32 %v612_v1, %v287_v43  ;;  %v289_v52 = vmul.f32 %v595_v0, %v251_v37  ;;  %v416_v53 = vmax.f32 %v384_v44, 0.0  ;;  %v387_v55 = vadd.f32 %v355_v41, %v323_v46 }
  0x2f   : > { %v417_v54 = vmax.f32 %v385_v45, 0.0  ;;  %v388_v56 = vadd.f32 %v356_v42, %v324_v47  ;;  %v418_v59 = vmax.f32 %v386_v49, 0.0  ;;  %v326_v61 = vadd.f32 %v612_v1, %v288_v51 }
  0x30   : > { %v389_v60 = vadd.f32 %v357_v48, %v325_v50  ;;  %v327_v62 = vadd.f32 %v612_v1, %v289_v52  ;;  %448 = vst [vmem:[%s643_s30 + $0xc0] sm:$0xff] %v416_v53  ;;  %v419_v0 = vmax.f32 %v387_v55, 0.0 }
  0x31   : > { %449 = vst [vmem:[%s643_s30 + $0xc8] sm:$0xff] %v417_v54  ;;  %v420_v63 = vmax.f32 %v388_v56, 0.0  ;;  %450 = vst [vmem:[%s643_s30 + $0xd0] sm:$0xff] %v418_v59  ;;  %v390_v3 = vadd.f32 %v358_v57, %v326_v61 }
  0x32   : > { %v421_v2 = vmax.f32 %v389_v60, 0.0  ;;  %v391_v4 = vadd.f32 %v359_v58, %v327_v62  ;;  %451 = vst [vmem:[%s643_s30 + $0xd8] sm:$0xff] %v419_v0 }
  0x33   : > { %452 = vst [vmem:[%s643_s30 + $0xe0] sm:$0xff] %v420_v63  ;;  %v422_v5 = vmax.f32 %v390_v3, 0.0 }
  0x34   : > { %453 = vst [vmem:[%s643_s30 + $0xe8] sm:$0xff] %v421_v2  ;;  %v423_v6 = vmax.f32 %v391_v4, 0.0 }
  0x35   : > { %454 = vst [vmem:[%s643_s30 + $0xf0] sm:$0xff] %v422_v5 }
  0x36   : > { %455 = vst [vmem:[%s643_s30 + $0xf8] sm:$0xff] %v423_v6 }
  0x37 PF: > { %s14_s15 = sadd.s32 1, %s555_s15  }
  0x38   : > { %p11_p4 = scmp.ge.s32.totalorder %s14_s15, 4  }
  0x3a   :  { %13 = sbr.rel (!%p11_p4) target bundleno = 1 (0x1), region = 69 }

// kernel: residual_forward.3
= control target key start
LH: loop header
LB: loop body
LE: loop exit
PB: predicated region body
PF: predicated region fallthrough
CT: control target
= control target key end

     0   :  { %s3496_s18 = smov 0   ;;  %s4542_s0 = inlined_call_operand.vmem [shape: f32[2,16,16,128], index: 0, kind: input, shape index: {}]   ;;  %s4543_s1 = inlined_call_operand.vmem [shape: f32[1,128], index: 1, kind: input, shape index: {}]   ;;  %s4544_s2 = inlined_call_operand.vmem [shape: f32[1,128], index: 2, kind: input, shape index: {}]   ;;  %s4545_s3 = inlined_call_operand.vmem [shape: bf16[1152,128], index: 3, kind: input, shape index: {}]   ;;  %s4546_s4 = inlined_call_operand.vmem [shape: f32[2,16,16,128], index: 4, kind: output, shape index: {0}]   ;;  %s4547_s5 = inlined_call_operand.vmem [shape: f32[2,2,128], index: 5, kind: output, shape index: {1}]  }
   0x1 LB: > { %s2751_s19 = sadd.s32 4294967295, %s3463_s18   ;;  %p2755_p0 = scmp.ge.s32.totalorder %s3463_s18, 1  ;;  %s3463_s18 = sphi %s3496_s18, %s16_s18  }
   0x2   : > { %p190_p1 = scmp.lt.s32.totalorder %s3463_s18, 3 }
   0x4   : > { %p191_p2 = pnand %p2755_p0, %p190_p1 }
   0x5   : > { %v3384_v0 = vld [vmem:[%s4545_s3 + $0x40] sm:$0xff] (!%p191_p2)   ;;  %v3465_v2 = vmov (!%p191_p2), 0.0   ;;  %v3386_v3 = vld [vmem:[%s4545_s3 + $0x48] sm:$0xff] (!%p191_p2)   ;;  %p222_p3 = scmp.lt.s32.totalorder (!%p191_p2), %s2751_s19, 1  ;;  %v3388_v5 = vld [vmem:[%s4545_s3 + $0x50] sm:$0xff] (!%p191_p2)  }
   0x6   : > { %194 = sbr.rel (%p191_p2) target bundleno = 557 (0x22d), region = 36  ;;  %v3385_v1 = vld [vmem:[%s4545_s3] sm:$0xff] (!%p191_p2)   ;;  %380 = vst [vmem:[#allocation2] sm:$0xff] (!%p191_p2), %v3465_v2  ;;  %381 = vst [vmem:[#allocation2 + $0x8] sm:$0xff] (!%p191_p2), %v3465_v2  ;;  %2839 = vmatprep.subr.bf16.mxu0 (!%p191_p2), %v3384_v0  ;;  %3359 = vmatprep.subr.bf16.mxu1 (!%p191_p2), %v3384_v0  ;;  %v3387_v4 = vld [vmem:[%s4545_s3 + $0x8] sm:$0xff] (!%p191_p2)  }
   0x7   : > { %382 = vst [vmem:[#allocation2 + $0x10] sm:$0x3] (!%p191_p2), %v3465_v2  ;;  %384 = vst [vmem:[#allocation2 + $0x198] sm:$0xff] (!%p191_p2), %v3465_v2  ;;  %2840 = vmatpush3.bf16.msra.mxu0 (!%p191_p2), %v3385_v1  ;;  %3367 = vmatpush3.bf16.msra.mxu1 (!%p191_p2), %v3385_v1  ;;  %v3389_v6 = vld [vmem:[%s4545_s3 + $0x10] sm:$0xff] (!%p191_p2)   ;;  %v3390_v7 = vld [vmem:[%s4545_s3 + $0x58] sm:$0xff] (!%p191_p2)  }
   0x8   : > { %385 = vst [vmem:[#allocation2 + $0x1a0] sm:$0xff] (!%p191_p2), %v3465_v2  ;;  %386 = vst [vmem:[#allocation2 + $0x1a8] sm:$0x3] (!%p191_p2), %v3465_v2  ;;  %2841 = vmatprep.subr.bf16.mxu0 (!%p191_p2), %v3386_v3  ;;  %3360 = vmatprep.subr.bf16.mxu1 (!%p191_p2), %v3386_v3  ;;  %v3391_v8 = vld [vmem:[%s4545_s3 + $0x18] sm:$0xff] (!%p191_p2)   ;;  %v3392_v9 = vld [vmem:[%s4545_s3 + $0x60] sm:$0xff] (!%p191_p2)  }
   0x9   : > { %388 = vst [vmem:[#allocation2 + $0x18] sm:$0x1] (!%p191_p2), %v3465_v2  ;;  %389 = vst [vmem:[#allocation2 + $0x30] sm:$0x1] (!%p191_p2), %v3465_v2  ;;  %v3393_v10 = vld [vmem:[%s4545_s3 + $0x20] sm:$0xff] (!%p191_p2)   ;;  %v3394_v11 = vld [vmem:[%s4545_s3 + $0x68] sm:$0xff] (!%p191_p2)  }
   0xa   : > { %390 = vst [vmem:[#allocation2 + $0x48] sm:$0x1] (!%p191_p2), %v3465_v2  ;;  %391 = vst [vmem:[#allocation2 + $0x60] sm:$0x1] (!%p191_p2), %v3465_v2  ;;  %v3596_v14 = vld [vmem:[%s4543_s1] ss:$0 sm:$0xff] (!%p191_p2) }
   0xb   : > { %392 = vst [vmem:[#allocation2 + $0x78] sm:$0x1] (!%p191_p2), %v3465_v2  ;;  %393 = vst [vmem:[#allocation2 + $0x90] sm:$0x1] (!%p191_p2), %v3465_v2  ;;  %2842 = vmatpush3.bf16.msra.mxu0 (!%p191_p2), %v3387_v4  ;;  %3368 = vmatpush3.bf16.msra.mxu1 (!%p191_p2), %v3387_v4  ;;  %v3601_v16 = vld [vmem:[%s4544_s2] ss:$0 sm:$0xff] (!%p191_p2) }
   0xc   : > { %394 = vst [vmem:[#allocation2 + $0xa8] sm:$0x1] (!%p191_p2), %v3465_v2  ;;  %395 = vst [vmem:[#allocation2 + $0xc0] sm:$0x1] (!%p191_p2), %v3465_v2  ;;  %2843 = vmatprep.subr.bf16.mxu0 (!%p191_p2), %v3388_v5  ;;  %3361 = vmatprep.subr.bf16.mxu1 (!%p191_p2), %v3388_v5  ;;  %v3395_v21 = vld [vmem:[%s4545_s3 + $0x28] sm:$0xff] (!%p191_p2)   ;;  %v3396_v22 = vld [vmem:[%s4545_s3 + $0x70] sm:$0xff] (!%p191_p2)  }
   0xd   : > { %396 = vst [vmem:[#allocation2 + $0xd8] sm:$0x1] %v3465_v2  ;;  %397 = vst [vmem:[#allocation2 + $0xf0] sm:$0x1] %v3465_v2  ;;  %s4549_s19 = smov (!%p222_p3, %s2751_s19), 1  ;;  %v487_v12 = vld [vmem:[#allocation2 + $0x1] sm:$0xff] }
   0xe   : > { %398 = vst [vmem:[#allocation2 + $0x108] sm:$0x1] %v3465_v2  ;;  %399 = vst [vmem:[#allocation2 + $0x120] sm:$0x1] %v3465_v2  ;;  %s2837_s11 = sshll.u32 %s4549_s19, 8  ;;  %v488_v13 = vld [vmem:[#allocation2 + $0x9] sm:$0xff] }
   0xf   : > { %400 = vst [vmem:[#allocation2 + $0x138] sm:$0x1] %v3465_v2  ;;  %401 = vst [vmem:[#allocation2 + $0x150] sm:$0x1] %v3465_v2  ;;  %2844 = vmatpush3.bf16.msra.mxu0 %v3389_v6  ;;  %3369 = vmatpush3.bf16.msra.mxu1 %v3389_v6  ;;  %s3588_s20 = scalar_lea.vmem %s4542_s0, %s2837_s11  ;;  %v519_v15 = vpack.c.bf16 %v488_v13, %v487_v12  ;;  %v3397_v26 = vld [vmem:[%s4545_s3 + $0x30] sm:$0xff]   ;;  %v3398_v27 = vld [vmem:[%s4545_s3 + $0x78] sm:$0xff]   ;;  %s4451_s24 = scalar_lea.vmem %s4546_s4, %s2837_s11 }
  0x10   : > { %402 = vst [vmem:[#allocation2 + $0x168] sm:$0x1] %v3465_v2  ;;  %403 = vst [vmem:[#allocation2 + $0x180] sm:$0x1] %v3465_v2  ;;  %2845 = vmatprep.subr.bf16.mxu0 %v3390_v7  ;;  %3362 = vmatprep.subr.bf16.mxu1 %v3390_v7  ;;  %v261_v17 = vld [vmem:[%s3588_s20 + $0xb0] sm:$0xff]  ;;  %v262_v18 = vld [vmem:[%s3588_s20 + $0xb8] sm:$0xff] }
  0x11   : > { %406 = vst [vmem:[#allocation2 + $0x29] sm:$0x1] %v3465_v2  ;;  %407 = vst [vmem:[#allocation2 + $0x41] sm:$0x1] %v3465_v2  ;;  %v299_v19 = vmul.f32 %v3596_v14, %v261_v17  ;;  %v300_v20 = vmul.f32 %v3596_v14, %v262_v18  ;;  %1752 = vmatprep.mubr.bf16.mxu0 %v519_v15  ;;  %v239_v28 = vld [vmem:[%s3588_s20] sm:$0xff]  ;;  %v240_v29 = vld [vmem:[%s3588_s20 + $0x8] sm:$0xff] }
  0x12   : > { %408 = vst [vmem:[#allocation2 + $0x59] sm:$0x1] %v3465_v2  ;;  %409 = vst [vmem:[#allocation2 + $0x71] sm:$0x1] %v3465_v2  ;;  %v3399_v30 = vld [vmem:[%s4545_s3 + $0x38] sm:$0xff]   ;;  %v277_v31 = vmul.f32 %v3596_v14, %v239_v28  ;;  %v278_v32 = vmul.f32 %v3596_v14, %v240_v29  ;;  %v263_v33 = vld [vmem:[%s3588_s20 + $0xc0] sm:$0xff] }
  0x13   : > { %410 = vst [vmem:[#allocation2 + $0x89] sm:$0x1] %v3465_v2  ;;  %411 = vst [vmem:[#allocation2 + $0xa1] sm:$0x1] %v3465_v2  ;;  %2846 = vmatpush3.bf16.msra.mxu0 %v3391_v8  ;;  %3370 = vmatpush3.bf16.msra.mxu1 %v3391_v8  ;;  %v337_v23 = vadd.f32 %v3601_v16, %v299_v19  ;;  %v338_v24 = vadd.f32 %v3601_v16, %v300_v20  ;;  %v264_v34 = vld [vmem:[%s3588_s20 + $0xc8] sm:$0xff]  ;;  %v3400_v38 = vld [vmem:[%s4545_s3 + $0xc0] sm:$0xff]  }
  0x14   : > { %412 = vst [vmem:[#allocation2 + $0xb9] sm:$0x1] %v3465_v2  ;;  %413 = vst [vmem:[#allocation2 + $0xd1] sm:$0x1] %v3465_v2  ;;  %2847 = vmatprep.subr.bf16.mxu0 %v3392_v9  ;;  %3363 = vmatprep.subr.bf16.mxu1 %v3392_v9  ;;  %v301_v36 = vmul.f32 %v3596_v14, %v263_v33  ;;  %v302_v37 = vmul.f32 %v3596_v14, %v264_v34  ;;  %v3401_v41 = vld [vmem:[%s4545_s3 + $0x140] sm:$0xff]   ;;  %v3404_v50 = vld [vmem:[%s4545_s3 + $0xc8] sm:$0xff]  }
  0x15   : > { %414 = vst [vmem:[#allocation2 + $0xe9] sm:$0x1] %v3465_v2  ;;  %415 = vst [vmem:[#allocation2 + $0x101] sm:$0x1] %v3465_v2  ;;  %v531_v25 = vpack.c.bf16 %v338_v24, %v337_v23  ;;  %v315_v39 = vadd.f32 %v3601_v16, %v277_v31  ;;  %v316_v40 = vadd.f32 %v3601_v16, %v278_v32  ;;  %v3402_v46 = vld [vmem:[%s4545_s3 + $0x80] sm:$0xff]   ;;  %v3409_v52 = vld [vmem:[%s4545_s3 + $0x148] sm:$0xff]  }
  0x16   : > { %416 = vst [vmem:[#allocation2 + $0x119] sm:$0x1] %v3465_v2  ;;  %417 = vst [vmem:[#allocation2 + $0x131] sm:$0x1] %v3465_v2  ;;  %v339_v42 = vadd.f32 %v3601_v16, %v301_v36  ;;  %v340_v43 = vadd.f32 %v3601_v16, %v302_v37  ;;  %v3403_v49 = vld [vmem:[%s4545_s3 + $0x100] sm:$0xff]   ;;  %v241_v53 = vld [vmem:[%s3588_s20 + $0x10] sm:$0xff] }
  0x17   : > { %418 = vst [vmem:[#allocation2 + $0x149] sm:$0x1] %v3465_v2  ;;  %419 = vst [vmem:[#allocation2 + $0x161] sm:$0x1] %v3465_v2  ;;  %2848 = vmatpush3.bf16.msra.mxu0 %v3393_v10  ;;  %3371 = vmatpush3.bf16.msra.mxu1 %v3393_v10  ;;  %v3652_v51 = vpack.c.bf16 %v316_v40, %v315_v39  ;;  %v242_v54 = vld [vmem:[%s3588_s20 + $0x18] sm:$0xff]  ;;  %v3405_v55 = vld [vmem:[%s4545_s3 + $0x88] sm:$0xff]   ;;  %v279_v57 = vmul.f32 %v3596_v14, %v241_v53 }
  0x18   : > { %420 = vst [vmem:[#allocation2 + $0x179] sm:$0x1] %v3465_v2  ;;  %421 = vst [vmem:[#allocation2 + $0x191] sm:$0x1] %v3465_v2  ;;  %2849 = vmatprep.subr.bf16.mxu0 %v3394_v11  ;;  %3364 = vmatprep.subr.bf16.mxu1 %v3394_v11  ;;  %v532_v56 = vpack.c.bf16 %v340_v43, %v339_v42  ;;  %v280_v58 = vmul.f32 %v3596_v14, %v242_v54  ;;  %v265_v59 = vld [vmem:[%s3588_s20 + $0xd0] sm:$0xff]  ;;  %v266_v60 = vld [vmem:[%s3588_s20 + $0xd8] sm:$0xff] }
  0x19   : > { %405 = vst [vmem:[#allocation2 + $0x11] sm:$0x1] %v3465_v2  ;;  %387 = vst [vmem:[#allocation2] sm:$0x1] %v3465_v2  ;;  %1848 = vmatprep.mubr.bf16.mxu1 %v531_v25  ;;  %v3406_v61 = vld [vmem:[%s4545_s3 + $0xd0] sm:$0xff]   ;;  %v303_v62 = vmul.f32 %v3596_v14, %v265_v59  ;;  %v304_v63 = vmul.f32 %v3596_v14, %v266_v60  ;;  %v3411_v0 = vld [vmem:[%s4545_s3 + $0x108] sm:$0xff]   ;;  %v317_v1 = vadd.f32 %v3601_v16, %v279_v57 }
  0x1a   : > { %404 = vst [vmem:[#allocation2 + $0x198] sm:$0x1] %v3465_v2  ;;  %422 = vst [vmem:[#allocation2 + $0x1a9] sm:$0x1] %v3465_v2  ;;  %v3407_v9 = vld [vmem:[%s4545_s3 + $0x90] sm:$0xff]   ;;  %v3408_v12 = vld [vmem:[%s4545_s3 + $0xd8] sm:$0xff]  }
  0x1b   : > { %370 = vst [vmem:[#allocation2 + $0x121] sm:$0xff] %v337_v23  ;;  %371 = vst [vmem:[#allocation2 + $0x129] sm:$0xff] %v338_v24  ;;  %2850 = vmatpush3.bf16.msra.mxu0 %v3395_v21  ;;  %3372 = vmatpush3.bf16.msra.mxu1 %v3395_v21  ;;  %v341_v5 = vadd.f32 %v3601_v16, %v303_v62  ;;  %v342_v6 = vadd.f32 %v3601_v16, %v304_v63  ;;  %v243_v15 = vld [vmem:[%s3588_s20 + $0x20] sm:$0xff]  ;;  %v244_v17 = vld [vmem:[%s3588_s20 + $0x28] sm:$0xff]  ;;  %s2760_s11 = sshll.u32 %s4549_s19, 1 }
  0x1c   : > { %2851 = vmatprep.subr.bf16.mxu0 %v3396_v22  ;;  %3365 = vmatprep.subr.bf16.mxu1 %v3396_v22  ;;  %348 = vst [vmem:[#allocation2 + $0x19] sm:$0xff] %v315_v39  ;;  %349 = vst [vmem:[#allocation2 + $0x21] sm:$0xff] %v316_v40  ;;  %v267_v18 = vld [vmem:[%s3588_s20 + $0xe0] sm:$0xff]  ;;  %v281_v20 = vmul.f32 %v3596_v14, %v243_v15  ;;  %v282_v21 = vmul.f32 %v3596_v14, %v244_v17  ;;  %v268_v22 = vld [vmem:[%s3588_s20 + $0xe8] sm:$0xff]  ;;  %s235_s27 = scalar_lea.vmem %s4547_s5, %s2760_s11 }
  0x1d   : > { %372 = vst [vmem:[#allocation2 + $0x139] sm:$0xff] %v339_v42  ;;  %373 = vst [vmem:[#allocation2 + $0x141] sm:$0xff] %v340_v43  ;;  %v533_v19 = vpack.c.bf16 %v342_v6, %v341_v5  ;;  %v305_v23 = vmul.f32 %v3596_v14, %v267_v18  ;;  %v3410_v24 = vld [vmem:[%s4545_s3 + $0x98] sm:$0xff]   ;;  %v306_v25 = vmul.f32 %v3596_v14, %v268_v22  ;;  %v3417_v29 = vld [vmem:[%s4545_s3 + $0x150] sm:$0xff]  }
  0x1e   : > { %350 = vst [vmem:[#allocation2 + $0x31] sm:$0xff] %v317_v1  ;;  %374 = vst [vmem:[#allocation2 + $0x151] sm:$0xff] %v341_v5  ;;  %v3419_v34 = vld [vmem:[%s4545_s3 + $0x110] sm:$0xff]   ;;  %v3413_v39 = vld [vmem:[%s4545_s3 + $0xa0] sm:$0xff]  }
  0x1f   : > { %2852 = vmatpush3.bf16.msra.mxu0 %v3397_v26  ;;  %3373 = vmatpush3.bf16.msra.mxu1 %v3397_v26  ;;  %375 = vst [vmem:[#allocation2 + $0x159] sm:$0xff] %v342_v6  ;;  %v319_v26 = vadd.f32 %v3601_v16, %v281_v20  ;;  %v343_v28 = vadd.f32 %v3601_v16, %v305_v23  ;;  %v3414_v42 = vld [vmem:[%s4545_s3 + $0xe8] sm:$0xff]   ;;  %v3425_v59 = vld [vmem:[%s4545_s3 + $0x118] sm:$0xff]   ;;  %v247_v60 = vld [vmem:[%s3588_s20 + $0x40] sm:$0xff] }
  0x20   : > { %v423_v35 = vld [vmem:[#allocation2] sm:$0xff]  ;;  %2853 = vmatprep.subr.bf16.mxu0 %v3398_v27  ;;  %3366 = vmatprep.subr.bf16.mxu1 %v3398_v27  ;;  %v320_v27 = vadd.f32 %v3601_v16, %v282_v21  ;;  %v344_v31 = vadd.f32 %v3601_v16, %v306_v25  ;;  %v3418_v62 = vld [vmem:[%s4545_s3 + $0xb0] sm:$0xff]   ;;  %v3421_v6 = vld [vmem:[%s4545_s3 + $0xb8] sm:$0xff]  }
  0x21   : > { %v455_v47 = vpack.c.bf16 %v3465_v2, %v423_v35  ;;  %v318_v2 = vadd.f32 %v3601_v16, %v280_v58  ;;  %352 = vst [vmem:[#allocation2 + $0x49] sm:$0xff] %v319_v26  ;;  %376 = vst [vmem:[#allocation2 + $0x169] sm:$0xff] %v343_v28  ;;  %v3426_v17 = vld [vmem:[%s4545_s3 + $0x160] sm:$0xff]  }
  0x22   : > { %v447_v44 = vld [vmem:[#allocation2 + $0x120] sm:$0xff]  ;;  %v448_v45 = vld [vmem:[#allocation2 + $0x128] sm:$0xff]  ;;  %353 = vst [vmem:[#allocation2 + $0x51] sm:$0xff] %v320_v27  ;;  %377 = vst [vmem:[#allocation2 + $0x171] sm:$0xff] %v344_v31  ;;  %v3725_v40 = vpack.c.bf16 %v320_v27, %v319_v26  ;;  %v534_v43 = vpack.c.bf16 %v344_v31, %v343_v28 }
  0x23   : > { %v467_v48 = vpack.c.bf16 %v448_v45, %v447_v44  ;;  %2854 = vmatpush3.bf16.msra.mxu0 %v3399_v30  ;;  %3374 = vmatpush3.bf16.msra.mxu1 %v3399_v30  ;;  %v425_v3 = vld [vmem:[#allocation2 + $0x18] sm:$0xff]  ;;  %v426_v4 = vld [vmem:[#allocation2 + $0x20] sm:$0xff]  ;;  %351 = vst [vmem:[#allocation2 + $0x39] sm:$0xff] %v318_v2  ;;  %v3689_v13 = vpack.c.bf16 %v318_v2, %v317_v1  ;;  %v249_v2 = vld [vmem:[%s3588_s20 + $0x50] sm:$0xff] }
  0x24   : > { %2951 = vmatprep.subr.bf16.mxu1 %v3400_v38  ;;  %3063 = vmatprep.subr.bf16.mxu0 %v3401_v41  ;;  %v449_v7 = vld [vmem:[#allocation2 + $0x138] sm:$0xff]  ;;  %v450_v8 = vld [vmem:[#allocation2 + $0x140] sm:$0xff]  ;;  %v3682_v10 = vpack.c.bf16 %v426_v4, %v425_v3  ;;  %v245_v41 = vld [vmem:[%s3588_s20 + $0x30] sm:$0xff]  ;;  %v287_v5 = vmul.f32 %v3596_v14, %v249_v2 }
  0x25   : > { %v3684_v11 = vpack.c.bf16 %v450_v8, %v449_v7  ;;  %v3412_v30 = vld [vmem:[%s4545_s3 + $0xe0] sm:$0xff]   ;;  %v427_v32 = vld [vmem:[#allocation2 + $0x30] sm:$0xff]  ;;  %v246_v44 = vld [vmem:[%s3588_s20 + $0x38] sm:$0xff]  ;;  %v283_v45 = vmul.f32 %v3596_v14, %v245_v41 }
  0x26   : > { %1753 = vmatmul.mubr.bf16.vlgmr.msra.gmra.mrb[0].mxu0 %v455_v47  ;;  %1849 = vmatmul.mubr.bf16.vlgmr.msra.gmra.mrb[0].mxu1 %v467_v48  ;;  %v451_v35 = vld [vmem:[#allocation2 + $0x150] sm:$0xff]  ;;  %v452_v36 = vld [vmem:[#allocation2 + $0x158] sm:$0xff]  ;;  %v284_v47 = vmul.f32 %v3596_v14, %v246_v44  ;;  %v551_v7 = vld [vmem:[#allocation2 + $0x2] sm:$0xff] }
  0x27   : > { %2952 = vmatpush3.bf16.msra.mxu1 %v3402_v46  ;;  %3064 = vmatpush3.bf16.msra.mxu0 %v3403_v49  ;;  %v3720_v38 = vpack.c.bf16 %v452_v36, %v451_v35  ;;  %v3415_v46 = vld [vmem:[%s4545_s3 + $0xa8] sm:$0xff]   ;;  %v3416_v48 = vld [vmem:[%s4545_s3 + $0xf0] sm:$0xff]   ;;  %v321_v49 = vadd.f32 %v3601_v16, %v283_v45  ;;  %v3420_v3 = vld [vmem:[%s4545_s3 + $0xf8] sm:$0xff]  }
  0x28   : > { %2953 = vmatprep.subr.bf16.mxu1 %v3404_v50  ;;  %1760 = vmatprep.mubr.bf16.mxu0 %v3652_v51  ;;  %v429_v50 = vld [vmem:[#allocation2 + $0x48] sm:$0xff]  ;;  %v322_v54 = vadd.f32 %v3601_v16, %v284_v47  ;;  %v250_v4 = vld [vmem:[%s3588_s20 + $0x58] sm:$0xff]  ;;  %v3422_v18 = vld [vmem:[%s4545_s3 + $0x1c0] sm:$0xff]  }
  0x29   : > { %1856 = vmatprep.mubr.bf16.mxu1 %v532_v56  ;;  %3065 = vmatprep.subr.bf16.mxu0 %v3409_v52  ;;  %v430_v52 = vld [vmem:[#allocation2 + $0x50] sm:$0xff]  ;;  %v453_v53 = vld [vmem:[#allocation2 + $0x168] sm:$0xff]  ;;  %354 = vst [vmem:[#allocation2 + $0x61] sm:$0xff] %v321_v49  ;;  %v3424_v56 = vld [vmem:[%s4545_s3 + $0x158] sm:$0xff]   ;;  %v288_v15 = vmul.f32 %v3596_v14, %v250_v4 }
  0x2a   : > { %v428_v33 = vld [vmem:[#allocation2 + $0x38] sm:$0xff]  ;;  %355 = vst [vmem:[#allocation2 + $0x69] sm:$0xff] %v322_v54  ;;  %v3748_v57 = vpack.c.bf16 %v430_v52, %v429_v50  ;;  %v3760_v63 = vpack.c.bf16 %v322_v54, %v321_v49  ;;  %v552_v8 = vld [vmem:[#allocation2 + $0xa] sm:$0xff]  ;;  %v3428_v23 = vld [vmem:[%s4545_s3 + $0x120] sm:$0xff]  }
  0x2b   : > { %2954 = vmatpush3.bf16.msra.mxu1 %v3405_v55  ;;  %3066 = vmatpush3.bf16.msra.mxu0 %v3411_v0  ;;  %v3718_v37 = vpack.c.bf16 %v428_v33, %v427_v32  ;;  %v454_v55 = vld [vmem:[#allocation2 + $0x170] sm:$0xff]  ;;  %v285_v0 = vmul.f32 %v3596_v14, %v247_v60  ;;  %v326_v21 = vadd.f32 %v3601_v16, %v288_v15  ;;  %v3423_v27 = vld [vmem:[%s4545_s3 + $0x180] sm:$0xff]   ;;  %v3430_v31 = vld [vmem:[%s4545_s3 + $0x168] sm:$0xff]  }
  0x2c   : > { %2955 = vmatprep.subr.bf16.mxu1 %v3406_v61  ;;  %3067 = vmatprep.subr.bf16.mxu0 %v3417_v29  ;;  %v3750_v58 = vpack.c.bf16 %v454_v55, %v453_v53  ;;  %v248_v61 = vld [vmem:[%s3588_s20 + $0x48] sm:$0xff]  ;;  %v583_v26 = vpack.c.bf16 %v552_v8, %v551_v7  ;;  %v254_v41 = vld [vmem:[%s3588_s20 + $0x78] sm:$0xff]  ;;  %v3432_v50 = vld [vmem:[%s4545_s3 + $0x1d0] sm:$0xff]  }
  0x2d   : > { %v286_v1 = vmul.f32 %v3596_v14, %v248_v61  ;;  %359 = vst [vmem:[#allocation2 + $0x99] sm:$0xff] %v326_v21  ;;  %v3427_v32 = vld [vmem:[%s4545_s3 + $0x1c8] sm:$0xff]   ;;  %v255_v52 = vld [vmem:[%s3588_s20 + $0x80] sm:$0xff]  ;;  %v3434_v61 = vld [vmem:[%s4545_s3 + $0x170] sm:$0xff]  }
  0x2e   : > { %1761 = vmatmul.mubr.bf16.gmra.mrb[4].mxu0 %v3682_v10  ;;  %1857 = vmatmul.mubr.bf16.gmra.mrb[4].mxu1 %v3684_v11  ;;  %v3431_v36 = vld [vmem:[%s4545_s3 + $0x128] sm:$0xff]   ;;  %v258_v4 = vld [vmem:[%s3588_s20 + $0x98] sm:$0xff] }
  0x2f   : > { %2956 = vmatpush3.bf16.msra.mxu1 %v3407_v9  ;;  %1768 = vmatprep.mubr.bf16.mxu0 %v3689_v13  ;;  %v323_v9 = vadd.f32 %v3601_v16, %v285_v0  ;;  %v3429_v44 = vld [vmem:[%s4545_s3 + $0x188] sm:$0xff]   ;;  %v3435_v0 = vld [vmem:[%s4545_s3 + $0x130] sm:$0xff]   ;;  %v556_v7 = vld [vmem:[#allocation2 + $0x3a] sm:$0xff] }
  0x30   : > { %2957 = vmatprep.subr.bf16.mxu1 %v3408_v12  ;;  %1864 = vmatprep.mubr.bf16.mxu1 %v533_v19  ;;  %v324_v12 = vadd.f32 %v3601_v16, %v286_v1  ;;  %v325_v19 = vadd.f32 %v3601_v16, %v287_v5  ;;  %v431_v20 = vld [vmem:[#allocation2 + $0x60] sm:$0xff]  ;;  %v256_v55 = vld [vmem:[%s3588_s20 + $0x88] sm:$0xff]  ;;  %v555_v1 = vld [vmem:[#allocation2 + $0x32] sm:$0xff] }
  0x31   : > { %3068 = vmatpush3.bf16.msra.mxu0 %v3419_v34  ;;  %356 = vst [vmem:[#allocation2 + $0x79] sm:$0xff] %v323_v9  ;;  %v432_v22 = vld [vmem:[#allocation2 + $0x68] sm:$0xff]  ;;  %v553_v34 = vld [vmem:[#allocation2 + $0x1a] sm:$0xff]  ;;  %v294_v60 = vmul.f32 %v3596_v14, %v256_v55  ;;  %v3448_v55 = vld [vmem:[%s4545_s3 + $0x1b0] sm:$0xff]  }
  0x32   : > { %3069 = vmatprep.subr.bf16.mxu0 %v3424_v56  ;;  %357 = vst [vmem:[#allocation2 + $0x81] sm:$0xff] %v324_v12  ;;  %358 = vst [vmem:[#allocation2 + $0x91] sm:$0xff] %v325_v19  ;;  %v3792_v25 = vpack.c.bf16 %v432_v22, %v431_v20  ;;  %v3799_v29 = vpack.c.bf16 %v324_v12, %v323_v9  ;;  %v293_v56 = vmul.f32 %v3596_v14, %v255_v52  ;;  %v3436_v12 = vld [vmem:[%s4545_s3 + $0x1d8] sm:$0xff]  }
  0x33   : > { %2958 = vmatpush3.bf16.msra.mxu1 %v3410_v24  ;;  %v251_v24 = vld [vmem:[%s3588_s20 + $0x60] sm:$0xff]  ;;  %v3863_v2 = vadd.f32 %v3601_v16, %v294_v60  ;;  %v296_v9 = vmul.f32 %v3596_v14, %v258_v4  ;;  %v3438_v20 = vld [vmem:[%s4545_s3 + $0x178] sm:$0xff]  }
  0x34   : > { %2959 = vmatprep.subr.bf16.mxu1 %v3412_v30  ;;  %v289_v28 = vmul.f32 %v3596_v14, %v251_v24  ;;  %v3439_v22 = vld [vmem:[%s4545_s3 + $0x138] sm:$0xff]   ;;  %v260_v24 = vld [vmem:[%s3588_s20 + $0xa8] sm:$0xff] }
  0x35   : > { %3070 = vmatpush3.bf16.msra.mxu0 %v3425_v59  ;;  %v3850_v59 = vpack.c.bf16 %v326_v21, %v325_v19  ;;  %365 = vst [vmem:[#allocation2 + $0xe1] sm:$0xff] %v3863_v2  ;;  %v3889_v19 = vpack.c.bf16 %v556_v7, %v555_v1  ;;  %v3451_v1 = vld [vmem:[%s4545_s3 + $0x1b8] sm:$0xff]  }
  0x36   : > { %1769 = vmatmul.mubr.bf16.gmra.mrb[8].mxu0 %v3718_v37  ;;  %1865 = vmatmul.mubr.bf16.gmra.mrb[8].mxu1 %v3720_v38  ;;  %v3809_v33 = vadd.f32 %v3601_v16, %v289_v28  ;;  %v558_v28 = vld [vmem:[#allocation2 + $0x52] sm:$0xff] }
  0x37   : > { %2960 = vmatpush3.bf16.msra.mxu1 %v3413_v39  ;;  %1776 = vmatprep.mubr.bf16.mxu0 %v3725_v40  ;;  %v253_v39 = vld [vmem:[%s3588_s20 + $0x70] sm:$0xff] }
  0x38   : > { %2961 = vmatprep.subr.bf16.mxu1 %v3414_v42  ;;  %1872 = vmatprep.mubr.bf16.mxu1 %v534_v43  ;;  %v433_v42 = vld [vmem:[#allocation2 + $0x78] sm:$0xff]  ;;  %v554_v43 = vld [vmem:[#allocation2 + $0x22] sm:$0xff]  ;;  %360 = vst [vmem:[#allocation2 + $0xa9] sm:$0xff] %v3809_v33  ;;  %v291_v45 = vmul.f32 %v3596_v14, %v253_v39 }
  0x39   : > { %3071 = vmatprep.subr.bf16.mxu0 %v3426_v17  ;;  %v434_v47 = vld [vmem:[#allocation2 + $0x80] sm:$0xff]  ;;  %v3841_v54 = vpack.c.bf16 %v554_v43, %v553_v34  ;;  %v435_v5 = vld [vmem:[#allocation2 + $0x90] sm:$0xff]  ;;  %v3882_v17 = vadd.f32 %v3601_v16, %v296_v9  ;;  %v3443_v43 = vld [vmem:[%s4545_s3 + $0x1e8] sm:$0xff]  }
  0x3a   : > { %3072 = vmatpush3.bf16.msra.mxu0 %v3428_v23  ;;  %v3839_v53 = vpack.c.bf16 %v434_v47, %v433_v42  ;;  %v259_v23 = vld [vmem:[%s3588_s20 + $0xa0] sm:$0xff] }
  0x3b   : > { %2962 = vmatpush3.bf16.msra.mxu1 %v3415_v46  ;;  %3073 = vmatprep.subr.bf16.mxu0 %v3430_v31  ;;  %v292_v46 = vmul.f32 %v3596_v14, %v254_v41  ;;  %367 = vst [vmem:[#allocation2 + $0xf9] sm:$0xff] %v3882_v17  ;;  %v3440_v34 = vld [vmem:[%s4545_s3 + $0x1e0] sm:$0xff]  }
  0x3c   : > { %2963 = vmatprep.subr.bf16.mxu1 %v3416_v48  ;;  %v3830_v48 = vadd.f32 %v3601_v16, %v291_v45  ;;  %v3445_v45 = vld [vmem:[%s4545_s3 + $0x1a8] sm:$0xff]   ;;  %v561_v60 = vld [vmem:[#allocation2 + $0x7a] sm:$0xff] }
  0x3d   : > { %v3833_v49 = vadd.f32 %v3601_v16, %v292_v46 }
  0x3e   : > { %1777 = vmatmul.mubr.bf16.gmra.mrb[12].mxu0 %v3748_v57  ;;  %1873 = vmatmul.mubr.bf16.gmra.mrb[12].mxu1 %v3750_v58  ;;  %362 = vst [vmem:[#allocation2 + $0xc1] sm:$0xff] %v3830_v48 }
  0x3f   : > { %2964 = vmatpush3.bf16.msra.mxu1 %v3418_v62  ;;  %1784 = vmatprep.mubr.bf16.mxu0 %v3760_v63  ;;  %363 = vst [vmem:[#allocation2 + $0xc9] sm:$0xff] %v3833_v49  ;;  %v3857_v62 = vadd.f32 %v3601_v16, %v293_v56  ;;  %v3937_v42 = vpack.c.bf16 %v3833_v49, %v3830_v48  ;;  %v560_v48 = vld [vmem:[#allocation2 + $0x6a] sm:$0xff] }
  0x40   : > { %2965 = vmatprep.subr.bf16.mxu1 %v3420_v3  ;;  %1913 = vmatprep.mubr.bf16.mxu1 %v3682_v10  ;;  %v252_v10 = vld [vmem:[%s3588_s20 + $0x68] sm:$0xff]  ;;  %v257_v3 = vld [vmem:[%s3588_s20 + $0x90] sm:$0xff] }
  0x41   : > { %v290_v30 = vmul.f32 %v3596_v14, %v252_v10  ;;  %3074 = vmatpush3.bf16.msra.mxu0 %v3431_v36  ;;  %364 = vst [vmem:[#allocation2 + $0xd9] sm:$0xff] %v3857_v62  ;;  %v295_v8 = vmul.f32 %v3596_v14, %v257_v3  ;;  %v557_v10 = vld [vmem:[#allocation2 + $0x4a] sm:$0xff]  ;;  %v3442_v36 = vld [vmem:[%s4545_s3 + $0x1a0] sm:$0xff]   ;;  %v270_v3 = vld [vmem:[%s3588_s20 + $0xf8] sm:$0xff] }
  0x42   : > { %3075 = vmatprep.subr.bf16.mxu0 %v3434_v61  ;;  %v3932_v41 = vpack.c.bf16 %v558_v28, %v557_v10  ;;  %v3446_v49 = vld [vmem:[%s4545_s3 + $0x1f0] sm:$0xff]   ;;  %v562_v61 = vld [vmem:[#allocation2 + $0x82] sm:$0xff] }
  0x43   : > { %2966 = vmatpush3.bf16.msra.mxu1 %v3421_v6  ;;  %v3812_v35 = vadd.f32 %v3601_v16, %v290_v30  ;;  %v436_v6 = vld [vmem:[#allocation2 + $0x98] sm:$0xff]  ;;  %v3879_v15 = vadd.f32 %v3601_v16, %v295_v8  ;;  %v298_v30 = vmul.f32 %v3596_v14, %v260_v24  ;;  %v3979_v7 = vpack.c.bf16 %v562_v61, %v561_v60  ;;  %v3454_v60 = vld [vmem:[%s4545_s3 + $0x230] sm:$0xff]  }
  0x44   : > { %3175 = vmatprep.subr.bf16.mxu1 %v3422_v18  ;;  %v3887_v18 = vpack.c.bf16 %v436_v6, %v435_v5  ;;  %v308_v5 = vmul.f32 %v3596_v14, %v270_v3  ;;  %v578_v3 = vld [vmem:[#allocation2 + $0x142] sm:$0xff] }
  0x45   : > { %361 = vst [vmem:[#allocation2 + $0xb1] sm:$0xff] %v3812_v35  ;;  %3076 = vmatpush3.bf16.msra.mxu0 %v3435_v0  ;;  %366 = vst [vmem:[#allocation2 + $0xf1] sm:$0xff] %v3879_v15  ;;  %v3898_v21 = vpack.c.bf16 %v3812_v35, %v3809_v33  ;;  %v3915_v33 = vadd.f32 %v3601_v16, %v298_v30  ;;  %v3924_v35 = vld [vmem:[%s4545_s3 + $0x200] sm:$0xff]   ;;  %v3449_v0 = vld [vmem:[%s4545_s3 + $0x1f8] sm:$0xff]   ;;  %v3983_v8 = vpack.c.bf16 %v3882_v17, %v3879_v15 }
  0x46   : > { %1785 = vmatmul.mubr.bf16.gmra.mrb[16].mxu0 %v3792_v25  ;;  %1914 = vmatmul.mubr.bf16.vlgmr.msra.gmra.mrb[16].mxu1 %v583_v26  ;;  %v297_v26 = vmul.f32 %v3596_v14, %v259_v23  ;;  %v439_v46 = vld [vmem:[#allocation2 + $0xc0] sm:$0xff]  ;;  %v440_v47 = vld [vmem:[#allocation2 + $0xc8] sm:$0xff] }
  0x47   : > { %3176 = vmatpush3.bf16.msra.mxu1 %v3423_v27  ;;  %1792 = vmatprep.mubr.bf16.mxu0 %v3799_v29  ;;  %v437_v27 = vld [vmem:[#allocation2 + $0xa8] sm:$0xff]  ;;  %369 = vst [vmem:[#allocation2 + $0x111] sm:$0xff] %v3915_v33 }
  0x48   : > { %1921 = vmatprep.mubr.bf16.mxu1 %v3718_v37  ;;  %3177 = vmatprep.subr.bf16.mxu1 %v3427_v32  ;;  %v3433_v37 = vld [vmem:[%s4545_s3 + $0x190] sm:$0xff]   ;;  %v3910_v32 = vadd.f32 %v3601_v16, %v297_v26  ;;  %v441_v56 = vld [vmem:[#allocation2 + $0xd8] sm:$0xff] }
  0x49   : > { %3077 = vmatprep.subr.bf16.mxu0 %v3438_v20 }
  0x4a   : > { %3078 = vmatpush3.bf16.msra.mxu0 %v3439_v22  ;;  %368 = vst [vmem:[#allocation2 + $0x109] sm:$0xff] %v3910_v32 }
  0x4b   : > { %3178 = vmatpush3.bf16.msra.mxu1 %v3429_v44  ;;  %3311 = vmatprep.subr.bf16.mxu0 %v3924_v35  ;;  %v559_v44 = vld [vmem:[#allocation2 + $0x62] sm:$0xff] }
  0x4c   : > { %3179 = vmatprep.subr.bf16.mxu1 %v3432_v50  ;;  %v438_v31 = vld [vmem:[#allocation2 + $0xb0] sm:$0xff]  ;;  %v3952_v50 = vpack.c.bf16 %v440_v47, %v439_v46  ;;  %v3954_v52 = vpack.c.bf16 %v560_v48, %v559_v44  ;;  %v444_v22 = vld [vmem:[#allocation2 + $0xf8] sm:$0xff]  ;;  %v638_v46 = vld [vmem:[#allocation2 + $0x128] sm:$0xff] }
  0x4d   : > { %v3930_v39 = vpack.c.bf16 %v438_v31, %v437_v27  ;;  %v443_v20 = vld [vmem:[#allocation2 + $0xf0] sm:$0xff]  ;;  %v567_v31 = vld [vmem:[#allocation2 + $0xc2] sm:$0xff] }
  0x4e   : > { %1793 = vmatmul.mubr.bf16.gmra.mrb[20].mxu0 %v3839_v53  ;;  %1922 = vmatmul.mubr.bf16.gmra.mrb[20].mxu1 %v3841_v54  ;;  %v3991_v15 = vpack.c.bf16 %v444_v22, %v443_v20  ;;  %v565_v23 = vld [vmem:[#allocation2 + $0xaa] sm:$0xff]  ;;  %v566_v27 = vld [vmem:[#allocation2 + $0xb2] sm:$0xff]  ;;  %v3452_v47 = vld [vmem:[%s4545_s3 + $0x220] sm:$0xff]  }
  0x4f   : > { %1800 = vmatprep.mubr.bf16.mxu0 %v3850_v59  ;;  %1929 = vmatprep.mubr.bf16.mxu1 %v3748_v57  ;;  %v3437_v57 = vld [vmem:[%s4545_s3 + $0x198] sm:$0xff]   ;;  %v4005_v28 = vpack.c.bf16 %v566_v27, %v565_v23 }
  0x50   : > { %3180 = vmatpush3.bf16.msra.mxu1 %v3433_v37  ;;  %v3958_v37 = vpack.c.bf16 %v3863_v2, %v3857_v62  ;;  %v442_v62 = vld [vmem:[#allocation2 + $0xe0] sm:$0xff]  ;;  %v269_v2 = vld [vmem:[%s3588_s20 + $0xf0] sm:$0xff]  ;;  %v809_v27 = vld [vmem:[#allocation2 + $0x38] sm:$0xff] }
  0x51   : > { %3181 = vmatprep.subr.bf16.mxu1 %v3436_v12  ;;  %v307_v4 = vmul.f32 %v3596_v14, %v269_v2  ;;  %v3977_v6 = vpack.c.bf16 %v442_v62, %v441_v56  ;;  %v346_v12 = vadd.f32 %v3601_v16, %v308_v5  ;;  %v563_v14 = vld [vmem:[#allocation2 + $0x92] sm:$0xff]  ;;  %v445_v24 = vld [vmem:[#allocation2 + $0x108] sm:$0xff]  ;;  %v577_v2 = vld [vmem:[#allocation2 + $0x13a] sm:$0xff] }
  0x52   : > { %v446_v26 = vld [vmem:[#allocation2 + $0x110] sm:$0xff]  ;;  %v580_v5 = vld [vmem:[#allocation2 + $0x15a] sm:$0xff] }
  0x53   : > { %v345_v9 = vadd.f32 %v3601_v16, %v307_v4  ;;  %379 = vst [vmem:[#allocation2 + $0x189] sm:$0xff] %v346_v12  ;;  %v3997_v16 = vpack.c.bf16 %v3915_v33, %v3910_v32  ;;  %v4003_v10 = vpack.c.bf16 %v446_v26, %v445_v24  ;;  %v568_v32 = vld [vmem:[#allocation2 + $0xca] sm:$0xff]  ;;  %v574_v56 = vld [vmem:[#allocation2 + $0x112] sm:$0xff] }
  0x54   : > { %3182 = vmatpush3.bf16.msra.mxu1 %v3437_v57  ;;  %v564_v57 = vld [vmem:[#allocation2 + $0x9a] sm:$0xff]  ;;  %v4013_v33 = vpack.c.bf16 %v568_v32, %v567_v31  ;;  %v576_v62 = vld [vmem:[#allocation2 + $0x12a] sm:$0xff]  ;;  %v579_v4 = vld [vmem:[#allocation2 + $0x152] sm:$0xff] }
  0x55   : > { %3183 = vmatprep.subr.bf16.mxu1 %v3440_v34  ;;  %378 = vst [vmem:[#allocation2 + $0x181] sm:$0xff] %v345_v9  ;;  %v3993_v17 = vpack.c.bf16 %v564_v57, %v563_v14  ;;  %v4007_v30 = vpack.c.bf16 %v346_v12, %v345_v9  ;;  %v3444_v34 = vld [vmem:[%s4545_s3 + $0x208] sm:$0xff]   ;;  %v4073_v14 = vpack.c.bf16 %v580_v5, %v579_v4  ;;  %v872_v20 = vld [vmem:[#allocation2 + $0x31] sm:$0xff]  ;;  %v873_v22 = vld [vmem:[#allocation2 + $0x39] sm:$0xff] }
  0x56   : > { %1801 = vmatmul.mubr.bf16.gmra.mrb[24].mxu0 %v3887_v18  ;;  %1930 = vmatmul.mubr.bf16.gmra.mrb[24].mxu1 %v3889_v19  ;;  %v581_v57 = vld [vmem:[#allocation2 + $0x16a] sm:$0xff]  ;;  %v904_v24 = vpack.c.bf16 %v873_v22, %v872_v20 }
  0x57   : > { %1808 = vmatprep.mubr.bf16.mxu0 %v3898_v21  ;;  %1937 = vmatprep.mubr.bf16.mxu1 %v3792_v25  ;;  %v808_v26 = vld [vmem:[#allocation2 + $0x30] sm:$0xff] }
  0x58   : > { %3184 = vmatpush3.bf16.msra.mxu1 %v3442_v36  ;;  %v569_v36 = vld [vmem:[#allocation2 + $0xda] sm:$0xff]  ;;  %v874_v31 = vld [vmem:[#allocation2 + $0x49] sm:$0xff]  ;;  %v875_v32 = vld [vmem:[#allocation2 + $0x51] sm:$0xff] }
  0x59   : > { %3185 = vmatprep.subr.bf16.mxu1 %v3443_v43  ;;  %v570_v43 = vld [vmem:[#allocation2 + $0xe2] sm:$0xff] }
  0x5a   : > { %v4026_v44 = vpack.c.bf16 %v570_v43, %v569_v36  ;;  %v905_v36 = vpack.c.bf16 %v875_v32, %v874_v31  ;;  %v810_v43 = vld [vmem:[#allocation2 + $0x48] sm:$0xff] }
  0x5c   : > { %3186 = vmatpush3.bf16.msra.mxu1 %v3445_v45  ;;  %v637_v45 = vld [vmem:[#allocation2 + $0x120] sm:$0xff]  ;;  %v646_v12 = vld [vmem:[#allocation2 + $0x188] sm:$0xff] }
  0x5d   : > { %3187 = vmatprep.subr.bf16.mxu1 %v3446_v49  ;;  %v4040_v49 = vpack.c.bf16 %v638_v46, %v637_v45  ;;  %v645_v9 = vld [vmem:[#allocation2 + $0x180] sm:$0xff] }
  0x5e   : > { %1809 = vmatmul.mubr.bf16.gmra.mrb[28].mxu0 %v3930_v39  ;;  %1938 = vmatmul.mubr.bf16.gmra.mrb[28].mxu1 %v3932_v41  ;;  %v704_v46 = vld [vmem:[#allocation2 + $0x141] sm:$0xff] }
  0x5f   : > { %1816 = vmatprep.mubr.bf16.mxu0 %v3937_v42  ;;  %1945 = vmatprep.mubr.bf16.mxu1 %v3839_v53 }
  0x60   : > { %3188 = vmatpush3.bf16.msra.mxu1 %v3448_v55  ;;  %v573_v55 = vld [vmem:[#allocation2 + $0x10a] sm:$0xff] }
  0x61   : > { %3189 = vmatprep.subr.bf16.mxu1 %v3449_v0  ;;  %v4052_v61 = vpack.c.bf16 %v574_v56, %v573_v55  ;;  %v575_v0 = vld [vmem:[#allocation2 + $0x122] sm:$0xff] }
  0x62   : > { %v773_v55 = vld [vmem:[#allocation2 + $0x182] sm:$0xff] }
  0x64   : > { %3190 = vmatpush3.bf16.msra.mxu1 %v3451_v1  ;;  %v4061_v1 = vpack.c.bf16 %v576_v62, %v575_v0 }
  0x66   : > { %1817 = vmatmul.mubr.bf16.gmra.mrb[32].mxu0 %v3952_v50  ;;  %1946 = vmatmul.mubr.bf16.gmra.mrb[32].mxu1 %v3954_v52 }
  0x67   : > { %1824 = vmatprep.mubr.bf16.mxu0 %v3958_v37  ;;  %1953 = vmatprep.mubr.bf16.mxu1 %v3887_v18 }
  0x6e   : > { %1825 = vmatmul.mubr.bf16.gmra.mrb[36].mxu0 %v3977_v6  ;;  %1954 = vmatmul.mubr.bf16.gmra.mrb[36].mxu1 %v3979_v7 }
  0x6f   : > { %1832 = vmatprep.mubr.bf16.mxu0 %v3983_v8  ;;  %1961 = vmatprep.mubr.bf16.mxu1 %v3930_v39 }
  0x76   : > { %1833 = vmatmul.mubr.bf16.gmra.mrb[40].mxu0 %v3991_v15  ;;  %1962 = vmatmul.mubr.bf16.gmra.mrb[40].mxu1 %v3993_v17 }
  0x77   : > { %1840 = vmatprep.mubr.bf16.mxu0 %v3997_v16  ;;  %1969 = vmatprep.mubr.bf16.mxu1 %v3952_v50 }
  0x7e   : > { %1841 = vmatmul.mubr.bf16.gmra.mrb[44].mxu0 %v4003_v10  ;;  %1970 = vmatmul.mubr.bf16.gmra.mrb[44].mxu1 %v4005_v28 }
  0x7f   : > { %1977 = vmatprep.mubr.bf16.mxu1 %v3977_v6  ;;  %2074 = vmatprep.mubr.bf16.mxu0 %v3841_v54  ;;  %v3447_v54 = vld [vmem:[%s4545_s3 + $0x210] sm:$0xff]  }
  0x86   : > { %1978 = vmatmul.mubr.bf16.gmra.mrb[48].mxu1 %v4013_v33  ;;  %2075 = vmatmul.mubr.bf16.vlgmr.msra.gmra.mrb[48].mxu0 %v3652_v51  ;;  %v3450_v51 = vld [vmem:[%s4545_s3 + $0x218] sm:$0xff]  }
  0x87   : > { %3312 = vmatpush3.bf16.msra.mxu0 %v3924_v35  ;;  %1985 = vmatprep.mubr.bf16.mxu1 %v3991_v15  ;;  %v572_v35 = vld [vmem:[#allocation2 + $0xfa] sm:$0xff] }
  0x88   : > { %2082 = vmatprep.mubr.bf16.mxu0 %v3889_v19  ;;  %3313 = vmatprep.subr.bf16.mxu0 %v3444_v34  ;;  %v571_v19 = vld [vmem:[#allocation2 + $0xf2] sm:$0xff] }
  0x89   : > { %v4038_v48 = vpack.c.bf16 %v572_v35, %v571_v19  ;;  %v701_v19 = vld [vmem:[#allocation2 + $0x121] sm:$0xff]  ;;  %v702_v35 = vld [vmem:[#allocation2 + $0x129] sm:$0xff] }
  0x8a   : > { %v4095_v45 = vpack.c.bf16 %v702_v35, %v701_v19 }
  0x8b   : > { %3314 = vmatpush3.bf16.msra.mxu0 %v3444_v34  ;;  %v840_v34 = vpack.c.bf16 %v809_v27, %v808_v26 }
  0x8c   : > { %3315 = vmatprep.subr.bf16.mxu0 %v3447_v54 }
  0x8e   : > { %1986 = vmatmul.mubr.bf16.gmra.mrb[52].mxu1 %v4026_v44  ;;  %2083 = vmatmul.mubr.bf16.gmra.mrb[52].mxu0 %v3689_v13  ;;  %v3453_v13 = vld [vmem:[%s4545_s3 + $0x228] sm:$0xff]  }
  0x8f   : > { %1993 = vmatprep.mubr.bf16.mxu1 %v4003_v10  ;;  %2090 = vmatprep.mubr.bf16.mxu0 %v3932_v41 }
  0x90   : > { %3316 = vmatpush3.bf16.msra.mxu0 %v3447_v54  ;;  %v811_v54 = vld [vmem:[#allocation2 + $0x50] sm:$0xff] }
  0x91   : > { %3317 = vmatprep.subr.bf16.mxu0 %v3450_v51 }
  0x94   : > { %3318 = vmatpush3.bf16.msra.mxu0 %v3450_v51  ;;  %v841_v51 = vpack.c.bf16 %v811_v54, %v810_v43 }
  0x95   : > { %3319 = vmatprep.subr.bf16.mxu0 %v3452_v47 }
  0x96   : > { %1994 = vmatmul.mubr.bf16.gmra.mrb[56].mxu1 %v4038_v48  ;;  %2091 = vmatmul.mubr.bf16.gmra.mrb[56].mxu0 %v3725_v40  ;;  %v3455_v40 = vld [vmem:[%s4545_s3 + $0x238] sm:$0xff]  }
  0x97   : > { %2001 = vmatprep.mubr.bf16.mxu1 %v4040_v49  ;;  %2098 = vmatprep.mubr.bf16.mxu0 %v3954_v52 }
  0x98   : > { %3320 = vmatpush3.bf16.msra.mxu0 %v3452_v47 }
  0x99   : > { %3321 = vmatprep.subr.bf16.mxu0 %v3453_v13 }
  0x9c   : > { %3322 = vmatpush3.bf16.msra.mxu0 %v3453_v13 }
  0x9d   : > { %3323 = vmatprep.subr.bf16.mxu0 %v3454_v60 }
  0x9e   : > { %2002 = vmatmul.mubr.bf16.gmra.mrb[60].mxu1 %v4052_v61  ;;  %2099 = vmatmul.mubr.bf16.gmra.mrb[60].mxu0 %v3760_v63 }
  0x9f   : > { %2009 = vmatprep.mubr.bf16.mxu1 %v3684_v11  ;;  %2106 = vmatprep.mubr.bf16.mxu0 %v3979_v7  ;;  %v4067_v11 = vpack.c.bf16 %v578_v3, %v577_v2 }
  0xa0   : > { %3324 = vmatpush3.bf16.msra.mxu0 %v3454_v60 }
  0xa1   : > { %3325 = vmatprep.subr.bf16.mxu0 %v3455_v40 }
  0xa4   : > { %3326 = vmatpush3.bf16.msra.mxu0 %v3455_v40 }
  0xa6   : > { %2010 = vmatmul.mubr.bf16.gmra.mrb[64].mxu1 %v4061_v1  ;;  %2107 = vmatmul.mubr.bf16.gmra.mrb[64].mxu0 %v3799_v29 }
  0xa7   : > { %2017 = vmatprep.mubr.bf16.mxu1 %v3720_v38  ;;  %2114 = vmatprep.mubr.bf16.mxu0 %v3993_v17  ;;  %v4075_v38 = vpack.c.bf16 %v646_v12, %v645_v9 }
  0xae   : > { %2018 = vmatmul.mubr.bf16.gmra.mrb[68].mxu1 %v4067_v11  ;;  %2115 = vmatmul.mubr.bf16.gmra.mrb[68].mxu0 %v3850_v59 }
  0xaf   : > { %2025 = vmatprep.mubr.bf16.mxu1 %v3750_v58  ;;  %2122 = vmatprep.mubr.bf16.mxu0 %v4005_v28  ;;  %v582_v58 = vld [vmem:[#allocation2 + $0x172] sm:$0xff] }
  0xb0   : > { %v4081_v23 = vpack.c.bf16 %v582_v58, %v581_v57 }
  0xb6   : > { %2026 = vmatmul.mubr.bf16.gmra.mrb[72].mxu1 %v4073_v14  ;;  %2123 = vmatmul.mubr.bf16.gmra.mrb[72].mxu0 %v3898_v21 }
  0xb7   : > { %2033 = vmatprep.mubr.bf16.mxu1 %v4075_v38  ;;  %2130 = vmatprep.mubr.bf16.mxu0 %v4013_v33 }
  0xbe   : > { %2034 = vmatmul.mubr.bf16.gmra.mrb[76].mxu1 %v4081_v23  ;;  %2131 = vmatmul.mubr.bf16.gmra.mrb[76].mxu0 %v3937_v42 }
  0xbf   : > { %2138 = vmatprep.mubr.bf16.mxu0 %v4026_v44  ;;  %2235 = vmatprep.mubr.bf16.mxu1 %v904_v24 }
  0xc6   : > { %2139 = vmatmul.mubr.bf16.gmra.mrb[80].mxu0 %v3958_v37  ;;  %2236 = vmatmul.mubr.bf16.vlgmr.msra.gmra.mrb[80].mxu1 %v840_v34 }
  0xc7   : > { %2146 = vmatprep.mubr.bf16.mxu0 %v4038_v48  ;;  %2243 = vmatprep.mubr.bf16.mxu1 %v905_v36 }
  0xce   : > { %2147 = vmatmul.mubr.bf16.gmra.mrb[84].mxu0 %v3983_v8  ;;  %2244 = vmatmul.mubr.bf16.gmra.mrb[84].mxu1 %v841_v51 }
  0xcf   : > { %2154 = vmatprep.mubr.bf16.mxu0 %v4052_v61  ;;  %2251 = vmatprep.mubr.bf16.mxu1 %v3760_v63  ;;  %v703_v63 = vld [vmem:[#allocation2 + $0x139] sm:$0xff] }
  0xd0   : > { %v4101_v47 = vpack.c.bf16 %v704_v46, %v703_v63 }
  0xd6   : > { %2155 = vmatmul.mubr.bf16.gmra.mrb[88].mxu0 %v3997_v16  ;;  %2252 = vmatmul.mubr.bf16.gmra.mrb[88].mxu1 %v3792_v25  ;;  %v705_v25 = vld [vmem:[#allocation2 + $0x151] sm:$0xff] }
  0xd7   : > { %2162 = vmatprep.mubr.bf16.mxu0 %v4061_v1  ;;  %2259 = vmatprep.mubr.bf16.mxu1 %v3799_v29  ;;  %v706_v29 = vld [vmem:[#allocation2 + $0x159] sm:$0xff] }
  0xd8   : > { %v4107_v13 = vpack.c.bf16 %v706_v29, %v705_v25 }
  0xde   : > { %2163 = vmatmul.mubr.bf16.gmra.mrb[92].mxu0 %v4095_v45  ;;  %2260 = vmatmul.mubr.bf16.gmra.mrb[92].mxu1 %v3839_v53  ;;  %v707_v53 = vld [vmem:[#allocation2 + $0x169] sm:$0xff] }
  0xdf   : > { %2170 = vmatprep.mubr.bf16.mxu0 %v4067_v11  ;;  %2267 = vmatprep.mubr.bf16.mxu1 %v3850_v59  ;;  %v708_v59 = vld [vmem:[#allocation2 + $0x171] sm:$0xff] }
  0xe0   : > { %v4113_v56 = vpack.c.bf16 %v708_v59, %v707_v53 }
  0xe6   : > { %2171 = vmatmul.mubr.bf16.gmra.mrb[96].mxu0 %v4101_v47  ;;  %2268 = vmatmul.mubr.bf16.gmra.mrb[96].mxu1 %v3887_v18  ;;  %v774_v18 = vld [vmem:[#allocation2 + $0x18a] sm:$0xff] }
  0xe7   : > { %2178 = vmatprep.mubr.bf16.mxu0 %v4073_v14  ;;  %2275 = vmatprep.mubr.bf16.mxu1 %v3898_v21  ;;  %v4115_v60 = vpack.c.bf16 %v774_v18, %v773_v55  ;;  %v936_v21 = vld [vmem:[#allocation2 + $0x32] sm:$0xff] }
  0xee   : > { %2179 = vmatmul.mubr.bf16.gmra.mrb[100].mxu0 %v4107_v13  ;;  %2276 = vmatmul.mubr.bf16.gmra.mrb[100].mxu1 %v3930_v39  ;;  %v937_v39 = vld [vmem:[#allocation2 + $0x3a] sm:$0xff] }
  0xef   : > { %2186 = vmatprep.mubr.bf16.mxu0 %v4081_v23  ;;  %2283 = vmatprep.mubr.bf16.mxu1 %v3937_v42  ;;  %v968_v9 = vpack.c.bf16 %v937_v39, %v936_v21 }
  0xf6   : > { %2187 = vmatmul.mubr.bf16.gmra.mrb[104].mxu0 %v4113_v56  ;;  %2284 = vmatmul.mubr.bf16.gmra.mrb[104].mxu1 %v3952_v50 }
  0xf7   : > { %2194 = vmatprep.mubr.bf16.mxu0 %v4115_v60  ;;  %2291 = vmatprep.mubr.bf16.mxu1 %v3958_v37 }
  0xf9   : > { %v2855_v40 = vpop.f32.mrb[0].mxu0  ;;  %v2927_v42 = vpop.f32.mrb[0].mxu1 }
  0xfa   : > { %v2856_v0 = vpop.f32.mrb[1].mxu0  ;;  %v2928_v62 = vpop.f32.mrb[1].mxu1 }
  0xfb   : > { %v4121_v2 = vadd.f32 %v2856_v0, %v2855_v40  ;;  %v4123_v3 = vadd.f32 %v2928_v62, %v2927_v42  ;;  %v2858_v4 = vpop.f32.mrb[2].mxu0  ;;  %v2930_v5 = vpop.f32.mrb[2].mxu1 }
  0xfc   : > { %v2859_v12 = vpop.f32.mrb[3].mxu0  ;;  %v2931_v57 = vpop.f32.mrb[3].mxu1 }
  0xfd   : > { %v4125_v50 = vadd.f32 %v2859_v12, %v2858_v4  ;;  %v4127_v58 = vadd.f32 %v2931_v57, %v2930_v5 }
  0xfe   : > { %2195 = vmatmul.mubr.bf16.gmra.mrb[108].mxu0 %v4007_v30  ;;  %2292 = vmatmul.mubr.bf16.gmra.mrb[108].mxu1 %v3977_v6 }
  0xff   : > { %2299 = vmatprep.mubr.bf16.mxu1 %v3983_v8  ;;  %3327 = vmatprep.mubr.bf16.mxu0 %v968_v9 }
 0x101   : > { %v2861_v37 = vpop.f32.mrb[4].mxu0  ;;  %v2933_v20 = vpop.f32.mrb[4].mxu1 }
 0x102   : > { %v2862_v22 = vpop.f32.mrb[5].mxu0  ;;  %v2934_v24 = vpop.f32.mrb[5].mxu1 }
 0x103   : > { %v4132_v26 = vadd.f32 %v2862_v22, %v2861_v37  ;;  %v4134_v27 = vadd.f32 %v2934_v24, %v2933_v20  ;;  %v2864_v31 = vpop.f32.mrb[6].mxu0  ;;  %v2936_v32 = vpop.f32.mrb[6].mxu1 }
 0x104   : > { %v2865_v34 = vpop.f32.mrb[7].mxu0  ;;  %v2937_v36 = vpop.f32.mrb[7].mxu1 }
 0x105   : > { %v4136_v43 = vadd.f32 %v2865_v34, %v2864_v31  ;;  %v4138_v54 = vadd.f32 %v2937_v36, %v2936_v32  ;;  %v832_v32 = vld [vmem:[#allocation2 + $0x150] sm:$0xff]  ;;  %v833_v34 = vld [vmem:[#allocation2 + $0x158] sm:$0xff] }
 0x106   : > { %2300 = vmatmul.mubr.bf16.gmra.mrb[112].mxu1 %v3991_v15  ;;  %3328 = vmatmul.mubr.bf16.vlgmr.msra.gmra.mrb[112].mxu0 %v3932_v41 }
 0x107   : > { %2307 = vmatprep.mubr.bf16.mxu1 %v3997_v16  ;;  %3331 = vmatprep.mubr.bf16.mxu0 %v3954_v52 }
 0x109   : > { %v2867_v6 = vpop.f32.mrb[8].mxu0  ;;  %v2939_v8 = vpop.f32.mrb[8].mxu1 }
 0x10a   : > { %v2868_v51 = vpop.f32.mrb[9].mxu0  ;;  %v2940_v19 = vpop.f32.mrb[9].mxu1 }
 0x10b   : > { %v4144_v35 = vadd.f32 %v2868_v51, %v2867_v6  ;;  %v4146_v63 = vadd.f32 %v2940_v19, %v2939_v8  ;;  %v2870_v46 = vpop.f32.mrb[10].mxu0  ;;  %v2942_v25 = vpop.f32.mrb[10].mxu1  ;;  %v852_v51 = vpack.c.bf16 %v833_v34, %v832_v32 }
 0x10c   : > { %v2871_v29 = vpop.f32.mrb[11].mxu0  ;;  %v2943_v53 = vpop.f32.mrb[11].mxu1 }
 0x10d   : > { %v4148_v59 = vadd.f32 %v2871_v29, %v2870_v46  ;;  %v4150_v15 = vadd.f32 %v2943_v53, %v2942_v25 }
 0x10e   : > { %2308 = vmatmul.mubr.bf16.gmra.mrb[116].mxu1 %v4003_v10  ;;  %3332 = vmatmul.mubr.bf16.gmra.mrb[116].mxu0 %v3979_v7  ;;  %v830_v7 = vld [vmem:[#allocation2 + $0x138] sm:$0xff] }
 0x10f   : > { %2315 = vmatprep.mubr.bf16.mxu1 %v4095_v45  ;;  %3335 = vmatprep.mubr.bf16.mxu0 %v3993_v17  ;;  %v831_v17 = vld [vmem:[#allocation2 + $0x140] sm:$0xff] }
 0x110   : > { %v851_v12 = vpack.c.bf16 %v831_v17, %v830_v7 }
 0x111   : > { %v2873_v41 = vpop.f32.mrb[12].mxu0  ;;  %v2945_v52 = vpop.f32.mrb[12].mxu1 }
 0x112   : > { %v2874_v16 = vpop.f32.mrb[13].mxu0  ;;  %v2946_v55 = vpop.f32.mrb[13].mxu1 }
 0x113   : > { %v4156_v18 = vadd.f32 %v2874_v16, %v2873_v41  ;;  %v4158_v21 = vadd.f32 %v2946_v55, %v2945_v52  ;;  %v2876_v39 = vpop.f32.mrb[14].mxu0  ;;  %v2948_v40 = vpop.f32.mrb[14].mxu1  ;;  %v834_v52 = vld [vmem:[#allocation2 + $0x168] sm:$0xff]  ;;  %v835_v16 = vld [vmem:[#allocation2 + $0x170] sm:$0xff] }
 0x114   : > { %v2877_v42 = vpop.f32.mrb[15].mxu0  ;;  %v2949_v0 = vpop.f32.mrb[15].mxu1 }
 0x115   : > { %v4160_v62 = vadd.f32 %v2877_v42, %v2876_v39  ;;  %v4162_v10 = vadd.f32 %v2949_v0, %v2948_v40  ;;  %v853_v42 = vpack.c.bf16 %v835_v16, %v834_v52 }
 0x116   : > { %2316 = vmatmul.mubr.bf16.gmra.mrb[120].mxu1 %v4040_v49  ;;  %3336 = vmatmul.mubr.bf16.gmra.mrb[120].mxu0 %v4005_v28 }
 0x117   : > { %2323 = vmatprep.mubr.bf16.mxu1 %v4101_v47  ;;  %3339 = vmatprep.mubr.bf16.mxu0 %v4013_v33 }
 0x119   : > { %v2879_v45 = vpop.f32.mrb[16].mxu0  ;;  %v2967_v4 = vpop.f32.mrb[16].mxu1 }
 0x11a   : > { %v2880_v5 = vpop.f32.mrb[17].mxu0  ;;  %v2968_v9 = vpop.f32.mrb[17].mxu1 }
 0x11b   : > { %v4168_v57 = vadd.f32 %v2880_v5, %v2879_v45  ;;  %v2969_v37 = vadd.f32 %v2968_v9, %v2967_v4  ;;  %v2882_v20 = vpop.f32.mrb[18].mxu0  ;;  %v2970_v22 = vpop.f32.mrb[18].mxu1  ;;  %v902_v9 = vld [vmem:[#allocation2 + $0x199] sm:$0xff] }
 0x11c   : > { %v2883_v24 = vpop.f32.mrb[19].mxu0  ;;  %v2971_v49 = vpop.f32.mrb[19].mxu1 }
 0x11d   : > { %v4171_v28 = vadd.f32 %v2969_v37, %v4121_v2  ;;  %v4173_v47 = vadd.f32 %v2883_v24, %v2882_v20  ;;  %v2972_v33 = vadd.f32 %v2971_v49, %v2970_v22 }
 0x11e   : > { %2324 = vmatmul.mubr.bf16.gmra.mrb[124].mxu1 %v851_v12  ;;  %3340 = vmatmul.mubr.bf16.gmra.mrb[124].mxu0 %v4026_v44  ;;  %v903_v12 = vld [vmem:[#allocation2 + $0x1a1] sm:$0xff] }
 0x11f   : > { %v4177_v31 = vadd.f32 %v2972_v33, %v4125_v50  ;;  %2331 = vmatprep.mubr.bf16.mxu1 %v4107_v13  ;;  %3343 = vmatprep.mubr.bf16.mxu0 %v4038_v48  ;;  %v919_v34 = vpack.c.bf16 %v903_v12, %v902_v9 }
 0x121   : > { %v2885_v36 = vpop.f32.mrb[20].mxu0  ;;  %v2973_v6 = vpop.f32.mrb[20].mxu1 }
 0x122   : > { %v2886_v8 = vpop.f32.mrb[21].mxu0  ;;  %v2974_v2 = vpop.f32.mrb[21].mxu1 }
 0x123   : > { %v4181_v19 = vadd.f32 %v2886_v8, %v2885_v36  ;;  %v2975_v46 = vadd.f32 %v2974_v2, %v2973_v6  ;;  %v2888_v25 = vpop.f32.mrb[22].mxu0  ;;  %v2976_v29 = vpop.f32.mrb[22].mxu1  ;;  %v838_v8 = vld [vmem:[#allocation2 + $0x198] sm:$0xff] }
 0x124   : > { %v2889_v44 = vpop.f32.mrb[23].mxu0  ;;  %v2977_v53 = vpop.f32.mrb[23].mxu1  ;;  %v966_v2 = vld [vmem:[#allocation2 + $0x19a] sm:$0xff] }
 0x125   : > { %v4184_v50 = vadd.f32 %v2975_v46, %v4132_v26  ;;  %v4186_v13 = vadd.f32 %v2889_v44, %v2888_v25  ;;  %v2978_v48 = vadd.f32 %v2977_v53, %v2976_v29  ;;  %v3456_v44 = vld [vmem:[#allocation2 + $0x8] sm:$0xff] }
 0x126   : > { %2332 = vmatmul.mubr.bf16.gmra.mrb[128].mxu1 %v852_v51  ;;  %3344 = vmatmul.mubr.bf16.gmra.mrb[128].mxu0 %v4052_v61  ;;  %v967_v51 = vld [vmem:[#allocation2 + $0x1a2] sm:$0xff]  ;;  %v855_v53 = vpack.c.bf16 %v3456_v44, %v838_v8 }
 0x127   : > { %v4190_v41 = vadd.f32 %v2978_v48, %v4136_v43  ;;  %2339 = vmatprep.mubr.bf16.mxu1 %v4113_v56  ;;  %3347 = vmatprep.mubr.bf16.mxu0 %v4061_v1  ;;  %v983_v48 = vpack.c.bf16 %v967_v51, %v966_v2 }
 0x129   : > { %v2891_v55 = vpop.f32.mrb[24].mxu0  ;;  %v2979_v39 = vpop.f32.mrb[24].mxu1 }
 0x12a   : > { %v2892_v40 = vpop.f32.mrb[25].mxu0  ;;  %v2980_v26 = vpop.f32.mrb[25].mxu1 }
 0x12b   : > { %v4194_v0 = vadd.f32 %v2892_v40, %v2891_v55  ;;  %v2981_v7 = vadd.f32 %v2980_v26, %v2979_v39  ;;  %v2894_v17 = vpop.f32.mrb[26].mxu0  ;;  %v2982_v45 = vpop.f32.mrb[26].mxu1 }
 0x12c   : > { %v2895_v61 = vpop.f32.mrb[27].mxu0  ;;  %v2983_v4 = vpop.f32.mrb[27].mxu1 }
 0x12d   : > { %v4197_v43 = vadd.f32 %v2981_v7, %v4144_v35  ;;  %v4199_v56 = vadd.f32 %v2895_v61, %v2894_v17  ;;  %v2984_v1 = vadd.f32 %v2983_v4, %v2982_v45 }
 0x12e   : > { %2340 = vmatmul.mubr.bf16.gmra.mrb[132].mxu1 %v853_v42  ;;  %3348 = vmatmul.mubr.bf16.gmra.mrb[132].mxu0 %v4067_v11 }
 0x12f   : > { %v4203_v5 = vadd.f32 %v2984_v1, %v4148_v59  ;;  %2347 = vmatprep.mubr.bf16.mxu1 %v4007_v30  ;;  %3351 = vmatprep.mubr.bf16.mxu0 %v4073_v14 }
 0x131   : > { %v2897_v37 = vpop.f32.mrb[28].mxu0  ;;  %v2985_v20 = vpop.f32.mrb[28].mxu1 }
 0x132   : > { %v2898_v22 = vpop.f32.mrb[29].mxu0  ;;  %v2986_v35 = vpop.f32.mrb[29].mxu1 }
 0x133   : > { %v4207_v24 = vadd.f32 %v2898_v22, %v2897_v37  ;;  %v2987_v49 = vadd.f32 %v2986_v35, %v2985_v20  ;;  %v2900_v33 = vpop.f32.mrb[30].mxu0  ;;  %v2988_v32 = vpop.f32.mrb[30].mxu1 }
 0x134   : > { %v2901_v11 = vpop.f32.mrb[31].mxu0  ;;  %v2989_v36 = vpop.f32.mrb[31].mxu1 }
 0x135   : > { %v4210_v59 = vadd.f32 %v2987_v49, %v4156_v18  ;;  %v4212_v30 = vadd.f32 %v2901_v11, %v2900_v33  ;;  %v2990_v14 = vadd.f32 %v2989_v36, %v2988_v32 }
 0x136   : > { %2348 = vmatmul.mubr.bf16.gmra.mrb[136].mxu1 %v4075_v38  ;;  %3352 = vmatmul.mubr.bf16.gmra.mrb[136].mxu0 %v4081_v23 }
 0x137   : > { %v4217_v6 = vadd.f32 %v2990_v14, %v4160_v62  ;;  %2355 = vmatprep.mubr.bf16.mxu1 %v919_v34  ;;  %3355 = vmatprep.mubr.bf16.mxu0 %v4115_v60 }
 0x139   : > { %v2903_v46 = vpop.f32.mrb[32].mxu0  ;;  %v2991_v25 = vpop.f32.mrb[32].mxu1 }
 0x13a   : > { %v2904_v18 = vpop.f32.mrb[33].mxu0  ;;  %v2992_v29 = vpop.f32.mrb[33].mxu1 }
 0x13b   : > { %v4220_v52 = vadd.f32 %v2904_v18, %v2903_v46  ;;  %v2993_v38 = vadd.f32 %v2992_v29, %v2991_v25  ;;  %v2906_v23 = vpop.f32.mrb[34].mxu0  ;;  %v2994_v16 = vpop.f32.mrb[34].mxu1 }
 0x13c   : > { %v2907_v62 = vpop.f32.mrb[35].mxu0  ;;  %v2995_v55 = vpop.f32.mrb[35].mxu1 }
 0x13d   : > { %v4223_v39 = vadd.f32 %v2993_v38, %v4168_v57  ;;  %v2908_v60 = vadd.f32 %v2907_v62, %v2906_v23  ;;  %v2996_v40 = vadd.f32 %v2995_v55, %v2994_v16 }
 0x13e   : > { %2356 = vmatmul.mubr.bf16.gmra.mrb[140].mxu1 %v855_v53  ;;  %3356 = vmatmul.mubr.bf16.gmra.mrb[140].mxu0 %v983_v48 }
 0x13f   : > { %v4226_v26 = vadd.f32 %v2996_v40, %v4173_v47 }
 0x141   : > { %v2909_v42 = vpop.f32.mrb[36].mxu0  ;;  %v2997_v7 = vpop.f32.mrb[36].mxu1 }
 0x142   : > { %v2910_v17 = vpop.f32.mrb[37].mxu0  ;;  %v2998_v45 = vpop.f32.mrb[37].mxu1 }
 0x143   : > { %v4228_v61 = vadd.f32 %v2910_v17, %v2909_v42  ;;  %v2999_v4 = vadd.f32 %v2998_v45, %v2997_v7  ;;  %v2912_v1 = vpop.f32.mrb[38].mxu0  ;;  %v3000_v9 = vpop.f32.mrb[38].mxu1 }
 0x144   : > { %v2913_v12 = vpop.f32.mrb[39].mxu0  ;;  %v3001_v37 = vpop.f32.mrb[39].mxu1 }
 0x145   : > { %v4231_v57 = vadd.f32 %v2999_v4, %v4181_v19  ;;  %v2914_v20 = vadd.f32 %v2913_v12, %v2912_v1  ;;  %v3002_v22 = vadd.f32 %v3001_v37, %v3000_v9 }
 0x147   : > { %v4234_v35 = vadd.f32 %v3002_v22, %v4186_v13 }
 0x149   : > { %v2915_v47 = vpop.f32.mrb[40].mxu0  ;;  %v3003_v49 = vpop.f32.mrb[40].mxu1 }
 0x14a   : > { %v2916_v33 = vpop.f32.mrb[41].mxu0  ;;  %v3004_v32 = vpop.f32.mrb[41].mxu1 }
 0x14b   : > { %v4236_v34 = vadd.f32 %v2916_v33, %v2915_v47  ;;  %v3005_v11 = vadd.f32 %v3004_v32, %v3003_v49  ;;  %v2918_v36 = vpop.f32.mrb[42].mxu0  ;;  %v3006_v14 = vpop.f32.mrb[42].mxu1 }
 0x14c   : > { %v2919_v8 = vpop.f32.mrb[43].mxu0  ;;  %v3007_v2 = vpop.f32.mrb[43].mxu1 }
 0x14d   : > { %v4239_v51 = vadd.f32 %v3005_v11, %v4194_v0  ;;  %v4241_v19 = vadd.f32 %v2919_v8, %v2918_v36  ;;  %v3008_v46 = vadd.f32 %v3007_v2, %v3006_v14 }
 0x14f   : > { %v4244_v13 = vadd.f32 %v3008_v46, %v4199_v56 }
 0x151   : > { %v2921_v25 = vpop.f32.mrb[44].mxu0  ;;  %v3009_v18 = vpop.f32.mrb[44].mxu1 }
 0x152   : > { %v2922_v29 = vpop.f32.mrb[45].mxu0  ;;  %v3010_v44 = vpop.f32.mrb[45].mxu1 }
 0x153   : > { %v4246_v53 = vadd.f32 %v2922_v29, %v2921_v25  ;;  %v3011_v48 = vadd.f32 %v3010_v44, %v3009_v18  ;;  %v2924_v38 = vpop.f32.mrb[46].mxu0  ;;  %v3012_v23 = vpop.f32.mrb[46].mxu1 }
 0x154   : > { %v2925_v16 = vpop.f32.mrb[47].mxu0  ;;  %v3013_v62 = vpop.f32.mrb[47].mxu1 }
 0x155   : > { %v4249_v0 = vadd.f32 %v3011_v48, %v4207_v24  ;;  %v4251_v55 = vadd.f32 %v2925_v16, %v2924_v38  ;;  %v3014_v40 = vadd.f32 %v3013_v62, %v3012_v23 }
 0x157   : > { %v4254_v56 = vadd.f32 %v3014_v40, %v4212_v30 }
 0x159   : > { %v3015_v42 = vpop.f32.mrb[48].mxu1  ;;  %v3079_v7 = vpop.f32.mrb[48].mxu0 }
 0x15a   : > { %v3016_v17 = vpop.f32.mrb[49].mxu1  ;;  %v3080_v45 = vpop.f32.mrb[49].mxu0 }
 0x15b   : > { %v3017_v4 = vadd.f32 %v3016_v17, %v3015_v42  ;;  %v3081_v1 = vadd.f32 %v3080_v45, %v3079_v7  ;;  %v3018_v9 = vpop.f32.mrb[50].mxu1  ;;  %v3082_v12 = vpop.f32.mrb[50].mxu0 }
 0x15c   : > { %v3019_v37 = vpop.f32.mrb[51].mxu1  ;;  %v3083_v22 = vpop.f32.mrb[51].mxu0 }
 0x15d   : > { %v4257_v47 = vadd.f32 %v3017_v4, %v4220_v52  ;;  %v4260_v24 = vadd.f32 %v3081_v1, %v4171_v28  ;;  %v3020_v49 = vadd.f32 %v3019_v37, %v3018_v9  ;;  %v3084_v33 = vadd.f32 %v3083_v22, %v3082_v12 }
 0x15f   : > { %v4262_v30 = vadd.f32 %v3020_v49, %v2908_v60  ;;  %v4265_v32 = vadd.f32 %v3084_v33, %v4177_v31 }
 0x161   : > { %v3021_v11 = vpop.f32.mrb[52].mxu1  ;;  %v3085_v36 = vpop.f32.mrb[52].mxu0 }
 0x162   : > { %v3022_v14 = vpop.f32.mrb[53].mxu1  ;;  %v3086_v8 = vpop.f32.mrb[53].mxu0 }
 0x163   : > { %v3023_v2 = vadd.f32 %v3022_v14, %v3021_v11  ;;  %v3087_v46 = vadd.f32 %v3086_v8, %v3085_v36  ;;  %v3024_v25 = vpop.f32.mrb[54].mxu1  ;;  %v3088_v18 = vpop.f32.mrb[54].mxu0 }
 0x164   : > { %v3025_v52 = vpop.f32.mrb[55].mxu1  ;;  %v3089_v29 = vpop.f32.mrb[55].mxu0 }
 0x165   : > { %v4268_v28 = vadd.f32 %v3023_v2, %v4228_v61  ;;  %v4271_v44 = vadd.f32 %v3087_v46, %v4184_v50  ;;  %v3026_v60 = vadd.f32 %v3025_v52, %v3024_v25  ;;  %v3090_v48 = vadd.f32 %v3089_v29, %v3088_v18 }
 0x167   : > { %v4273_v31 = vadd.f32 %v3026_v60, %v2914_v20  ;;  %v4276_v38 = vadd.f32 %v3090_v48, %v4190_v41 }
 0x169   : > { %v3027_v23 = vpop.f32.mrb[56].mxu1  ;;  %v3091_v16 = vpop.f32.mrb[56].mxu0 }
 0x16a   : > { %v3028_v62 = vpop.f32.mrb[57].mxu1  ;;  %v3092_v40 = vpop.f32.mrb[57].mxu0 }
 0x16b   : > { %v3029_v42 = vadd.f32 %v3028_v62, %v3027_v23  ;;  %v3093_v7 = vadd.f32 %v3092_v40, %v3091_v16  ;;  %v3030_v17 = vpop.f32.mrb[58].mxu1  ;;  %v3094_v45 = vpop.f32.mrb[58].mxu0 }
 0x16c   : > { %v3031_v61 = vpop.f32.mrb[59].mxu1  ;;  %v3095_v4 = vpop.f32.mrb[59].mxu0 }
 0x16d   : > { %v4279_v50 = vadd.f32 %v3029_v42, %v4236_v34  ;;  %v4282_v1 = vadd.f32 %v3093_v7, %v4197_v43  ;;  %v3032_v20 = vadd.f32 %v3031_v61, %v3030_v17  ;;  %v3096_v9 = vadd.f32 %v3095_v4, %v3094_v45 }
 0x16f   : > { %v4285_v41 = vadd.f32 %v3032_v20, %v4241_v19  ;;  %v4288_v12 = vadd.f32 %v3096_v9, %v4203_v5 }
 0x171   : > { %v3033_v37 = vpop.f32.mrb[60].mxu1  ;;  %v3097_v22 = vpop.f32.mrb[60].mxu0 }
 0x172   : > { %v3034_v49 = vpop.f32.mrb[61].mxu1  ;;  %v3098_v33 = vpop.f32.mrb[61].mxu0 }
 0x173   : > { %v3035_v11 = vadd.f32 %v3034_v49, %v3033_v37  ;;  %v3099_v36 = vadd.f32 %v3098_v33, %v3097_v22  ;;  %v3036_v14 = vpop.f32.mrb[62].mxu1  ;;  %v3100_v34 = vpop.f32.mrb[62].mxu0 }
 0x174   : > { %v3037_v8 = vpop.f32.mrb[63].mxu1  ;;  %v3101_v2 = vpop.f32.mrb[63].mxu0 }
 0x175   : > { %v4291_v43 = vadd.f32 %v3035_v11, %v4246_v53  ;;  %v4294_v46 = vadd.f32 %v3099_v36, %v4210_v59  ;;  %v3038_v19 = vadd.f32 %v3037_v8, %v3036_v14  ;;  %v3102_v25 = vadd.f32 %v3101_v2, %v3100_v34 }
 0x177   : > { %v4297_v5 = vadd.f32 %v3038_v19, %v4251_v55  ;;  %v4300_v18 = vadd.f32 %v3102_v25, %v4217_v6 }
 0x179   : > { %v3039_v52 = vpop.f32.mrb[64].mxu1  ;;  %v3103_v29 = vpop.f32.mrb[64].mxu0 }
 0x17a   : > { %v3040_v60 = vpop.f32.mrb[65].mxu1  ;;  %v3104_v48 = vpop.f32.mrb[65].mxu0 }
 0x17b   : > { %v3041_v23 = vadd.f32 %v3040_v60, %v3039_v52  ;;  %v3105_v16 = vadd.f32 %v3104_v48, %v3103_v29  ;;  %v3042_v62 = vpop.f32.mrb[66].mxu1  ;;  %v3106_v53 = vpop.f32.mrb[66].mxu0 }
 0x17c   : > { %v3043_v40 = vpop.f32.mrb[67].mxu1  ;;  %v3107_v42 = vpop.f32.mrb[67].mxu0 }
 0x17d   : > { %v4303_v59 = vadd.f32 %v3041_v23, %v4123_v3  ;;  %v4306_v7 = vadd.f32 %v3105_v16, %v4223_v39  ;;  %v3044_v55 = vadd.f32 %v3043_v40, %v3042_v62  ;;  %v3108_v17 = vadd.f32 %v3107_v42, %v3106_v53 }
 0x17f   : > { %v4309_v6 = vadd.f32 %v3044_v55, %v4127_v58  ;;  %v4312_v45 = vadd.f32 %v3108_v17, %v4226_v26 }
 0x181   : > { %v3045_v61 = vpop.f32.mrb[68].mxu1  ;;  %v3109_v4 = vpop.f32.mrb[68].mxu0 }
 0x182   : > { %v3046_v20 = vpop.f32.mrb[69].mxu1  ;;  %v3110_v9 = vpop.f32.mrb[69].mxu0 }
 0x183   : > { %v3047_v37 = vadd.f32 %v3046_v20, %v3045_v61  ;;  %v3111_v22 = vadd.f32 %v3110_v9, %v3109_v4  ;;  %v3048_v49 = vpop.f32.mrb[70].mxu1  ;;  %v3112_v3 = vpop.f32.mrb[70].mxu0 }
 0x184   : > { %v3049_v33 = vpop.f32.mrb[71].mxu1  ;;  %v3113_v11 = vpop.f32.mrb[71].mxu0 }
 0x185   : > { %v4315_v39 = vadd.f32 %v3047_v37, %v4134_v27  ;;  %v4318_v36 = vadd.f32 %v3111_v22, %v4231_v57  ;;  %v3050_v58 = vadd.f32 %v3049_v33, %v3048_v49  ;;  %v3114_v14 = vadd.f32 %v3113_v11, %v3112_v3 }
 0x187   : > { %v4321_v26 = vadd.f32 %v3050_v58, %v4138_v54  ;;  %v4324_v34 = vadd.f32 %v3114_v14, %v4234_v35 }
 0x189   : > { %v3051_v8 = vpop.f32.mrb[72].mxu1  ;;  %v3115_v2 = vpop.f32.mrb[72].mxu0 }
 0x18a   : > { %v3052_v19 = vpop.f32.mrb[73].mxu1  ;;  %v3116_v25 = vpop.f32.mrb[73].mxu0 }
 0x18b   : > { %v3053_v52 = vadd.f32 %v3052_v19, %v3051_v8  ;;  %v3117_v29 = vadd.f32 %v3116_v25, %v3115_v2  ;;  %v3054_v60 = vpop.f32.mrb[74].mxu1  ;;  %v3118_v27 = vpop.f32.mrb[74].mxu0 }
 0x18c   : > { %v3055_v48 = vpop.f32.mrb[75].mxu1  ;;  %v3119_v23 = vpop.f32.mrb[75].mxu0 }
 0x18d   : > { %v4327_v57 = vadd.f32 %v3053_v52, %v4146_v63  ;;  %v4330_v16 = vadd.f32 %v3117_v29, %v4239_v51  ;;  %v3056_v54 = vadd.f32 %v3055_v48, %v3054_v60  ;;  %v3120_v62 = vadd.f32 %v3119_v23, %v3118_v27 }
 0x18f   : > { %v4333_v35 = vadd.f32 %v3056_v54, %v4150_v15  ;;  %v4336_v53 = vadd.f32 %v3120_v62, %v4244_v13 }
 0x191   : > { %v3057_v40 = vpop.f32.mrb[76].mxu1  ;;  %v3121_v42 = vpop.f32.mrb[76].mxu0 }
 0x192   : > { %v3058_v55 = vpop.f32.mrb[77].mxu1  ;;  %v3122_v17 = vpop.f32.mrb[77].mxu0 }
 0x193   : > { %v3059_v61 = vadd.f32 %v3058_v55, %v3057_v40  ;;  %v3123_v4 = vadd.f32 %v3122_v17, %v3121_v42  ;;  %v3060_v20 = vpop.f32.mrb[78].mxu1  ;;  %v3124_v63 = vpop.f32.mrb[78].mxu0 }
 0x194   : > { %v3061_v9 = vpop.f32.mrb[79].mxu1  ;;  %v3125_v37 = vpop.f32.mrb[79].mxu0 }
 0x195   : > { %v4339_v51 = vadd.f32 %v3059_v61, %v4158_v21  ;;  %v4342_v22 = vadd.f32 %v3123_v4, %v4249_v0  ;;  %v3062_v15 = vadd.f32 %v3061_v9, %v3060_v20  ;;  %v3126_v49 = vadd.f32 %v3125_v37, %v3124_v63 }
 0x197   : > { %v4345_v13 = vadd.f32 %v3062_v15, %v4162_v10  ;;  %v4348_v3 = vadd.f32 %v3126_v49, %v4254_v56 }
 0x199   : > { %v3127_v33 = vpop.f32.mrb[80].mxu0  ;;  %v3191_v11 = vpop.f32.mrb[80].mxu1 }
 0x19a   : > { %v3128_v58 = vpop.f32.mrb[81].mxu0  ;;  %v3192_v14 = vpop.f32.mrb[81].mxu1 }
 0x19b   : > { %v3129_v8 = vadd.f32 %v3128_v58, %v3127_v33  ;;  %v3193_v2 = vadd.f32 %v3192_v14, %v3191_v11  ;;  %v3130_v19 = vpop.f32.mrb[82].mxu0  ;;  %v3194_v21 = vpop.f32.mrb[82].mxu1 }
 0x19c   : > { %v3131_v25 = vpop.f32.mrb[83].mxu0  ;;  %v3195_v52 = vpop.f32.mrb[83].mxu1 }
 0x19d   : > { %v4351_v0 = vadd.f32 %v3129_v8, %v4257_v47  ;;  %v3132_v29 = vadd.f32 %v3131_v25, %v3130_v19  ;;  %v3196_v60 = vadd.f32 %v3195_v52, %v3194_v21  ;;  %v4354_v10 = vadd.f32 %v3193_v2, %v4260_v24 }
 0x19f   : > { %v4357_v56 = vadd.f32 %v3132_v29, %v4262_v30  ;;  %v4360_v27 = vadd.f32 %v3196_v60, %v4265_v32 }
 0x1a1   : > { %v3133_v48 = vpop.f32.mrb[84].mxu0  ;;  %v3197_v23 = vpop.f32.mrb[84].mxu1 }
 0x1a2   : > { %v3134_v54 = vpop.f32.mrb[85].mxu0  ;;  %v3198_v62 = vpop.f32.mrb[85].mxu1 }
 0x1a3   : > { %v3135_v40 = vadd.f32 %v3134_v54, %v3133_v48  ;;  %v3199_v42 = vadd.f32 %v3198_v62, %v3197_v23  ;;  %v3136_v55 = vpop.f32.mrb[86].mxu0  ;;  %v3200_v47 = vpop.f32.mrb[86].mxu1 }
 0x1a4   : > { %v3137_v17 = vpop.f32.mrb[87].mxu0  ;;  %v3201_v61 = vpop.f32.mrb[87].mxu1 }
 0x1a5   : > { %v4363_v4 = vadd.f32 %v3135_v40, %v4268_v28  ;;  %v3138_v24 = vadd.f32 %v3137_v17, %v3136_v55  ;;  %v3202_v20 = vadd.f32 %v3201_v61, %v3200_v47  ;;  %v4366_v30 = vadd.f32 %v3199_v42, %v4271_v44 }
 0x1a7   : > { %v4369_v32 = vadd.f32 %v3138_v24, %v4273_v31  ;;  %v4372_v63 = vadd.f32 %v3202_v20, %v4276_v38 }
 0x1a9   : > { %v3139_v9 = vpop.f32.mrb[88].mxu0  ;;  %v3203_v37 = vpop.f32.mrb[88].mxu1 }
 0x1aa   : > { %v3140_v15 = vpop.f32.mrb[89].mxu0  ;;  %v3204_v49 = vpop.f32.mrb[89].mxu1 }
 0x1ab   : > { %v3141_v33 = vadd.f32 %v3140_v15, %v3139_v9  ;;  %v3205_v11 = vadd.f32 %v3204_v49, %v3203_v37  ;;  %v3142_v58 = vpop.f32.mrb[90].mxu0  ;;  %v3206_v28 = vpop.f32.mrb[90].mxu1 }
 0x1ac   : > { %v3143_v14 = vpop.f32.mrb[91].mxu0  ;;  %v3207_v8 = vpop.f32.mrb[91].mxu1 }
 0x1ad   : > { %v4375_v2 = vadd.f32 %v3141_v33, %v4279_v50  ;;  %v3144_v44 = vadd.f32 %v3143_v14, %v3142_v58  ;;  %v3208_v19 = vadd.f32 %v3207_v8, %v3206_v28  ;;  %v4378_v31 = vadd.f32 %v3205_v11, %v4282_v1 }
 0x1af   : > { %v4381_v38 = vadd.f32 %v3144_v44, %v4285_v41  ;;  %v4384_v21 = vadd.f32 %v3208_v19, %v4288_v12 }
 0x1b1   : > { %v3145_v25 = vpop.f32.mrb[92].mxu0  ;;  %v3209_v52 = vpop.f32.mrb[92].mxu1 }
 0x1b2   : > { %v3146_v29 = vpop.f32.mrb[93].mxu0  ;;  %v3210_v60 = vpop.f32.mrb[93].mxu1 }
 0x1b3   : > { %v3147_v48 = vadd.f32 %v3146_v29, %v3145_v25  ;;  %v3211_v23 = vadd.f32 %v3210_v60, %v3209_v52  ;;  %v3148_v54 = vpop.f32.mrb[94].mxu0  ;;  %v3212_v50 = vpop.f32.mrb[94].mxu1 }
 0x1b4   : > { %v3149_v62 = vpop.f32.mrb[95].mxu0  ;;  %v3213_v40 = vpop.f32.mrb[95].mxu1 }
 0x1b5   : > { %v4387_v42 = vadd.f32 %v3147_v48, %v4291_v43  ;;  %v3150_v1 = vadd.f32 %v3149_v62, %v3148_v54  ;;  %v3214_v55 = vadd.f32 %v3213_v40, %v3212_v50  ;;  %v4390_v41 = vadd.f32 %v3211_v23, %v4294_v46 }
 0x1b7   : > { %v4393_v12 = vadd.f32 %v3150_v1, %v4297_v5  ;;  %v4396_v47 = vadd.f32 %v3214_v55, %v4300_v18 }
 0x1b9   : > { %v3151_v17 = vpop.f32.mrb[96].mxu0  ;;  %v3215_v61 = vpop.f32.mrb[96].mxu1 }
 0x1ba   : > { %v3152_v24 = vpop.f32.mrb[97].mxu0  ;;  %v3216_v20 = vpop.f32.mrb[97].mxu1 }
 0x1bb   : > { %v3153_v9 = vadd.f32 %v3152_v24, %v3151_v17  ;;  %v3217_v37 = vadd.f32 %v3216_v20, %v3215_v61  ;;  %v3154_v15 = vpop.f32.mrb[98].mxu0  ;;  %v3218_v43 = vpop.f32.mrb[98].mxu1 }
 0x1bc   : > { %v3155_v49 = vpop.f32.mrb[99].mxu0  ;;  %v3219_v33 = vpop.f32.mrb[99].mxu1 }
 0x1bd   : > { %v4399_v11 = vadd.f32 %v3153_v9, %v4303_v59  ;;  %v3156_v46 = vadd.f32 %v3155_v49, %v3154_v15  ;;  %v3220_v58 = vadd.f32 %v3219_v33, %v3218_v43  ;;  %v4402_v5 = vadd.f32 %v3217_v37, %v4306_v7 }
 0x1bf   : > { %v4405_v18 = vadd.f32 %v3156_v46, %v4309_v6  ;;  %v4408_v28 = vadd.f32 %v3220_v58, %v4312_v45 }
 0x1c1   : > { %v3157_v14 = vpop.f32.mrb[100].mxu0  ;;  %v3221_v8 = vpop.f32.mrb[100].mxu1 }
 0x1c2   : > { %v3158_v44 = vpop.f32.mrb[101].mxu0  ;;  %v3222_v19 = vpop.f32.mrb[101].mxu1 }
 0x1c3   : > { %v3159_v25 = vadd.f32 %v3158_v44, %v3157_v14  ;;  %v3223_v52 = vadd.f32 %v3222_v19, %v3221_v8  ;;  %v3160_v29 = vpop.f32.mrb[102].mxu0  ;;  %v3224_v59 = vpop.f32.mrb[102].mxu1 }
 0x1c4   : > { %v3161_v60 = vpop.f32.mrb[103].mxu0  ;;  %v3225_v48 = vpop.f32.mrb[103].mxu1 }
 0x1c5   : > { %v4411_v23 = vadd.f32 %v3159_v25, %v4315_v39  ;;  %v3162_v7 = vadd.f32 %v3161_v60, %v3160_v29  ;;  %v3226_v54 = vadd.f32 %v3225_v48, %v3224_v59  ;;  %v4414_v6 = vadd.f32 %v3223_v52, %v4318_v36 }
 0x1c7   : > { %v4417_v45 = vadd.f32 %v3162_v7, %v4321_v26  ;;  %v4420_v50 = vadd.f32 %v3226_v54, %v4324_v34 }
 0x1c9   : > { %v3163_v62 = vpop.f32.mrb[104].mxu0  ;;  %v3227_v40 = vpop.f32.mrb[104].mxu1 }
 0x1ca   : > { %v3164_v1 = vpop.f32.mrb[105].mxu0  ;;  %v3228_v55 = vpop.f32.mrb[105].mxu1 }
 0x1cb   : > { %v3165_v17 = vadd.f32 %v3164_v1, %v3163_v62  ;;  %v3229_v61 = vadd.f32 %v3228_v55, %v3227_v40  ;;  %v3166_v24 = vpop.f32.mrb[106].mxu0  ;;  %v3230_v39 = vpop.f32.mrb[106].mxu1 }
 0x1cc   : > { %v3167_v20 = vpop.f32.mrb[107].mxu0  ;;  %v3231_v9 = vpop.f32.mrb[107].mxu1 }
 0x1cd   : > { %v4423_v37 = vadd.f32 %v3165_v17, %v4327_v57  ;;  %v3168_v36 = vadd.f32 %v3167_v20, %v3166_v24  ;;  %v3232_v15 = vadd.f32 %v3231_v9, %v3230_v39  ;;  %v4426_v26 = vadd.f32 %v3229_v61, %v4330_v16 }
 0x1cf   : > { %v4429_v34 = vadd.f32 %v3168_v36, %v4333_v35  ;;  %v4432_v43 = vadd.f32 %v3232_v15, %v4336_v53 }
 0x1d1   : > { %v3169_v49 = vpop.f32.mrb[108].mxu0  ;;  %v3233_v33 = vpop.f32.mrb[108].mxu1 }
 0x1d2   : > { %v3170_v46 = vpop.f32.mrb[109].mxu0  ;;  %v3234_v58 = vpop.f32.mrb[109].mxu1 }
 0x1d3   : > { %v3171_v14 = vadd.f32 %v3170_v46, %v3169_v49  ;;  %v3235_v8 = vadd.f32 %v3234_v58, %v3233_v33  ;;  %v3172_v57 = vpop.f32.mrb[110].mxu0  ;;  %v3236_v44 = vpop.f32.mrb[110].mxu1 }
 0x1d4   : > { %v3173_v19 = vpop.f32.mrb[111].mxu0  ;;  %v3237_v25 = vpop.f32.mrb[111].mxu1 }
 0x1d5   : > { %v4435_v16 = vadd.f32 %v3171_v14, %v4339_v51  ;;  %v3174_v52 = vadd.f32 %v3173_v19, %v3172_v57  ;;  %v3238_v35 = vadd.f32 %v3237_v25, %v3236_v44  ;;  %v4438_v29 = vadd.f32 %v3235_v8, %v4342_v22 }
 0x1d7   : > { %v4441_v53 = vadd.f32 %v3174_v52, %v4345_v13  ;;  %v4444_v59 = vadd.f32 %v3238_v35, %v4348_v3 }
 0x1d9   : > { %v3239_v60 = vpop.f32.mrb[112].mxu1  ;;  %v3329_v51 = vpop.f32.mrb[112].mxu0 }
 0x1da   : > { %v2407_v22 = vadd.f32 %v3329_v51, %v4366_v30  ;;  %v3240_v48 = vpop.f32.mrb[113].mxu1  ;;  %v2398_v13 = vpop.f32.mrb[113].mxu0 }
 0x1db   : > { %v3241_v7 = vadd.f32 %v3240_v48, %v3239_v60  ;;  %v2399_v3 = vadd.f32 %v2398_v13, %v4354_v10  ;;  %v3242_v54 = vpop.f32.mrb[114].mxu1  ;;  %v3330_v62 = vpop.f32.mrb[114].mxu0 }
 0x1dc   : > { %2527 = vst [vmem:[%s4451_s24 + $0x10] sm:$0xff] %v2407_v22  ;;  %v2410_v40 = vadd.f32 %v3330_v62, %v4372_v63  ;;  %v3243_v1 = vpop.f32.mrb[115].mxu1  ;;  %v2401_v55 = vpop.f32.mrb[115].mxu0  ;;  %v2597_v9 = vmul.f32 %v2407_v22, %v2407_v22 }
 0x1dd   : > { %2525 = vst [vmem:[%s4451_s24] sm:$0xff] %v2399_v3  ;;  %v3244_v17 = vadd.f32 %v3243_v1, %v3242_v54  ;;  %v2402_v61 = vadd.f32 %v2401_v55, %v4360_v27  ;;  %v4460_v24 = vadd.f32 %v3241_v7, %v4351_v0  ;;  %v2595_v30 = vmul.f32 %v2399_v3, %v2399_v3 }
 0x1de   : > { %2528 = vst [vmem:[%s4451_s24 + $0x18] sm:$0xff] %v2410_v40  ;;  %v2598_v33 = vmul.f32 %v2410_v40, %v2410_v40 }
 0x1df   : > { %2526 = vst [vmem:[%s4451_s24 + $0x8] sm:$0xff] %v2402_v61  ;;  %v2557_v39 = vadd.f32 %v2402_v61, %v2399_v3  ;;  %v2596_v20 = vmul.f32 %v2402_v61, %v2402_v61  ;;  %v4465_v10 = vadd.f32 %v3244_v17, %v4357_v56 }
 0x1e1   : > { %v2558_v63 = vadd.f32 %v2557_v39, %v2407_v22  ;;  %v2627_v36 = vadd.f32 %v2596_v20, %v2595_v30  ;;  %v3245_v15 = vpop.f32.mrb[116].mxu1  ;;  %v3333_v49 = vpop.f32.mrb[116].mxu0 }
 0x1e2   : > { %v2423_v27 = vadd.f32 %v3333_v49, %v4390_v41  ;;  %v3246_v0 = vpop.f32.mrb[117].mxu1  ;;  %v2414_v46 = vpop.f32.mrb[117].mxu0 }
 0x1e3   : > { %v2628_v58 = vadd.f32 %v2627_v36, %v2597_v9  ;;  %v3247_v14 = vadd.f32 %v3246_v0, %v3245_v15  ;;  %v2415_v8 = vadd.f32 %v2414_v46, %v4378_v31  ;;  %v2559_v57 = vadd.f32 %v2558_v63, %v2410_v40  ;;  %v3248_v56 = vpop.f32.mrb[118].mxu1  ;;  %v3334_v44 = vpop.f32.mrb[118].mxu0 }
 0x1e4   : > { %2531 = vst [vmem:[%s4451_s24 + $0x30] sm:$0xff] %v2423_v27  ;;  %v2426_v19 = vadd.f32 %v3334_v44, %v4396_v47  ;;  %v3249_v25 = vpop.f32.mrb[119].mxu1  ;;  %v2417_v52 = vpop.f32.mrb[119].mxu0  ;;  %v2601_v62 = vmul.f32 %v2423_v27, %v2423_v27 }
 0x1e5   : > { %2529 = vst [vmem:[%s4451_s24 + $0x20] sm:$0xff] %v2415_v8  ;;  %v2560_v35 = vadd.f32 %v2559_v57, %v2415_v8  ;;  %v2599_v60 = vmul.f32 %v2415_v8, %v2415_v8  ;;  %v2629_v41 = vadd.f32 %v2628_v58, %v2598_v33  ;;  %v3250_v51 = vadd.f32 %v3249_v25, %v3248_v56 }
 0x1e6   : > { %2532 = vst [vmem:[%s4451_s24 + $0x38] sm:$0xff] %v2426_v19  ;;  %v2418_v22 = vadd.f32 %v2417_v52, %v4384_v21  ;;  %v4475_v48 = vadd.f32 %v3247_v14, %v4363_v4  ;;  %v2602_v39 = vmul.f32 %v2426_v19, %v2426_v19 }
 0x1e7   : > { %v2630_v31 = vadd.f32 %v2629_v41, %v2599_v60  ;;  %v4478_v13 = vadd.f32 %v3250_v51, %v4369_v32 }
 0x1e8   : > { %2530 = vst [vmem:[%s4451_s24 + $0x28] sm:$0xff] %v2418_v22  ;;  %v2561_v7 = vadd.f32 %v2560_v35, %v2418_v22  ;;  %v2600_v47 = vmul.f32 %v2418_v22, %v2418_v22 }
 0x1e9   : > { %v3251_v3 = vpop.f32.mrb[120].mxu1  ;;  %v3337_v54 = vpop.f32.mrb[120].mxu0 }
 0x1ea   : > { %v2562_v40 = vadd.f32 %v2561_v7, %v2423_v27  ;;  %v2631_v1 = vadd.f32 %v2630_v31, %v2600_v47  ;;  %v2439_v55 = vadd.f32 %v3337_v54, %v4414_v6  ;;  %v3252_v21 = vpop.f32.mrb[121].mxu1  ;;  %v2430_v17 = vpop.f32.mrb[121].mxu0 }
 0x1eb   : > { %v3253_v4 = vadd.f32 %v3252_v21, %v3251_v3  ;;  %v2431_v61 = vadd.f32 %v2430_v17, %v4402_v5  ;;  %v3254_v30 = vpop.f32.mrb[122].mxu1  ;;  %v3338_v32 = vpop.f32.mrb[122].mxu0 }
 0x1ec   : > { %v2632_v20 = vadd.f32 %v2631_v1, %v2601_v62  ;;  %2535 = vst [vmem:[%s4451_s24 + $0x50] sm:$0xff] %v2439_v55  ;;  %v2563_v9 = vadd.f32 %v2562_v40, %v2426_v19  ;;  %v2442_v63 = vadd.f32 %v3338_v32, %v4420_v50  ;;  %v3255_v36 = vpop.f32.mrb[123].mxu1  ;;  %v2433_v15 = vpop.f32.mrb[123].mxu0  ;;  %v2605_v56 = vmul.f32 %v2439_v55, %v2439_v55 }
 0x1ed   : > { %2533 = vst [vmem:[%s4451_s24 + $0x40] sm:$0xff] %v2431_v61  ;;  %v2603_v49 = vmul.f32 %v2431_v61, %v2431_v61  ;;  %v3256_v6 = vadd.f32 %v3255_v36, %v3254_v30  ;;  %v2434_v33 = vadd.f32 %v2433_v15, %v4408_v28  ;;  %v4488_v27 = vadd.f32 %v3253_v4, %v4375_v2 }
 0x1ee   : > { %v2564_v5 = vadd.f32 %v2563_v9, %v2431_v61  ;;  %v2633_v0 = vadd.f32 %v2632_v20, %v2602_v39  ;;  %2536 = vst [vmem:[%s4451_s24 + $0x58] sm:$0xff] %v2442_v63  ;;  %v2606_v41 = vmul.f32 %v2442_v63, %v2442_v63 }
 0x1ef   : > { %2534 = vst [vmem:[%s4451_s24 + $0x48] sm:$0xff] %v2434_v33  ;;  %v2604_v46 = vmul.f32 %v2434_v33, %v2434_v33  ;;  %v4493_v58 = vadd.f32 %v3256_v6, %v4381_v38 }
 0x1f0   : > { %v2634_v14 = vadd.f32 %v2633_v0, %v2603_v49  ;;  %v2565_v50 = vadd.f32 %v2564_v5, %v2434_v33 }
 0x1f1   : > { %v3257_v8 = vpop.f32.mrb[124].mxu1  ;;  %v3341_v57 = vpop.f32.mrb[124].mxu0 }
 0x1f2   : > { %v2566_v44 = vadd.f32 %v2565_v50, %v2439_v55  ;;  %v2635_v28 = vadd.f32 %v2634_v14, %v2604_v46  ;;  %v2455_v2 = vadd.f32 %v3341_v57, %v4438_v29  ;;  %v3258_v19 = vpop.f32.mrb[125].mxu1  ;;  %v2446_v25 = vpop.f32.mrb[125].mxu0 }
 0x1f3   : > { %v3259_v52 = vadd.f32 %v3258_v19, %v3257_v8  ;;  %v2447_v35 = vadd.f32 %v2446_v25, %v4426_v26  ;;  %v3260_v60 = vpop.f32.mrb[126].mxu1  ;;  %v3342_v38 = vpop.f32.mrb[126].mxu0 }
 0x1f4   : > { %v2636_v51 = vadd.f32 %v2635_v28, %v2605_v56  ;;  %2539 = vst [vmem:[%s4451_s24 + $0x70] sm:$0xff] %v2455_v2  ;;  %v2567_v22 = vadd.f32 %v2566_v44, %v2442_v63  ;;  %v2458_v31 = vadd.f32 %v3342_v38, %v4444_v59  ;;  %v3261_v7 = vpop.f32.mrb[127].mxu1  ;;  %v2449_v47 = vpop.f32.mrb[127].mxu0  ;;  %v2609_v61 = vmul.f32 %v2455_v2, %v2455_v2 }
 0x1f5   : > { %2537 = vst [vmem:[%s4451_s24 + $0x60] sm:$0xff] %v2447_v35  ;;  %v2607_v3 = vmul.f32 %v2447_v35, %v2447_v35  ;;  %v3262_v29 = vadd.f32 %v3261_v7, %v3260_v60  ;;  %v2450_v54 = vadd.f32 %v2449_v47, %v4432_v43  ;;  %v2326_v62 = vadd.f32 %v3259_v52, %v4387_v42 }
 0x1f6   : > { %v2568_v26 = vadd.f32 %v2567_v22, %v2447_v35  ;;  %v2637_v40 = vadd.f32 %v2636_v51, %v2606_v41  ;;  %2540 = vst [vmem:[%s4451_s24 + $0x78] sm:$0xff] %v2458_v31 }
 0x1f7   : > { %2538 = vst [vmem:[%s4451_s24 + $0x68] sm:$0xff] %v2450_v54  ;;  %v2608_v1 = vmul.f32 %v2450_v54, %v2450_v54  ;;  %v2329_v55 = vadd.f32 %v3262_v29, %v4393_v12  ;;  %v2610_v12 = vmul.f32 %v2458_v31, %v2458_v31 }
 0x1f8   : > { %v2638_v21 = vadd.f32 %v2637_v40, %v2607_v3  ;;  %v2569_v17 = vadd.f32 %v2568_v26, %v2450_v54 }
 0x1f9   : > { %v3263_v59 = vpop.f32.mrb[128].mxu1  ;;  %v3345_v4 = vpop.f32.mrb[128].mxu0 }
 0x1fa   : > { %v2570_v30 = vadd.f32 %v2569_v17, %v2455_v2  ;;  %v2639_v32 = vadd.f32 %v2638_v21, %v2608_v1  ;;  %v2471_v43 = vadd.f32 %v3345_v4, %v4475_v48  ;;  %v3264_v39 = vpop.f32.mrb[129].mxu1  ;;  %v2462_v42 = vpop.f32.mrb[129].mxu0 }
 0x1fb   : > { %v3265_v20 = vadd.f32 %v3264_v39, %v3263_v59  ;;  %v2463_v9 = vadd.f32 %v2462_v42, %v4460_v24  ;;  %v3266_v63 = vpop.f32.mrb[130].mxu1  ;;  %v3346_v36 = vpop.f32.mrb[130].mxu0 }
 0x1fc   : > { %v2640_v15 = vadd.f32 %v2639_v32, %v2609_v61  ;;  %2543 = vst [vmem:[%s4451_s24 + $0x90] sm:$0xff] %v2471_v43  ;;  %v2571_v49 = vadd.f32 %v2570_v30, %v2458_v31  ;;  %v2474_v6 = vadd.f32 %v3346_v36, %v4478_v13  ;;  %v3267_v33 = vpop.f32.mrb[131].mxu1  ;;  %v2465_v5 = vpop.f32.mrb[131].mxu0  ;;  %v2613_v2 = vmul.f32 %v2471_v43, %v2471_v43 }
 0x1fd   : > { %2541 = vst [vmem:[%s4451_s24 + $0x80] sm:$0xff] %v2463_v9  ;;  %v2611_v0 = vmul.f32 %v2463_v9, %v2463_v9  ;;  %v3268_v48 = vadd.f32 %v3267_v33, %v3266_v63  ;;  %v2466_v46 = vadd.f32 %v2465_v5, %v4465_v10  ;;  %v2334_v14 = vadd.f32 %v3265_v20, %v4399_v11 }
 0x1fe   : > { %v2572_v24 = vadd.f32 %v2571_v49, %v2463_v9  ;;  %v2641_v50 = vadd.f32 %v2640_v15, %v2610_v12  ;;  %2544 = vst [vmem:[%s4451_s24 + $0x98] sm:$0xff] %v2474_v6 }
 0x1ff   : > { %2542 = vst [vmem:[%s4451_s24 + $0x88] sm:$0xff] %v2466_v46  ;;  %v2612_v8 = vmul.f32 %v2466_v46, %v2466_v46  ;;  %v2337_v57 = vadd.f32 %v3268_v48, %v4405_v18  ;;  %v2614_v18 = vmul.f32 %v2474_v6, %v2474_v6 }
 0x200   : > { %v2642_v56 = vadd.f32 %v2641_v50, %v2611_v0  ;;  %v2573_v44 = vadd.f32 %v2572_v24, %v2466_v46 }
 0x201   : > { %v3269_v13 = vpop.f32.mrb[132].mxu1  ;;  %v3349_v28 = vpop.f32.mrb[132].mxu0 }
 0x202   : > { %v2574_v19 = vadd.f32 %v2573_v44, %v2471_v43  ;;  %v2643_v25 = vadd.f32 %v2642_v56, %v2612_v8  ;;  %v2487_v52 = vadd.f32 %v3349_v28, %v2326_v62  ;;  %v3270_v10 = vpop.f32.mrb[133].mxu1  ;;  %v2478_v35 = vpop.f32.mrb[133].mxu0 }
 0x203   : > { %v3271_v11 = vadd.f32 %v3270_v10, %v3269_v13  ;;  %v2479_v60 = vadd.f32 %v2478_v35, %v4488_v27  ;;  %v3272_v38 = vpop.f32.mrb[134].mxu1  ;;  %v3350_v41 = vpop.f32.mrb[134].mxu0 }
 0x204   : > { %v2644_v51 = vadd.f32 %v2643_v25, %v2613_v2  ;;  %2547 = vst [vmem:[%s4451_s24 + $0xb0] sm:$0xff] %v2487_v52  ;;  %v2575_v22 = vadd.f32 %v2574_v19, %v2474_v6  ;;  %v2490_v31 = vadd.f32 %v3350_v41, %v2329_v55  ;;  %v3273_v7 = vpop.f32.mrb[135].mxu1  ;;  %v2481_v47 = vpop.f32.mrb[135].mxu0  ;;  %v2617_v4 = vmul.f32 %v2487_v52, %v2487_v52 }
 0x205   : > { %2545 = vst [vmem:[%s4451_s24 + $0xa0] sm:$0xff] %v2479_v60  ;;  %v2615_v3 = vmul.f32 %v2479_v60, %v2479_v60  ;;  %v3274_v29 = vadd.f32 %v3273_v7, %v3272_v38  ;;  %v2482_v54 = vadd.f32 %v2481_v47, %v4493_v58  ;;  %v2342_v62 = vadd.f32 %v3271_v11, %v4411_v23 }
 0x206   : > { %v2576_v26 = vadd.f32 %v2575_v22, %v2479_v60  ;;  %v2645_v27 = vadd.f32 %v2644_v51, %v2614_v18  ;;  %2548 = vst [vmem:[%s4451_s24 + $0xb8] sm:$0xff] %v2490_v31  ;;  %v2618_v9 = vmul.f32 %v2490_v31, %v2490_v31 }
 0x207   : > { %2546 = vst [vmem:[%s4451_s24 + $0xa8] sm:$0xff] %v2482_v54  ;;  %v2616_v40 = vmul.f32 %v2482_v54, %v2482_v54  ;;  %v2345_v1 = vadd.f32 %v3274_v29, %v4417_v45 }
 0x208   : > { %v2646_v21 = vadd.f32 %v2645_v27, %v2615_v3  ;;  %v2577_v17 = vadd.f32 %v2576_v26, %v2482_v54 }
 0x209   : > { %v3275_v55 = vpop.f32.mrb[136].mxu1  ;;  %v3353_v59 = vpop.f32.mrb[136].mxu0 }
 0x20a   : > { %v2578_v61 = vadd.f32 %v2577_v17, %v2487_v52  ;;  %v2647_v30 = vadd.f32 %v2646_v21, %v2616_v40  ;;  %v2503_v32 = vadd.f32 %v3353_v59, %v2342_v62  ;;  %v3276_v58 = vpop.f32.mrb[137].mxu1  ;;  %v2494_v43 = vpop.f32.mrb[137].mxu0 }
 0x20b   : > { %v3277_v23 = vadd.f32 %v3276_v58, %v3275_v55  ;;  %v2495_v39 = vadd.f32 %v2494_v43, %v2334_v14  ;;  %v3278_v42 = vpop.f32.mrb[138].mxu1  ;;  %v3354_v20 = vpop.f32.mrb[138].mxu0 }
 0x20c   : > { %v2648_v45 = vadd.f32 %v2647_v30, %v2617_v4  ;;  %2551 = vst [vmem:[%s4451_s24 + $0xd0] sm:$0xff] %v2503_v32  ;;  %v2579_v63 = vadd.f32 %v2578_v61, %v2490_v31  ;;  %v2506_v36 = vadd.f32 %v3354_v20, %v2345_v1  ;;  %v3279_v12 = vpop.f32.mrb[139].mxu1  ;;  %v2497_v15 = vpop.f32.mrb[139].mxu0  ;;  %v2621_v44 = vmul.f32 %v2503_v32, %v2503_v32 }
 0x20d   : > { %2549 = vst [vmem:[%s4451_s24 + $0xc0] sm:$0xff] %v2495_v39  ;;  %v2619_v49 = vmul.f32 %v2495_v39, %v2495_v39  ;;  %v3280_v6 = vadd.f32 %v3279_v12, %v3278_v42  ;;  %v2498_v33 = vadd.f32 %v2497_v15, %v2337_v57  ;;  %v2350_v5 = vadd.f32 %v3277_v23, %v4423_v37 }
 0x20e   : > { %v2580_v0 = vadd.f32 %v2579_v63, %v2495_v39  ;;  %v2649_v48 = vadd.f32 %v2648_v45, %v2618_v9  ;;  %2552 = vst [vmem:[%s4451_s24 + $0xd8] sm:$0xff] %v2506_v36  ;;  %v2622_v10 = vmul.f32 %v2506_v36, %v2506_v36 }
 0x20f   : > { %2550 = vst [vmem:[%s4451_s24 + $0xc8] sm:$0xff] %v2498_v33  ;;  %v2620_v46 = vmul.f32 %v2498_v33, %v2498_v33  ;;  %v2353_v14 = vadd.f32 %v3280_v6, %v4429_v34 }
 0x210   : > { %v2650_v24 = vadd.f32 %v2649_v48, %v2619_v49  ;;  %v2581_v50 = vadd.f32 %v2580_v0, %v2498_v33 }
 0x211   : > { %v3281_v8 = vpop.f32.mrb[140].mxu1  ;;  %v3357_v56 = vpop.f32.mrb[140].mxu0 }
 0x212   : > { %v2582_v13 = vadd.f32 %v2581_v50, %v2503_v32  ;;  %v2651_v28 = vadd.f32 %v2650_v24, %v2620_v46  ;;  %v3282_v2 = vpop.f32.mrb[141].mxu1  ;;  %v2510_v19 = vpop.f32.mrb[141].mxu0 }
 0x213   : > { %v3283_v57 = vadd.f32 %v3282_v2, %v3281_v8  ;;  %v2511_v25 = vadd.f32 %v2510_v19, %v2350_v5  ;;  %v3284_v37 = vpop.f32.mrb[142].mxu1  ;;  %v3358_v52 = vpop.f32.mrb[142].mxu0 }
 0x214   : > { %v2652_v35 = vadd.f32 %v2651_v28, %v2621_v44  ;;  %v2583_v11 = vadd.f32 %v2582_v13, %v2506_v36  ;;  %v3285_v34 = vpop.f32.mrb[143].mxu1  ;;  %v2513_v60 = vpop.f32.mrb[143].mxu0 }
 0x215   : > { %v2358_v38 = vadd.f32 %v3283_v57, %v4435_v16  ;;  %2553 = vst [vmem:[%s4451_s24 + $0xe0] sm:$0xff] %v2511_v25  ;;  %v2623_v41 = vmul.f32 %v2511_v25, %v2511_v25  ;;  %v3286_v18 = vadd.f32 %v3285_v34, %v3284_v37  ;;  %v2514_v51 = vadd.f32 %v2513_v60, %v2353_v14 }
 0x216   : > { %v2584_v22 = vadd.f32 %v2583_v11, %v2511_v25  ;;  %v2653_v31 = vadd.f32 %v2652_v35, %v2622_v10 }
 0x217   : > { %v2519_v7 = vadd.f32 %v3357_v56, %v2358_v38  ;;  %v2361_v47 = vadd.f32 %v3286_v18, %v4441_v53  ;;  %2554 = vst [vmem:[%s4451_s24 + $0xe8] sm:$0xff] %v2514_v51  ;;  %v2624_v3 = vmul.f32 %v2514_v51, %v2514_v51 }
 0x218   : > { %v2654_v29 = vadd.f32 %v2653_v31, %v2623_v41  ;;  %v2585_v54 = vadd.f32 %v2584_v22, %v2514_v51 }
 0x219   : > { %2555 = vst [vmem:[%s4451_s24 + $0xf0] sm:$0xff] %v2519_v7  ;;  %v2625_v62 = vmul.f32 %v2519_v7, %v2519_v7  ;;  %v2522_v26 = vadd.f32 %v3358_v52, %v2361_v47 }
 0x21a   : > { %v2586_v27 = vadd.f32 %v2585_v54, %v2519_v7  ;;  %v2655_v16 = vadd.f32 %v2654_v29, %v2624_v3 }
 0x21b   : > { %2556 = vst [vmem:[%s4451_s24 + $0xf8] sm:$0xff] %v2522_v26  ;;  %v2626_v40 = vmul.f32 %v2522_v26, %v2522_v26 }
 0x21c   : > { %v2587_v1 = vadd.f32 %v2586_v27, %v2522_v26  ;;  %v2656_v21 = vadd.f32 %v2655_v16, %v2625_v62 }
 0x21e   : > { %v2588_v17 = vrot.slane %v2587_v1, 4  ;;  %v2657_v55 = vadd.f32 %v2656_v21, %v2626_v40 }
 0x220   : > { %v2589_v59 = vadd.f32 %v2588_v17, %v2587_v1  ;;  %v2658_v4 = vrot.slane %v2657_v55, 4 }
 0x222   : > { %v2590_v61 = vrot.slane %v2589_v59, 2  ;;  %v2659_v53 = vadd.f32 %v2658_v4, %v2657_v55 }
 0x224   : > { %v2591_v30 = vadd.f32 %v2590_v61, %v2589_v59  ;;  %v2660_v32 = vrot.slane %v2659_v53, 2 }
 0x226   : > { %v2592_v58 = vrot.slane %v2591_v30, 1  ;;  %v2661_v43 = vadd.f32 %v2660_v32, %v2659_v53 }
 0x228   : > { %v2593_v23 = vadd.f32 %v2592_v58, %v2591_v30  ;;  %v2662_v39 = vrot.slane %v2661_v43, 1 }
 0x22a   : > { %2594 = vst [vmem:[%s235_s27] sm:$0x1] %v2593_v23  ;;  %v2663_v42 = vadd.f32 %v2662_v39, %v2661_v43 }
 0x22c   : > { %2664 = vst [vmem:[%s235_s27 + $0x1] sm:$0x1] %v2663_v42 }
 0x22d PF: > { %s16_s18 = sadd.s32 1, %s3463_s18  }
 0x22e   : > { %p13_p4 = scmp.ge.s32.totalorder %s16_s18, 4  }
 0x230   :  { %15 = sbr.rel (!%p13_p4) target bundleno = 1 (0x1), region = 81 }

// kernel: residual_forward.4
= control target key start
LH: loop header
LB: loop body
LE: loop exit
PB: predicated region body
PF: predicated region fallthrough
CT: control target
= control target key end

     0   :  { %s3528_s18 = smov 0   ;;  %s4606_s0 = inlined_call_operand.vmem [shape: f32[2,16,16,128], index: 0, kind: input, shape index: {}]   ;;  %s4607_s1 = inlined_call_operand.vmem [shape: f32[1,128], index: 1, kind: input, shape index: {}]   ;;  %s4608_s2 = inlined_call_operand.vmem [shape: f32[1,128], index: 2, kind: input, shape index: {}]   ;;  %s4609_s3 = inlined_call_operand.vmem [shape: bf16[1152,128], index: 3, kind: input, shape index: {}]   ;;  %s4610_s4 = inlined_call_operand.vmem [shape: f32[2,16,16,128], index: 4, kind: output, shape index: {0}]   ;;  %s4611_s5 = inlined_call_operand.vmem [shape: f32[2,2,128], index: 5, kind: output, shape index: {1}]  }
   0x1 LB: > { %s2783_s19 = sadd.s32 4294967295, %s3495_s18   ;;  %p2787_p0 = scmp.ge.s32.totalorder %s3495_s18, 1  ;;  %s3495_s18 = sphi %s3528_s18, %s16_s18  }
   0x2   : > { %p190_p1 = scmp.lt.s32.totalorder %s3495_s18, 3 }
   0x4   : > { %p191_p2 = pnand %p2787_p0, %p190_p1 }
   0x5   : > { %v3416_v0 = vld [vmem:[%s4609_s3 + $0x40] sm:$0xff] (!%p191_p2)   ;;  %v3497_v2 = vmov (!%p191_p2), 0.0   ;;  %v3418_v3 = vld [vmem:[%s4609_s3 + $0x48] sm:$0xff] (!%p191_p2)   ;;  %p222_p3 = scmp.lt.s32.totalorder (!%p191_p2), %s2783_s19, 1  ;;  %v3420_v5 = vld [vmem:[%s4609_s3 + $0x50] sm:$0xff] (!%p191_p2)  }
   0x6   : > { %194 = sbr.rel (%p191_p2) target bundleno = 557 (0x22d), region = 36  ;;  %v3417_v1 = vld [vmem:[%s4609_s3] sm:$0xff] (!%p191_p2)   ;;  %412 = vst [vmem:[#allocation2] sm:$0xff] (!%p191_p2), %v3497_v2  ;;  %413 = vst [vmem:[#allocation2 + $0x8] sm:$0xff] (!%p191_p2), %v3497_v2  ;;  %2871 = vmatprep.subr.bf16.mxu0 (!%p191_p2), %v3416_v0  ;;  %3391 = vmatprep.subr.bf16.mxu1 (!%p191_p2), %v3416_v0  ;;  %v3419_v4 = vld [vmem:[%s4609_s3 + $0x8] sm:$0xff] (!%p191_p2)  }
   0x7   : > { %414 = vst [vmem:[#allocation2 + $0x10] sm:$0x3] (!%p191_p2), %v3497_v2  ;;  %416 = vst [vmem:[#allocation2 + $0x198] sm:$0xff] (!%p191_p2), %v3497_v2  ;;  %2872 = vmatpush3.bf16.msra.mxu0 (!%p191_p2), %v3417_v1  ;;  %3399 = vmatpush3.bf16.msra.mxu1 (!%p191_p2), %v3417_v1  ;;  %v3421_v6 = vld [vmem:[%s4609_s3 + $0x10] sm:$0xff] (!%p191_p2)   ;;  %v3422_v7 = vld [vmem:[%s4609_s3 + $0x58] sm:$0xff] (!%p191_p2)  }
   0x8   : > { %417 = vst [vmem:[#allocation2 + $0x1a0] sm:$0xff] (!%p191_p2), %v3497_v2  ;;  %418 = vst [vmem:[#allocation2 + $0x1a8] sm:$0x3] (!%p191_p2), %v3497_v2  ;;  %2873 = vmatprep.subr.bf16.mxu0 (!%p191_p2), %v3418_v3  ;;  %3392 = vmatprep.subr.bf16.mxu1 (!%p191_p2), %v3418_v3  ;;  %v3423_v8 = vld [vmem:[%s4609_s3 + $0x18] sm:$0xff] (!%p191_p2)   ;;  %v3424_v9 = vld [vmem:[%s4609_s3 + $0x60] sm:$0xff] (!%p191_p2)  }
   0x9   : > { %420 = vst [vmem:[#allocation2 + $0x18] sm:$0x1] (!%p191_p2), %v3497_v2  ;;  %421 = vst [vmem:[#allocation2 + $0x30] sm:$0x1] (!%p191_p2), %v3497_v2  ;;  %v3425_v10 = vld [vmem:[%s4609_s3 + $0x20] sm:$0xff] (!%p191_p2)   ;;  %v3426_v11 = vld [vmem:[%s4609_s3 + $0x68] sm:$0xff] (!%p191_p2)  }
   0xa   : > { %422 = vst [vmem:[#allocation2 + $0x48] sm:$0x1] (!%p191_p2), %v3497_v2  ;;  %423 = vst [vmem:[#allocation2 + $0x60] sm:$0x1] (!%p191_p2), %v3497_v2  ;;  %v3628_v14 = vld [vmem:[%s4607_s1] ss:$0 sm:$0xff] (!%p191_p2) }
   0xb   : > { %424 = vst [vmem:[#allocation2 + $0x78] sm:$0x1] (!%p191_p2), %v3497_v2  ;;  %425 = vst [vmem:[#allocation2 + $0x90] sm:$0x1] (!%p191_p2), %v3497_v2  ;;  %2874 = vmatpush3.bf16.msra.mxu0 (!%p191_p2), %v3419_v4  ;;  %3400 = vmatpush3.bf16.msra.mxu1 (!%p191_p2), %v3419_v4  ;;  %v3633_v16 = vld [vmem:[%s4608_s2] ss:$0 sm:$0xff] (!%p191_p2) }
   0xc   : > { %426 = vst [vmem:[#allocation2 + $0xa8] sm:$0x1] (!%p191_p2), %v3497_v2  ;;  %427 = vst [vmem:[#allocation2 + $0xc0] sm:$0x1] (!%p191_p2), %v3497_v2  ;;  %2875 = vmatprep.subr.bf16.mxu0 (!%p191_p2), %v3420_v5  ;;  %3393 = vmatprep.subr.bf16.mxu1 (!%p191_p2), %v3420_v5  ;;  %v3427_v21 = vld [vmem:[%s4609_s3 + $0x28] sm:$0xff] (!%p191_p2)   ;;  %v3428_v22 = vld [vmem:[%s4609_s3 + $0x70] sm:$0xff] (!%p191_p2)  }
   0xd   : > { %428 = vst [vmem:[#allocation2 + $0xd8] sm:$0x1] %v3497_v2  ;;  %429 = vst [vmem:[#allocation2 + $0xf0] sm:$0x1] %v3497_v2  ;;  %s4613_s19 = smov (!%p222_p3, %s2783_s19), 1  ;;  %v519_v12 = vld [vmem:[#allocation2 + $0x1] sm:$0xff] }
   0xe   : > { %430 = vst [vmem:[#allocation2 + $0x108] sm:$0x1] %v3497_v2  ;;  %431 = vst [vmem:[#allocation2 + $0x120] sm:$0x1] %v3497_v2  ;;  %s2869_s11 = sshll.u32 %s4613_s19, 8  ;;  %v520_v13 = vld [vmem:[#allocation2 + $0x9] sm:$0xff] }
   0xf   : > { %432 = vst [vmem:[#allocation2 + $0x138] sm:$0x1] %v3497_v2  ;;  %433 = vst [vmem:[#allocation2 + $0x150] sm:$0x1] %v3497_v2  ;;  %2876 = vmatpush3.bf16.msra.mxu0 %v3421_v6  ;;  %3401 = vmatpush3.bf16.msra.mxu1 %v3421_v6  ;;  %s3620_s20 = scalar_lea.vmem %s4606_s0, %s2869_s11  ;;  %v551_v15 = vpack.c.bf16 %v520_v13, %v519_v12  ;;  %v3429_v25 = vld [vmem:[%s4609_s3 + $0x30] sm:$0xff]   ;;  %v3430_v28 = vld [vmem:[%s4609_s3 + $0x78] sm:$0xff]   ;;  %s4515_s24 = scalar_lea.vmem %s4610_s4, %s2869_s11 }
  0x10   : > { %434 = vst [vmem:[#allocation2 + $0x168] sm:$0x1] %v3497_v2  ;;  %435 = vst [vmem:[#allocation2 + $0x180] sm:$0x1] %v3497_v2  ;;  %2877 = vmatprep.subr.bf16.mxu0 %v3422_v7  ;;  %3394 = vmatprep.subr.bf16.mxu1 %v3422_v7  ;;  %v261_v17 = vld [vmem:[%s3620_s20 + $0xb0] sm:$0xff]  ;;  %v262_v18 = vld [vmem:[%s3620_s20 + $0xb8] sm:$0xff] }
  0x11   : > { %438 = vst [vmem:[#allocation2 + $0x29] sm:$0x1] %v3497_v2  ;;  %439 = vst [vmem:[#allocation2 + $0x41] sm:$0x1] %v3497_v2  ;;  %v299_v19 = vmul.f32 %v3628_v14, %v261_v17  ;;  %v300_v20 = vmul.f32 %v3628_v14, %v262_v18  ;;  %1784 = vmatprep.mubr.bf16.mxu0 %v551_v15  ;;  %v239_v30 = vld [vmem:[%s3620_s20] sm:$0xff]  ;;  %v240_v31 = vld [vmem:[%s3620_s20 + $0x8] sm:$0xff] }
  0x12   : > { %440 = vst [vmem:[#allocation2 + $0x59] sm:$0x1] %v3497_v2  ;;  %441 = vst [vmem:[#allocation2 + $0x71] sm:$0x1] %v3497_v2  ;;  %v3431_v32 = vld [vmem:[%s4609_s3 + $0x38] sm:$0xff]   ;;  %v277_v33 = vmul.f32 %v3628_v14, %v239_v30  ;;  %v278_v34 = vmul.f32 %v3628_v14, %v240_v31  ;;  %v263_v35 = vld [vmem:[%s3620_s20 + $0xc0] sm:$0xff] }
  0x13   : > { %442 = vst [vmem:[#allocation2 + $0x89] sm:$0x1] %v3497_v2  ;;  %443 = vst [vmem:[#allocation2 + $0xa1] sm:$0x1] %v3497_v2  ;;  %2878 = vmatpush3.bf16.msra.mxu0 %v3423_v8  ;;  %3402 = vmatpush3.bf16.msra.mxu1 %v3423_v8  ;;  %v337_v23 = vadd.f32 %v3633_v16, %v299_v19  ;;  %v338_v24 = vadd.f32 %v3633_v16, %v300_v20  ;;  %v264_v36 = vld [vmem:[%s3620_s20 + $0xc8] sm:$0xff]  ;;  %v3432_v40 = vld [vmem:[%s4609_s3 + $0xc0] sm:$0xff]  }
  0x14   : > { %444 = vst [vmem:[#allocation2 + $0xb9] sm:$0x1] %v3497_v2  ;;  %445 = vst [vmem:[#allocation2 + $0xd1] sm:$0x1] %v3497_v2  ;;  %2879 = vmatprep.subr.bf16.mxu0 %v3424_v9  ;;  %3395 = vmatprep.subr.bf16.mxu1 %v3424_v9  ;;  %v301_v38 = vmul.f32 %v3628_v14, %v263_v35  ;;  %v302_v39 = vmul.f32 %v3628_v14, %v264_v36  ;;  %v3433_v43 = vld [vmem:[%s4609_s3 + $0x140] sm:$0xff]   ;;  %v3436_v51 = vld [vmem:[%s4609_s3 + $0xc8] sm:$0xff]  }
  0x15   : > { %446 = vst [vmem:[#allocation2 + $0xe9] sm:$0x1] %v3497_v2  ;;  %447 = vst [vmem:[#allocation2 + $0x101] sm:$0x1] %v3497_v2  ;;  %v369_v26 = vmax.f32 %v337_v23, 0.0  ;;  %v370_v27 = vmax.f32 %v338_v24, 0.0  ;;  %v315_v41 = vadd.f32 %v3633_v16, %v277_v33  ;;  %v316_v42 = vadd.f32 %v3633_v16, %v278_v34 }
  0x16   : > { %448 = vst [vmem:[#allocation2 + $0x119] sm:$0x1] %v3497_v2  ;;  %449 = vst [vmem:[#allocation2 + $0x131] sm:$0x1] %v3497_v2  ;;  %v339_v44 = vadd.f32 %v3633_v16, %v301_v38  ;;  %v340_v45 = vadd.f32 %v3633_v16, %v302_v39  ;;  %v3434_v46 = vld [vmem:[%s4609_s3 + $0x80] sm:$0xff]   ;;  %v3441_v58 = vld [vmem:[%s4609_s3 + $0x148] sm:$0xff]  }
  0x17   : > { %450 = vst [vmem:[#allocation2 + $0x149] sm:$0x1] %v3497_v2  ;;  %451 = vst [vmem:[#allocation2 + $0x161] sm:$0x1] %v3497_v2  ;;  %2880 = vmatpush3.bf16.msra.mxu0 %v3425_v10  ;;  %3403 = vmatpush3.bf16.msra.mxu1 %v3425_v10  ;;  %v563_v29 = vpack.c.bf16 %v370_v27, %v369_v26  ;;  %v3435_v47 = vld [vmem:[%s4609_s3 + $0x100] sm:$0xff]   ;;  %v347_v48 = vmax.f32 %v315_v41, 0.0 }
  0x18   : > { %452 = vst [vmem:[#allocation2 + $0x179] sm:$0x1] %v3497_v2  ;;  %453 = vst [vmem:[#allocation2 + $0x191] sm:$0x1] %v3497_v2  ;;  %2881 = vmatprep.subr.bf16.mxu0 %v3426_v11  ;;  %3396 = vmatprep.subr.bf16.mxu1 %v3426_v11  ;;  %v348_v49 = vmax.f32 %v316_v42, 0.0  ;;  %v371_v52 = vmax.f32 %v339_v44, 0.0 }
  0x19   : > { %437 = vst [vmem:[#allocation2 + $0x11] sm:$0x1] %v3497_v2  ;;  %419 = vst [vmem:[#allocation2] sm:$0x1] %v3497_v2  ;;  %1880 = vmatprep.mubr.bf16.mxu1 %v563_v29  ;;  %v372_v53 = vmax.f32 %v340_v45, 0.0  ;;  %v241_v59 = vld [vmem:[%s3620_s20 + $0x10] sm:$0xff] }
  0x1a   : > { %436 = vst [vmem:[#allocation2 + $0x198] sm:$0x1] %v3497_v2  ;;  %454 = vst [vmem:[#allocation2 + $0x1a9] sm:$0x1] %v3497_v2  ;;  %v3684_v57 = vpack.c.bf16 %v348_v49, %v347_v48  ;;  %v242_v61 = vld [vmem:[%s3620_s20 + $0x18] sm:$0xff]  ;;  %v279_v62 = vmul.f32 %v3628_v14, %v241_v59  ;;  %v265_v63 = vld [vmem:[%s3620_s20 + $0xd0] sm:$0xff] }
  0x1b   : > { %2882 = vmatpush3.bf16.msra.mxu0 %v3427_v21  ;;  %3404 = vmatpush3.bf16.msra.mxu1 %v3427_v21  ;;  %402 = vst [vmem:[#allocation2 + $0x121] sm:$0xff] %v369_v26  ;;  %403 = vst [vmem:[#allocation2 + $0x129] sm:$0xff] %v370_v27  ;;  %v564_v60 = vpack.c.bf16 %v372_v53, %v371_v52  ;;  %v266_v0 = vld [vmem:[%s3620_s20 + $0xd8] sm:$0xff]  ;;  %v3437_v1 = vld [vmem:[%s4609_s3 + $0x88] sm:$0xff]   ;;  %v303_v3 = vmul.f32 %v3628_v14, %v265_v63  ;;  %s2792_s11 = sshll.u32 %s4613_s19, 1 }
  0x1c   : > { %2883 = vmatprep.subr.bf16.mxu0 %v3428_v22  ;;  %3397 = vmatprep.subr.bf16.mxu1 %v3428_v22  ;;  %380 = vst [vmem:[#allocation2 + $0x19] sm:$0xff] %v347_v48  ;;  %381 = vst [vmem:[#allocation2 + $0x21] sm:$0xff] %v348_v49  ;;  %v304_v4 = vmul.f32 %v3628_v14, %v266_v0  ;;  %v3443_v5 = vld [vmem:[%s4609_s3 + $0x108] sm:$0xff]   ;;  %v317_v6 = vadd.f32 %v3633_v16, %v279_v62  ;;  %v3438_v7 = vld [vmem:[%s4609_s3 + $0xd0] sm:$0xff]   ;;  %s235_s27 = scalar_lea.vmem %s4611_s5, %s2792_s11 }
  0x1d   : > { %404 = vst [vmem:[#allocation2 + $0x139] sm:$0xff] %v371_v52  ;;  %405 = vst [vmem:[#allocation2 + $0x141] sm:$0xff] %v372_v53  ;;  %v341_v9 = vadd.f32 %v3633_v16, %v303_v3  ;;  %v3439_v11 = vld [vmem:[%s4609_s3 + $0x90] sm:$0xff]   ;;  %v3440_v17 = vld [vmem:[%s4609_s3 + $0xd8] sm:$0xff]  }
  0x1e   : > { %v342_v10 = vadd.f32 %v3633_v16, %v304_v4  ;;  %v349_v12 = vmax.f32 %v317_v6, 0.0  ;;  %v243_v21 = vld [vmem:[%s3620_s20 + $0x20] sm:$0xff]  ;;  %v3442_v33 = vld [vmem:[%s4609_s3 + $0x98] sm:$0xff]   ;;  %v3449_v38 = vld [vmem:[%s4609_s3 + $0x150] sm:$0xff]  }
  0x1f   : > { %2884 = vmatpush3.bf16.msra.mxu0 %v3429_v25  ;;  %3405 = vmatpush3.bf16.msra.mxu1 %v3429_v25  ;;  %v373_v19 = vmax.f32 %v341_v9, 0.0  ;;  %v244_v25 = vld [vmem:[%s3620_s20 + $0x28] sm:$0xff]  ;;  %v281_v26 = vmul.f32 %v3628_v14, %v243_v21  ;;  %v267_v31 = vld [vmem:[%s3620_s20 + $0xe0] sm:$0xff]  ;;  %v3451_v44 = vld [vmem:[%s4609_s3 + $0x110] sm:$0xff]  }
  0x20   : > { %v455_v37 = vld [vmem:[#allocation2] sm:$0xff]  ;;  %2885 = vmatprep.subr.bf16.mxu0 %v3430_v28  ;;  %3398 = vmatprep.subr.bf16.mxu1 %v3430_v28  ;;  %v374_v20 = vmax.f32 %v342_v10, 0.0  ;;  %382 = vst [vmem:[#allocation2 + $0x31] sm:$0xff] %v349_v12  ;;  %v282_v30 = vmul.f32 %v3628_v14, %v244_v25  ;;  %v305_v35 = vmul.f32 %v3628_v14, %v267_v31  ;;  %v246_v59 = vld [vmem:[%s3620_s20 + $0x38] sm:$0xff]  ;;  %v3447_v62 = vld [vmem:[%s4609_s3 + $0xa8] sm:$0xff]  }
  0x21   : > { %v487_v50 = vpack.c.bf16 %v3497_v2, %v455_v37  ;;  %v280_v2 = vmul.f32 %v3628_v14, %v242_v61  ;;  %406 = vst [vmem:[#allocation2 + $0x151] sm:$0xff] %v373_v19  ;;  %v319_v34 = vadd.f32 %v3633_v16, %v281_v26  ;;  %v3444_v39 = vld [vmem:[%s4609_s3 + $0xe0] sm:$0xff]   ;;  %v284_v61 = vmul.f32 %v3628_v14, %v246_v59  ;;  %v3448_v63 = vld [vmem:[%s4609_s3 + $0xf0] sm:$0xff]   ;;  %v3456_v3 = vld [vmem:[%s4609_s3 + $0x158] sm:$0xff]  }
  0x22   : > { %v479_v54 = vld [vmem:[#allocation2 + $0x120] sm:$0xff]  ;;  %v480_v55 = vld [vmem:[#allocation2 + $0x128] sm:$0xff]  ;;  %407 = vst [vmem:[#allocation2 + $0x159] sm:$0xff] %v374_v20  ;;  %v565_v29 = vpack.c.bf16 %v374_v20, %v373_v19  ;;  %v320_v37 = vadd.f32 %v3633_v16, %v282_v30  ;;  %v343_v41 = vadd.f32 %v3633_v16, %v305_v35  ;;  %v3452_v19 = vld [vmem:[%s4609_s3 + $0xf8] sm:$0xff]  }
  0x23   : > { %2886 = vmatpush3.bf16.msra.mxu0 %v3431_v32  ;;  %3406 = vmatpush3.bf16.msra.mxu1 %v3431_v32  ;;  %v499_v56 = vpack.c.bf16 %v480_v55, %v479_v54  ;;  %v318_v8 = vadd.f32 %v3633_v16, %v280_v2  ;;  %v457_v13 = vld [vmem:[#allocation2 + $0x18] sm:$0xff]  ;;  %v458_v15 = vld [vmem:[#allocation2 + $0x20] sm:$0xff]  ;;  %v268_v32 = vld [vmem:[%s3620_s20 + $0xe8] sm:$0xff] }
  0x24   : > { %2983 = vmatprep.subr.bf16.mxu1 %v3432_v40  ;;  %3095 = vmatprep.subr.bf16.mxu0 %v3433_v43  ;;  %v3718_v22 = vpack.c.bf16 %v458_v15, %v457_v13  ;;  %v481_v23 = vld [vmem:[#allocation2 + $0x138] sm:$0xff]  ;;  %v482_v24 = vld [vmem:[#allocation2 + $0x140] sm:$0xff]  ;;  %v306_v36 = vmul.f32 %v3628_v14, %v268_v32  ;;  %v351_v40 = vmax.f32 %v319_v34, 0.0  ;;  %v352_v43 = vmax.f32 %v320_v37, 0.0  ;;  %v3446_v55 = vld [vmem:[%s4609_s3 + $0xe8] sm:$0xff]  }
  0x25   : > { %v350_v18 = vmax.f32 %v318_v8, 0.0  ;;  %v3722_v27 = vpack.c.bf16 %v482_v24, %v481_v23  ;;  %v3445_v45 = vld [vmem:[%s4609_s3 + $0xa0] sm:$0xff]   ;;  %v3450_v13 = vld [vmem:[%s4609_s3 + $0xb0] sm:$0xff]   ;;  %v250_v23 = vld [vmem:[%s3620_s20 + $0x58] sm:$0xff] }
  0x26   : > { %1785 = vmatmul.mubr.bf16.vlgmr.msra.gmra.mrb[0].mxu0 %v487_v50  ;;  %1881 = vmatmul.mubr.bf16.vlgmr.msra.gmra.mrb[0].mxu1 %v499_v56  ;;  %v344_v42 = vadd.f32 %v3633_v16, %v306_v36  ;;  %384 = vst [vmem:[#allocation2 + $0x49] sm:$0xff] %v351_v40  ;;  %385 = vst [vmem:[#allocation2 + $0x51] sm:$0xff] %v352_v43  ;;  %v3753_v52 = vpack.c.bf16 %v352_v43, %v351_v40  ;;  %v249_v21 = vld [vmem:[%s3620_s20 + $0x50] sm:$0xff]  ;;  %v3453_v24 = vld [vmem:[%s4609_s3 + $0xb8] sm:$0xff]  }
  0x27   : > { %2984 = vmatpush3.bf16.msra.mxu1 %v3434_v46  ;;  %3096 = vmatpush3.bf16.msra.mxu0 %v3435_v47  ;;  %383 = vst [vmem:[#allocation2 + $0x39] sm:$0xff] %v350_v18  ;;  %v3724_v28 = vpack.c.bf16 %v350_v18, %v349_v12  ;;  %v375_v46 = vmax.f32 %v343_v41, 0.0  ;;  %v459_v48 = vld [vmem:[#allocation2 + $0x30] sm:$0xff]  ;;  %v583_v25 = vld [vmem:[#allocation2 + $0x2] sm:$0xff]  ;;  %v287_v30 = vmul.f32 %v3628_v14, %v249_v21 }
  0x28   : > { %2985 = vmatprep.subr.bf16.mxu1 %v3436_v51  ;;  %1792 = vmatprep.mubr.bf16.mxu0 %v3684_v57  ;;  %v376_v47 = vmax.f32 %v344_v42, 0.0  ;;  %v483_v50 = vld [vmem:[#allocation2 + $0x150] sm:$0xff]  ;;  %v288_v31 = vmul.f32 %v3628_v14, %v250_v23  ;;  %v3454_v34 = vld [vmem:[%s4609_s3 + $0x1c0] sm:$0xff]   ;;  %v252_v43 = vld [vmem:[%s3620_s20 + $0x68] sm:$0xff] }
  0x29   : > { %1888 = vmatprep.mubr.bf16.mxu1 %v564_v60  ;;  %3097 = vmatprep.subr.bf16.mxu0 %v3441_v58  ;;  %v484_v51 = vld [vmem:[#allocation2 + $0x158] sm:$0xff]  ;;  %408 = vst [vmem:[#allocation2 + $0x169] sm:$0xff] %v375_v46  ;;  %v245_v58 = vld [vmem:[%s3620_s20 + $0x30] sm:$0xff]  ;;  %v3818_v36 = vadd.f32 %v3633_v16, %v287_v30  ;;  %v251_v42 = vld [vmem:[%s3620_s20 + $0x60] sm:$0xff] }
  0x2a   : > { %409 = vst [vmem:[#allocation2 + $0x171] sm:$0xff] %v376_v47  ;;  %v3757_v54 = vpack.c.bf16 %v484_v51, %v483_v50  ;;  %v566_v56 = vpack.c.bf16 %v376_v47, %v375_v46  ;;  %v283_v60 = vmul.f32 %v3628_v14, %v245_v58  ;;  %v584_v26 = vld [vmem:[#allocation2 + $0xa] sm:$0xff]  ;;  %v326_v37 = vadd.f32 %v3633_v16, %v288_v31  ;;  %v585_v51 = vld [vmem:[#allocation2 + $0x1a] sm:$0xff] }
  0x2b   : > { %2986 = vmatpush3.bf16.msra.mxu1 %v3437_v1  ;;  %3098 = vmatpush3.bf16.msra.mxu0 %v3443_v5  ;;  %v322_v1 = vadd.f32 %v3633_v16, %v284_v61  ;;  %v357_v40 = vmax.f32 %v3818_v36, 0.0  ;;  %v615_v46 = vpack.c.bf16 %v584_v26, %v583_v25  ;;  %v290_v47 = vmul.f32 %v3628_v14, %v252_v43  ;;  %v3462_v59 = vld [vmem:[%s4609_s3 + $0x168] sm:$0xff]   ;;  %v254_v61 = vld [vmem:[%s3620_s20 + $0x78] sm:$0xff]  ;;  %v3465_v23 = vld [vmem:[%s4609_s3 + $0x190] sm:$0xff]  }
  0x2c   : > { %2987 = vmatprep.subr.bf16.mxu1 %v3438_v7  ;;  %3099 = vmatprep.subr.bf16.mxu0 %v3449_v38  ;;  %v321_v0 = vadd.f32 %v3633_v16, %v283_v60  ;;  %v3457_v7 = vld [vmem:[%s4609_s3 + $0x118] sm:$0xff]   ;;  %v358_v41 = vmax.f32 %v326_v37, 0.0  ;;  %v253_v60 = vld [vmem:[%s3620_s20 + $0x70] sm:$0xff] }
  0x2d   : > { %v461_v2 = vld [vmem:[#allocation2 + $0x48] sm:$0xff]  ;;  %v462_v4 = vld [vmem:[#allocation2 + $0x50] sm:$0xff]  ;;  %v354_v6 = vmax.f32 %v322_v1, 0.0  ;;  %390 = vst [vmem:[#allocation2 + $0x91] sm:$0xff] %v357_v40  ;;  %v3844_v58 = vadd.f32 %v3633_v16, %v290_v47  ;;  %v3468_v43 = vld [vmem:[%s4609_s3 + $0x1d8] sm:$0xff]  }
  0x2e   : > { %1793 = vmatmul.mubr.bf16.gmra.mrb[4].mxu0 %v3718_v22  ;;  %1889 = vmatmul.mubr.bf16.gmra.mrb[4].mxu1 %v3722_v27  ;;  %v460_v49 = vld [vmem:[#allocation2 + $0x38] sm:$0xff]  ;;  %v353_v5 = vmax.f32 %v321_v0, 0.0  ;;  %v3783_v8 = vpack.c.bf16 %v462_v4, %v461_v2  ;;  %391 = vst [vmem:[#allocation2 + $0x99] sm:$0xff] %v358_v41  ;;  %v3463_v1 = vld [vmem:[%s4609_s3 + $0x128] sm:$0xff]   ;;  %v291_v2 = vmul.f32 %v3628_v14, %v253_v60  ;;  %v3466_v26 = vld [vmem:[%s4609_s3 + $0x170] sm:$0xff]  }
  0x2f   : > { %2988 = vmatpush3.bf16.msra.mxu1 %v3439_v11  ;;  %1800 = vmatprep.mubr.bf16.mxu0 %v3724_v28  ;;  %v3755_v53 = vpack.c.bf16 %v460_v49, %v459_v48  ;;  %v247_v11 = vld [vmem:[%s3620_s20 + $0x40] sm:$0xff]  ;;  %387 = vst [vmem:[#allocation2 + $0x69] sm:$0xff] %v354_v6  ;;  %v360_v0 = vmax.f32 %v3844_v58, 0.0  ;;  %v3461_v4 = vld [vmem:[%s4609_s3 + $0x188] sm:$0xff]   ;;  %v3886_v21 = vpack.c.bf16 %v358_v41, %v357_v40  ;;  %v3467_v30 = vld [vmem:[%s4609_s3 + $0x130] sm:$0xff]  }
  0x30   : > { %2989 = vmatprep.subr.bf16.mxu1 %v3440_v17  ;;  %1896 = vmatprep.mubr.bf16.mxu1 %v565_v29  ;;  %v485_v9 = vld [vmem:[#allocation2 + $0x168] sm:$0xff]  ;;  %386 = vst [vmem:[#allocation2 + $0x61] sm:$0xff] %v353_v5  ;;  %v3791_v15 = vpack.c.bf16 %v354_v6, %v353_v5  ;;  %v285_v18 = vmul.f32 %v3628_v14, %v247_v11  ;;  %v3455_v49 = vld [vmem:[%s4609_s3 + $0x180] sm:$0xff]   ;;  %v257_v31 = vld [vmem:[%s3620_s20 + $0x90] sm:$0xff] }
  0x31   : > { %3100 = vmatpush3.bf16.msra.mxu0 %v3451_v44  ;;  %v486_v10 = vld [vmem:[#allocation2 + $0x170] sm:$0xff]  ;;  %v248_v17 = vld [vmem:[%s3620_s20 + $0x48] sm:$0xff]  ;;  %393 = vst [vmem:[#allocation2 + $0xb1] sm:$0xff] %v360_v0  ;;  %v3869_v6 = vadd.f32 %v3633_v16, %v291_v2  ;;  %v255_v11 = vld [vmem:[%s3620_s20 + $0x80] sm:$0xff]  ;;  %v295_v36 = vmul.f32 %v3628_v14, %v257_v31 }
  0x32   : > { %3101 = vmatprep.subr.bf16.mxu0 %v3456_v3  ;;  %v3786_v12 = vpack.c.bf16 %v486_v10, %v485_v9  ;;  %v286_v20 = vmul.f32 %v3628_v14, %v248_v17  ;;  %v323_v29 = vadd.f32 %v3633_v16, %v285_v18  ;;  %v292_v3 = vmul.f32 %v3628_v14, %v254_v61  ;;  %v3464_v9 = vld [vmem:[%s4609_s3 + $0x1d0] sm:$0xff]   ;;  %v3470_v47 = vld [vmem:[%s4609_s3 + $0x178] sm:$0xff]  }
  0x33   : > { %2990 = vmatpush3.bf16.msra.mxu1 %v3442_v33  ;;  %v3458_v33 = vld [vmem:[%s4609_s3 + $0x160] sm:$0xff]   ;;  %v361_v18 = vmax.f32 %v3869_v6, 0.0  ;;  %v3921_v41 = vadd.f32 %v3633_v16, %v295_v36  ;;  %v589_v61 = vld [vmem:[#allocation2 + $0x4a] sm:$0xff] }
  0x34   : > { %2991 = vmatprep.subr.bf16.mxu1 %v3444_v39  ;;  %v324_v32 = vadd.f32 %v3633_v16, %v286_v20  ;;  %v355_v35 = vmax.f32 %v323_v29, 0.0  ;;  %v3460_v39 = vld [vmem:[%s4609_s3 + $0x120] sm:$0xff]   ;;  %v293_v20 = vmul.f32 %v3628_v14, %v255_v11 }
  0x35   : > { %3102 = vmatpush3.bf16.msra.mxu0 %v3457_v7  ;;  %v3872_v7 = vadd.f32 %v3633_v16, %v292_v3  ;;  %394 = vst [vmem:[#allocation2 + $0xc1] sm:$0xff] %v361_v18  ;;  %v3976_v3 = vld [vmem:[%s4609_s3 + $0x200] sm:$0xff]  }
  0x36   : > { %1801 = vmatmul.mubr.bf16.gmra.mrb[8].mxu0 %v3755_v53  ;;  %1897 = vmatmul.mubr.bf16.gmra.mrb[8].mxu1 %v3757_v54  ;;  %v356_v38 = vmax.f32 %v324_v32, 0.0  ;;  %388 = vst [vmem:[#allocation2 + $0x79] sm:$0xff] %v355_v35  ;;  %v3897_v25 = vadd.f32 %v3633_v16, %v293_v20  ;;  %v258_v32 = vld [vmem:[%s3620_s20 + $0x98] sm:$0xff]  ;;  %v3475_v20 = vld [vmem:[%s4609_s3 + $0x1e8] sm:$0xff]  }
  0x37   : > { %2992 = vmatpush3.bf16.msra.mxu1 %v3445_v45  ;;  %1808 = vmatprep.mubr.bf16.mxu0 %v3753_v52  ;;  %v463_v44 = vld [vmem:[#allocation2 + $0x60] sm:$0xff]  ;;  %v464_v45 = vld [vmem:[#allocation2 + $0x68] sm:$0xff]  ;;  %v296_v37 = vmul.f32 %v3628_v14, %v258_v32  ;;  %v3480_v32 = vld [vmem:[%s4609_s3 + $0x1b0] sm:$0xff]  }
  0x38   : > { %2993 = vmatprep.subr.bf16.mxu1 %v3446_v55  ;;  %1904 = vmatprep.mubr.bf16.mxu1 %v566_v56  ;;  %389 = vst [vmem:[#allocation2 + $0x81] sm:$0xff] %v356_v38  ;;  %v3830_v48 = vpack.c.bf16 %v464_v45, %v463_v44  ;;  %v3835_v50 = vpack.c.bf16 %v356_v38, %v355_v35  ;;  %v3459_v55 = vld [vmem:[%s4609_s3 + $0x1c8] sm:$0xff]   ;;  %v363_v35 = vmax.f32 %v3897_v25, 0.0  ;;  %v467_v38 = vld [vmem:[#allocation2 + $0x90] sm:$0xff]  ;;  %v3481_v25 = vld [vmem:[%s4609_s3 + $0x1f8] sm:$0xff]  }
  0x39   : > { %3103 = vmatprep.subr.bf16.mxu0 %v3458_v33  ;;  %v587_v33 = vld [vmem:[#allocation2 + $0x32] sm:$0xff]  ;;  %v591_v6 = vld [vmem:[#allocation2 + $0x62] sm:$0xff] }
  0x3a   : > { %3104 = vmatpush3.bf16.msra.mxu0 %v3460_v39  ;;  %v468_v39 = vld [vmem:[#allocation2 + $0x98] sm:$0xff]  ;;  %396 = vst [vmem:[#allocation2 + $0xd9] sm:$0xff] %v363_v35 }
  0x3b   : > { %2994 = vmatpush3.bf16.msra.mxu1 %v3447_v62  ;;  %v586_v62 = vld [vmem:[#allocation2 + $0x22] sm:$0xff]  ;;  %3105 = vmatprep.subr.bf16.mxu0 %v3462_v59  ;;  %v3934_v44 = vpack.c.bf16 %v468_v39, %v467_v38  ;;  %v270_v38 = vld [vmem:[%s3620_s20 + $0xf8] sm:$0xff] }
  0x3c   : > { %2995 = vmatprep.subr.bf16.mxu1 %v3448_v63  ;;  %v260_v59 = vld [vmem:[%s3620_s20 + $0xa8] sm:$0xff] }
  0x3d   : > { %v465_v5 = vld [vmem:[#allocation2 + $0x78] sm:$0xff]  ;;  %v298_v58 = vmul.f32 %v3628_v14, %v260_v59 }
  0x3e   : > { %1809 = vmatmul.mubr.bf16.gmra.mrb[12].mxu0 %v3783_v8  ;;  %1905 = vmatmul.mubr.bf16.gmra.mrb[12].mxu1 %v3786_v12 }
  0x3f   : > { %2996 = vmatpush3.bf16.msra.mxu1 %v3450_v13  ;;  %1816 = vmatprep.mubr.bf16.mxu0 %v3791_v15  ;;  %v466_v10 = vld [vmem:[#allocation2 + $0x80] sm:$0xff]  ;;  %v256_v13 = vld [vmem:[%s3620_s20 + $0x88] sm:$0xff]  ;;  %v3971_v2 = vadd.f32 %v3633_v16, %v298_v58 }
  0x40   : > { %2997 = vmatprep.subr.bf16.mxu1 %v3452_v19  ;;  %1945 = vmatprep.mubr.bf16.mxu1 %v3718_v22  ;;  %v289_v22 = vmul.f32 %v3628_v14, %v251_v42  ;;  %v3881_v17 = vpack.c.bf16 %v466_v10, %v465_v5  ;;  %v362_v19 = vmax.f32 %v3872_v7, 0.0  ;;  %v3924_v42 = vadd.f32 %v3633_v16, %v296_v37  ;;  %v3477_v7 = vld [vmem:[%s4609_s3 + $0x1a8] sm:$0xff]   ;;  %v269_v37 = vld [vmem:[%s3620_s20 + $0xf0] sm:$0xff] }
  0x41   : > { %3106 = vmatpush3.bf16.msra.mxu0 %v3463_v1  ;;  %v368_v5 = vmax.f32 %v3971_v2, 0.0  ;;  %v594_v36 = vld [vmem:[#allocation2 + $0x82] sm:$0xff]  ;;  %v307_v39 = vmul.f32 %v3628_v14, %v269_v37 }
  0x42   : > { %v3841_v56 = vadd.f32 %v3633_v16, %v289_v22  ;;  %395 = vst [vmem:[#allocation2 + $0xc9] sm:$0xff] %v362_v19  ;;  %3107 = vmatprep.subr.bf16.mxu0 %v3466_v26  ;;  %v366_v22 = vmax.f32 %v3924_v42, 0.0  ;;  %v596_v42 = vld [vmem:[#allocation2 + $0x9a] sm:$0xff] }
  0x43   : > { %2998 = vmatpush3.bf16.msra.mxu1 %v3453_v24  ;;  %v294_v24 = vmul.f32 %v3628_v14, %v256_v13  ;;  %v3992_v13 = vpack.c.bf16 %v362_v19, %v361_v18  ;;  %401 = vst [vmem:[#allocation2 + $0x111] sm:$0xff] %v368_v5  ;;  %v471_v18 = vld [vmem:[#allocation2 + $0xc0] sm:$0xff] }
  0x44   : > { %3207 = vmatprep.subr.bf16.mxu1 %v3454_v34  ;;  %v359_v63 = vmax.f32 %v3841_v56, 0.0  ;;  %v588_v34 = vld [vmem:[#allocation2 + $0x3a] sm:$0xff]  ;;  %399 = vst [vmem:[#allocation2 + $0xf9] sm:$0xff] %v366_v22 }
  0x45   : > { %v3903_v29 = vadd.f32 %v3633_v16, %v294_v24  ;;  %3108 = vmatpush3.bf16.msra.mxu0 %v3467_v30  ;;  %v3936_v45 = vpack.c.bf16 %v588_v34, %v587_v33  ;;  %v3478_v24 = vld [vmem:[%s4609_s3 + $0x1f0] sm:$0xff]   ;;  %v473_v33 = vld [vmem:[#allocation2 + $0xd8] sm:$0xff] }
  0x46   : > { %1817 = vmatmul.mubr.bf16.gmra.mrb[16].mxu0 %v3830_v48  ;;  %1946 = vmatmul.mubr.bf16.vlgmr.msra.gmra.mrb[16].mxu1 %v615_v46  ;;  %392 = vst [vmem:[#allocation2 + $0xa9] sm:$0xff] %v359_v63  ;;  %v365_v46 = vmax.f32 %v3921_v41, 0.0  ;;  %v593_v34 = vld [vmem:[#allocation2 + $0x7a] sm:$0xff] }
  0x47   : > { %3208 = vmatpush3.bf16.msra.mxu1 %v3455_v49  ;;  %1824 = vmatprep.mubr.bf16.mxu0 %v3835_v50  ;;  %v364_v40 = vmax.f32 %v3903_v29, 0.0  ;;  %v3471_v49 = vld [vmem:[%s4609_s3 + $0x138] sm:$0xff]  }
  0x48   : > { %1953 = vmatprep.mubr.bf16.mxu1 %v3755_v53  ;;  %3209 = vmatprep.subr.bf16.mxu1 %v3459_v55  ;;  %v3877_v53 = vpack.c.bf16 %v586_v62, %v585_v51  ;;  %v3950_v51 = vpack.c.bf16 %v360_v0, %v359_v63  ;;  %398 = vst [vmem:[#allocation2 + $0xf1] sm:$0xff] %v365_v46  ;;  %v259_v55 = vld [vmem:[%s3620_s20 + $0xa0] sm:$0xff]  ;;  %v590_v62 = vld [vmem:[#allocation2 + $0x52] sm:$0xff] }
  0x49   : > { %397 = vst [vmem:[#allocation2 + $0xe1] sm:$0xff] %v364_v40  ;;  %3109 = vmatprep.subr.bf16.mxu0 %v3470_v47  ;;  %v297_v56 = vmul.f32 %v3628_v14, %v259_v55  ;;  %v3472_v63 = vld [vmem:[%s4609_s3 + $0x1e0] sm:$0xff]   ;;  %v3985_v11 = vpack.c.bf16 %v590_v62, %v589_v61  ;;  %v472_v19 = vld [vmem:[#allocation2 + $0xc8] sm:$0xff]  ;;  %v4019_v31 = vpack.c.bf16 %v364_v40, %v363_v35  ;;  %v3483_v35 = vld [vmem:[%s4609_s3 + $0x1b8] sm:$0xff]  }
  0x4a   : > { %3110 = vmatpush3.bf16.msra.mxu0 %v3471_v49  ;;  %v4011_v26 = vpack.c.bf16 %v472_v19, %v471_v18  ;;  %v4046_v47 = vpack.c.bf16 %v366_v22, %v365_v46  ;;  %v345_v49 = vadd.f32 %v3633_v16, %v307_v39  ;;  %v599_v2 = vld [vmem:[#allocation2 + $0xc2] sm:$0xff] }
  0x4b   : > { %3210 = vmatpush3.bf16.msra.mxu1 %v3461_v4  ;;  %v3968_v1 = vadd.f32 %v3633_v16, %v297_v56  ;;  %3343 = vmatprep.subr.bf16.mxu0 %v3976_v3  ;;  %v669_v19 = vld [vmem:[#allocation2 + $0x120] sm:$0xff] }
  0x4c   : > { %3211 = vmatprep.subr.bf16.mxu1 %v3464_v9  ;;  %v3474_v9 = vld [vmem:[%s4609_s3 + $0x1a0] sm:$0xff]   ;;  %v377_v59 = vmax.f32 %v345_v49, 0.0 }
  0x4d   : > { %v469_v60 = vld [vmem:[#allocation2 + $0xa8] sm:$0xff]  ;;  %v470_v0 = vld [vmem:[#allocation2 + $0xb0] sm:$0xff]  ;;  %v367_v4 = vmax.f32 %v3968_v1, 0.0  ;;  %v612_v49 = vld [vmem:[#allocation2 + $0x15a] sm:$0xff] }
  0x4e   : > { %1825 = vmatmul.mubr.bf16.gmra.mrb[20].mxu0 %v3881_v17  ;;  %1954 = vmatmul.mubr.bf16.gmra.mrb[20].mxu1 %v3877_v53  ;;  %v3983_v10 = vpack.c.bf16 %v470_v0, %v469_v60  ;;  %v595_v60 = vld [vmem:[#allocation2 + $0x92] sm:$0xff]  ;;  %410 = vst [vmem:[#allocation2 + $0x181] sm:$0xff] %v377_v59  ;;  %v597_v62 = vld [vmem:[#allocation2 + $0xaa] sm:$0xff]  ;;  %v610_v39 = vld [vmem:[#allocation2 + $0x142] sm:$0xff] }
  0x4f   : > { %1832 = vmatprep.mubr.bf16.mxu0 %v3886_v21  ;;  %1961 = vmatprep.mubr.bf16.mxu1 %v3783_v8  ;;  %v3469_v8 = vld [vmem:[%s4609_s3 + $0x198] sm:$0xff]   ;;  %400 = vst [vmem:[#allocation2 + $0x109] sm:$0xff] %v367_v4  ;;  %v4056_v22 = vpack.c.bf16 %v596_v42, %v595_v60 }
  0x50   : > { %3212 = vmatpush3.bf16.msra.mxu1 %v3465_v23  ;;  %v592_v23 = vld [vmem:[#allocation2 + $0x6a] sm:$0xff]  ;;  %v474_v29 = vld [vmem:[#allocation2 + $0xe0] sm:$0xff]  ;;  %v476_v41 = vld [vmem:[#allocation2 + $0xf8] sm:$0xff] }
  0x51   : > { %3213 = vmatprep.subr.bf16.mxu1 %v3468_v43  ;;  %v4013_v30 = vpack.c.bf16 %v592_v23, %v591_v6  ;;  %v4037_v40 = vpack.c.bf16 %v474_v29, %v473_v33  ;;  %v4039_v43 = vpack.c.bf16 %v594_v36, %v593_v34  ;;  %v601_v6 = vld [vmem:[#allocation2 + $0xda] sm:$0xff]  ;;  %v670_v23 = vld [vmem:[#allocation2 + $0x128] sm:$0xff]  ;;  %v606_v34 = vld [vmem:[#allocation2 + $0x112] sm:$0xff] }
  0x52   : > { %v4105_v33 = vpack.c.bf16 %v670_v23, %v669_v19  ;;  %v3486_v36 = vld [vmem:[%s4609_s3 + $0x230] sm:$0xff]   ;;  %v607_v29 = vld [vmem:[#allocation2 + $0x122] sm:$0xff] }
  0x53   : > { %v736_v19 = vld [vmem:[#allocation2 + $0x141] sm:$0xff] }
  0x54   : > { %3214 = vmatpush3.bf16.msra.mxu1 %v3469_v8  ;;  %v308_v8 = vmul.f32 %v3628_v14, %v270_v38  ;;  %v475_v14 = vld [vmem:[#allocation2 + $0xf0] sm:$0xff]  ;;  %v609_v38 = vld [vmem:[#allocation2 + $0x13a] sm:$0xff] }
  0x55   : > { %3215 = vmatprep.subr.bf16.mxu1 %v3472_v63  ;;  %v4054_v46 = vpack.c.bf16 %v476_v41, %v475_v14  ;;  %v598_v63 = vld [vmem:[#allocation2 + $0xb2] sm:$0xff] }
  0x56   : > { %1833 = vmatmul.mubr.bf16.gmra.mrb[24].mxu0 %v3934_v44  ;;  %1962 = vmatmul.mubr.bf16.gmra.mrb[24].mxu1 %v3936_v45  ;;  %v346_v55 = vadd.f32 %v3633_v16, %v308_v8  ;;  %v4062_v16 = vpack.c.bf16 %v368_v5, %v367_v4  ;;  %v477_v56 = vld [vmem:[#allocation2 + $0x108] sm:$0xff]  ;;  %v478_v58 = vld [vmem:[#allocation2 + $0x110] sm:$0xff]  ;;  %v905_v41 = vld [vmem:[#allocation2 + $0x39] sm:$0xff] }
  0x57   : > { %1840 = vmatprep.mubr.bf16.mxu0 %v3950_v51  ;;  %1969 = vmatprep.mubr.bf16.mxu1 %v3830_v48  ;;  %v4068_v0 = vpack.c.bf16 %v478_v58, %v477_v56  ;;  %v600_v4 = vld [vmem:[#allocation2 + $0xca] sm:$0xff]  ;;  %v611_v8 = vld [vmem:[#allocation2 + $0x152] sm:$0xff] }
  0x58   : > { %3216 = vmatpush3.bf16.msra.mxu1 %v3474_v9  ;;  %v378_v61 = vmax.f32 %v346_v55, 0.0  ;;  %v4070_v9 = vpack.c.bf16 %v598_v63, %v597_v62  ;;  %v4078_v5 = vpack.c.bf16 %v600_v4, %v599_v2  ;;  %v677_v55 = vld [vmem:[#allocation2 + $0x180] sm:$0xff]  ;;  %v4138_v60 = vpack.c.bf16 %v612_v49, %v611_v8  ;;  %v904_v14 = vld [vmem:[#allocation2 + $0x31] sm:$0xff]  ;;  %v906_v63 = vld [vmem:[#allocation2 + $0x49] sm:$0xff] }
  0x59   : > { %3217 = vmatprep.subr.bf16.mxu1 %v3475_v20  ;;  %v3476_v20 = vld [vmem:[%s4609_s3 + $0x208] sm:$0xff]   ;;  %v936_v62 = vpack.c.bf16 %v905_v41, %v904_v14  ;;  %v840_v56 = vld [vmem:[#allocation2 + $0x30] sm:$0xff]  ;;  %v841_v58 = vld [vmem:[#allocation2 + $0x38] sm:$0xff] }
  0x5a   : > { %411 = vst [vmem:[#allocation2 + $0x189] sm:$0xff] %v378_v61  ;;  %v4072_v1 = vpack.c.bf16 %v378_v61, %v377_v59  ;;  %v613_v61 = vld [vmem:[#allocation2 + $0x16a] sm:$0xff]  ;;  %v872_v4 = vpack.c.bf16 %v841_v58, %v840_v56 }
  0x5b   : > { %v907_v2 = vld [vmem:[#allocation2 + $0x51] sm:$0xff] }
  0x5c   : > { %3218 = vmatpush3.bf16.msra.mxu1 %v3477_v7  ;;  %v602_v7 = vld [vmem:[#allocation2 + $0xe2] sm:$0xff] }
  0x5d   : > { %3219 = vmatprep.subr.bf16.mxu1 %v3478_v24  ;;  %v4091_v18 = vpack.c.bf16 %v602_v7, %v601_v6  ;;  %v3484_v24 = vld [vmem:[%s4609_s3 + $0x220] sm:$0xff]   ;;  %v842_v6 = vld [vmem:[#allocation2 + $0x48] sm:$0xff]  ;;  %v843_v7 = vld [vmem:[#allocation2 + $0x50] sm:$0xff] }
  0x5e   : > { %1841 = vmatmul.mubr.bf16.gmra.mrb[28].mxu0 %v3983_v10  ;;  %1970 = vmatmul.mubr.bf16.gmra.mrb[28].mxu1 %v3985_v11 }
  0x5f   : > { %1848 = vmatprep.mubr.bf16.mxu0 %v3992_v13  ;;  %1977 = vmatprep.mubr.bf16.mxu1 %v3881_v17 }
  0x60   : > { %3220 = vmatpush3.bf16.msra.mxu1 %v3480_v32 }
  0x61   : > { %3221 = vmatprep.subr.bf16.mxu1 %v3481_v25  ;;  %v678_v59 = vld [vmem:[#allocation2 + $0x188] sm:$0xff] }
  0x64   : > { %3222 = vmatpush3.bf16.msra.mxu1 %v3483_v35  ;;  %v608_v35 = vld [vmem:[#allocation2 + $0x12a] sm:$0xff] }
  0x65   : > { %v4126_v37 = vpack.c.bf16 %v608_v35, %v607_v29 }
  0x66   : > { %1849 = vmatmul.mubr.bf16.gmra.mrb[32].mxu0 %v4011_v26  ;;  %1978 = vmatmul.mubr.bf16.gmra.mrb[32].mxu1 %v4013_v30 }
  0x67   : > { %1856 = vmatprep.mubr.bf16.mxu0 %v4019_v31  ;;  %1985 = vmatprep.mubr.bf16.mxu1 %v3934_v44 }
  0x6e   : > { %1857 = vmatmul.mubr.bf16.gmra.mrb[36].mxu0 %v4037_v40  ;;  %1986 = vmatmul.mubr.bf16.gmra.mrb[36].mxu1 %v4039_v43 }
  0x6f   : > { %1864 = vmatprep.mubr.bf16.mxu0 %v4046_v47  ;;  %1993 = vmatprep.mubr.bf16.mxu1 %v3983_v10 }
  0x76   : > { %1865 = vmatmul.mubr.bf16.gmra.mrb[40].mxu0 %v4054_v46  ;;  %1994 = vmatmul.mubr.bf16.gmra.mrb[40].mxu1 %v4056_v22 }
  0x77   : > { %1872 = vmatprep.mubr.bf16.mxu0 %v4062_v16  ;;  %2001 = vmatprep.mubr.bf16.mxu1 %v4011_v26 }
  0x7e   : > { %1873 = vmatmul.mubr.bf16.gmra.mrb[44].mxu0 %v4068_v0  ;;  %2002 = vmatmul.mubr.bf16.gmra.mrb[44].mxu1 %v4070_v9 }
  0x7f   : > { %2009 = vmatprep.mubr.bf16.mxu1 %v4037_v40  ;;  %2106 = vmatprep.mubr.bf16.mxu0 %v3877_v53  ;;  %v3479_v53 = vld [vmem:[%s4609_s3 + $0x210] sm:$0xff]  }
  0x86   : > { %2010 = vmatmul.mubr.bf16.gmra.mrb[48].mxu1 %v4078_v5  ;;  %2107 = vmatmul.mubr.bf16.vlgmr.msra.gmra.mrb[48].mxu0 %v3684_v57  ;;  %v3482_v57 = vld [vmem:[%s4609_s3 + $0x218] sm:$0xff]  }
  0x87   : > { %3344 = vmatpush3.bf16.msra.mxu0 %v3976_v3  ;;  %2017 = vmatprep.mubr.bf16.mxu1 %v4054_v46  ;;  %v604_v3 = vld [vmem:[#allocation2 + $0xfa] sm:$0xff] }
  0x88   : > { %2114 = vmatprep.mubr.bf16.mxu0 %v3936_v45  ;;  %3345 = vmatprep.subr.bf16.mxu0 %v3476_v20  ;;  %v603_v45 = vld [vmem:[#allocation2 + $0xf2] sm:$0xff] }
  0x89   : > { %v4103_v32 = vpack.c.bf16 %v604_v3, %v603_v45  ;;  %v734_v45 = vld [vmem:[#allocation2 + $0x129] sm:$0xff] }
  0x8b   : > { %3346 = vmatpush3.bf16.msra.mxu0 %v3476_v20  ;;  %v937_v20 = vpack.c.bf16 %v907_v2, %v906_v63 }
  0x8c   : > { %3347 = vmatprep.subr.bf16.mxu0 %v3479_v53 }
  0x8e   : > { %2018 = vmatmul.mubr.bf16.gmra.mrb[52].mxu1 %v4091_v18  ;;  %2115 = vmatmul.mubr.bf16.gmra.mrb[52].mxu0 %v3724_v28  ;;  %v3485_v28 = vld [vmem:[%s4609_s3 + $0x228] sm:$0xff]  }
  0x8f   : > { %2025 = vmatprep.mubr.bf16.mxu1 %v4068_v0  ;;  %2122 = vmatprep.mubr.bf16.mxu0 %v3985_v11  ;;  %v605_v11 = vld [vmem:[#allocation2 + $0x10a] sm:$0xff] }
  0x90   : > { %3348 = vmatpush3.bf16.msra.mxu0 %v3479_v53  ;;  %v4117_v25 = vpack.c.bf16 %v606_v34, %v605_v11  ;;  %v873_v53 = vpack.c.bf16 %v843_v7, %v842_v6 }
  0x91   : > { %3349 = vmatprep.subr.bf16.mxu0 %v3482_v57 }
  0x94   : > { %3350 = vmatpush3.bf16.msra.mxu0 %v3482_v57  ;;  %v733_v57 = vld [vmem:[#allocation2 + $0x121] sm:$0xff] }
  0x95   : > { %3351 = vmatprep.subr.bf16.mxu0 %v3484_v24  ;;  %v4160_v3 = vpack.c.bf16 %v734_v45, %v733_v57 }
  0x96   : > { %2026 = vmatmul.mubr.bf16.gmra.mrb[56].mxu1 %v4103_v32  ;;  %2123 = vmatmul.mubr.bf16.gmra.mrb[56].mxu0 %v3753_v52  ;;  %v3487_v52 = vld [vmem:[%s4609_s3 + $0x238] sm:$0xff]  }
  0x97   : > { %2033 = vmatprep.mubr.bf16.mxu1 %v4105_v33  ;;  %2130 = vmatprep.mubr.bf16.mxu0 %v4013_v30 }
  0x98   : > { %3352 = vmatpush3.bf16.msra.mxu0 %v3484_v24 }
  0x99   : > { %3353 = vmatprep.subr.bf16.mxu0 %v3485_v28 }
  0x9c   : > { %3354 = vmatpush3.bf16.msra.mxu0 %v3485_v28  ;;  %v805_v28 = vld [vmem:[#allocation2 + $0x182] sm:$0xff] }
  0x9d   : > { %3355 = vmatprep.subr.bf16.mxu0 %v3486_v36 }
  0x9e   : > { %2034 = vmatmul.mubr.bf16.gmra.mrb[60].mxu1 %v4117_v25  ;;  %2131 = vmatmul.mubr.bf16.gmra.mrb[60].mxu0 %v3791_v15 }
  0x9f   : > { %2041 = vmatprep.mubr.bf16.mxu1 %v3722_v27  ;;  %2138 = vmatprep.mubr.bf16.mxu0 %v4039_v43  ;;  %v4132_v27 = vpack.c.bf16 %v610_v39, %v609_v38 }
  0xa0   : > { %3356 = vmatpush3.bf16.msra.mxu0 %v3486_v36 }
  0xa1   : > { %3357 = vmatprep.subr.bf16.mxu0 %v3487_v52 }
  0xa4   : > { %3358 = vmatpush3.bf16.msra.mxu0 %v3487_v52 }
  0xa6   : > { %2042 = vmatmul.mubr.bf16.gmra.mrb[64].mxu1 %v4126_v37  ;;  %2139 = vmatmul.mubr.bf16.gmra.mrb[64].mxu0 %v3835_v50 }
  0xa7   : > { %2049 = vmatprep.mubr.bf16.mxu1 %v3757_v54  ;;  %2146 = vmatprep.mubr.bf16.mxu0 %v4056_v22  ;;  %v4140_v54 = vpack.c.bf16 %v678_v59, %v677_v55 }
  0xae   : > { %2050 = vmatmul.mubr.bf16.gmra.mrb[68].mxu1 %v4132_v27  ;;  %2147 = vmatmul.mubr.bf16.gmra.mrb[68].mxu0 %v3886_v21 }
  0xaf   : > { %2057 = vmatprep.mubr.bf16.mxu1 %v3786_v12  ;;  %2154 = vmatprep.mubr.bf16.mxu0 %v4070_v9  ;;  %v614_v12 = vld [vmem:[#allocation2 + $0x172] sm:$0xff] }
  0xb0   : > { %v4146_v42 = vpack.c.bf16 %v614_v12, %v613_v61  ;;  %v971_v12 = vld [vmem:[#allocation2 + $0x52] sm:$0xff] }
  0xb6   : > { %2058 = vmatmul.mubr.bf16.gmra.mrb[72].mxu1 %v4138_v60  ;;  %2155 = vmatmul.mubr.bf16.gmra.mrb[72].mxu0 %v3950_v51 }
  0xb7   : > { %2065 = vmatprep.mubr.bf16.mxu1 %v4140_v54  ;;  %2162 = vmatprep.mubr.bf16.mxu0 %v4078_v5 }
  0xbe   : > { %2066 = vmatmul.mubr.bf16.gmra.mrb[76].mxu1 %v4146_v42  ;;  %2163 = vmatmul.mubr.bf16.gmra.mrb[76].mxu0 %v3992_v13 }
  0xbf   : > { %2170 = vmatprep.mubr.bf16.mxu0 %v4091_v18  ;;  %2267 = vmatprep.mubr.bf16.mxu1 %v936_v62 }
  0xc6   : > { %2171 = vmatmul.mubr.bf16.gmra.mrb[80].mxu0 %v4019_v31  ;;  %2268 = vmatmul.mubr.bf16.vlgmr.msra.gmra.mrb[80].mxu1 %v872_v4 }
  0xc7   : > { %2178 = vmatprep.mubr.bf16.mxu0 %v4103_v32  ;;  %2275 = vmatprep.mubr.bf16.mxu1 %v937_v20 }
  0xce   : > { %2179 = vmatmul.mubr.bf16.gmra.mrb[84].mxu0 %v4046_v47  ;;  %2276 = vmatmul.mubr.bf16.gmra.mrb[84].mxu1 %v873_v53 }
  0xcf   : > { %2186 = vmatprep.mubr.bf16.mxu0 %v4117_v25  ;;  %2283 = vmatprep.mubr.bf16.mxu1 %v3791_v15  ;;  %v735_v15 = vld [vmem:[#allocation2 + $0x139] sm:$0xff] }
  0xd0   : > { %v4166_v23 = vpack.c.bf16 %v736_v19, %v735_v15 }
  0xd6   : > { %2187 = vmatmul.mubr.bf16.gmra.mrb[88].mxu0 %v4062_v16  ;;  %2284 = vmatmul.mubr.bf16.gmra.mrb[88].mxu1 %v3830_v48  ;;  %v737_v48 = vld [vmem:[#allocation2 + $0x151] sm:$0xff] }
  0xd7   : > { %2194 = vmatprep.mubr.bf16.mxu0 %v4126_v37  ;;  %2291 = vmatprep.mubr.bf16.mxu1 %v3835_v50  ;;  %v738_v50 = vld [vmem:[#allocation2 + $0x159] sm:$0xff] }
  0xd8   : > { %v4172_v24 = vpack.c.bf16 %v738_v50, %v737_v48 }
  0xde   : > { %2195 = vmatmul.mubr.bf16.gmra.mrb[92].mxu0 %v4160_v3  ;;  %2292 = vmatmul.mubr.bf16.gmra.mrb[92].mxu1 %v3881_v17  ;;  %v739_v17 = vld [vmem:[#allocation2 + $0x169] sm:$0xff] }
  0xdf   : > { %2202 = vmatprep.mubr.bf16.mxu0 %v4132_v27  ;;  %2299 = vmatprep.mubr.bf16.mxu1 %v3886_v21  ;;  %v740_v21 = vld [vmem:[#allocation2 + $0x171] sm:$0xff] }
  0xe0   : > { %v4178_v11 = vpack.c.bf16 %v740_v21, %v739_v17 }
  0xe6   : > { %2203 = vmatmul.mubr.bf16.gmra.mrb[96].mxu0 %v4166_v23  ;;  %2300 = vmatmul.mubr.bf16.gmra.mrb[96].mxu1 %v3934_v44  ;;  %v806_v44 = vld [vmem:[#allocation2 + $0x18a] sm:$0xff] }
  0xe7   : > { %2210 = vmatprep.mubr.bf16.mxu0 %v4138_v60  ;;  %2307 = vmatprep.mubr.bf16.mxu1 %v3950_v51  ;;  %v4180_v34 = vpack.c.bf16 %v806_v44, %v805_v28  ;;  %v968_v51 = vld [vmem:[#allocation2 + $0x32] sm:$0xff] }
  0xee   : > { %2211 = vmatmul.mubr.bf16.gmra.mrb[100].mxu0 %v4172_v24  ;;  %2308 = vmatmul.mubr.bf16.gmra.mrb[100].mxu1 %v3983_v10  ;;  %v969_v10 = vld [vmem:[#allocation2 + $0x3a] sm:$0xff] }
  0xef   : > { %2218 = vmatprep.mubr.bf16.mxu0 %v4146_v42  ;;  %2315 = vmatprep.mubr.bf16.mxu1 %v3992_v13  ;;  %v1000_v49 = vpack.c.bf16 %v969_v10, %v968_v51 }
  0xf6   : > { %2219 = vmatmul.mubr.bf16.gmra.mrb[104].mxu0 %v4178_v11  ;;  %2316 = vmatmul.mubr.bf16.gmra.mrb[104].mxu1 %v4011_v26 }
  0xf7   : > { %2226 = vmatprep.mubr.bf16.mxu0 %v4180_v34  ;;  %2323 = vmatprep.mubr.bf16.mxu1 %v4019_v31  ;;  %v970_v31 = vld [vmem:[#allocation2 + $0x4a] sm:$0xff] }
  0xf8   : > { %v1001_v58 = vpack.c.bf16 %v971_v12, %v970_v31 }
  0xf9   : > { %v2887_v36 = vpop.f32.mrb[0].mxu0  ;;  %v2959_v13 = vpop.f32.mrb[0].mxu1 }
  0xfa   : > { %v2888_v52 = vpop.f32.mrb[1].mxu0  ;;  %v2960_v29 = vpop.f32.mrb[1].mxu1 }
  0xfb   : > { %v4186_v35 = vadd.f32 %v2888_v52, %v2887_v36  ;;  %v4188_v38 = vadd.f32 %v2960_v29, %v2959_v13  ;;  %v2890_v39 = vpop.f32.mrb[2].mxu0  ;;  %v2962_v8 = vpop.f32.mrb[2].mxu1 }
  0xfc   : > { %v2891_v55 = vpop.f32.mrb[3].mxu0  ;;  %v2963_v59 = vpop.f32.mrb[3].mxu1 }
  0xfd   : > { %v4190_v26 = vadd.f32 %v2891_v55, %v2890_v39  ;;  %v4192_v61 = vadd.f32 %v2963_v59, %v2962_v8 }
  0xfe   : > { %2227 = vmatmul.mubr.bf16.gmra.mrb[108].mxu0 %v4072_v1  ;;  %2324 = vmatmul.mubr.bf16.gmra.mrb[108].mxu1 %v4037_v40 }
  0xff   : > { %2331 = vmatprep.mubr.bf16.mxu1 %v4046_v47  ;;  %3359 = vmatprep.mubr.bf16.mxu0 %v1000_v49 }
 0x101   : > { %v2893_v14 = vpop.f32.mrb[4].mxu0  ;;  %v2965_v41 = vpop.f32.mrb[4].mxu1 }
 0x102   : > { %v2894_v62 = vpop.f32.mrb[5].mxu0  ;;  %v2966_v56 = vpop.f32.mrb[5].mxu1 }
 0x103   : > { %v4197_v63 = vadd.f32 %v2894_v62, %v2893_v14  ;;  %v4199_v2 = vadd.f32 %v2966_v56, %v2965_v41  ;;  %v2896_v4 = vpop.f32.mrb[6].mxu0  ;;  %v2968_v20 = vpop.f32.mrb[6].mxu1 }
 0x104   : > { %v2897_v6 = vpop.f32.mrb[7].mxu0  ;;  %v2969_v7 = vpop.f32.mrb[7].mxu1 }
 0x105   : > { %v4201_v53 = vadd.f32 %v2897_v6, %v2896_v4  ;;  %v4203_v40 = vadd.f32 %v2969_v7, %v2968_v20  ;;  %v864_v20 = vld [vmem:[#allocation2 + $0x150] sm:$0xff]  ;;  %v865_v6 = vld [vmem:[#allocation2 + $0x158] sm:$0xff] }
 0x106   : > { %2332 = vmatmul.mubr.bf16.gmra.mrb[112].mxu1 %v4054_v46  ;;  %3360 = vmatmul.mubr.bf16.vlgmr.msra.gmra.mrb[112].mxu0 %v1001_v58 }
 0x107   : > { %2339 = vmatprep.mubr.bf16.mxu1 %v4062_v16  ;;  %3363 = vmatprep.mubr.bf16.mxu0 %v4013_v30 }
 0x109   : > { %v2899_v47 = vpop.f32.mrb[8].mxu0  ;;  %v2971_v57 = vpop.f32.mrb[8].mxu1 }
 0x10a   : > { %v2900_v45 = vpop.f32.mrb[9].mxu0  ;;  %v2972_v15 = vpop.f32.mrb[9].mxu1 }
 0x10b   : > { %v4208_v19 = vadd.f32 %v2900_v45, %v2899_v47  ;;  %v4210_v48 = vadd.f32 %v2972_v15, %v2971_v57  ;;  %v2902_v50 = vpop.f32.mrb[10].mxu0  ;;  %v2974_v17 = vpop.f32.mrb[10].mxu1  ;;  %v884_v45 = vpack.c.bf16 %v865_v6, %v864_v20 }
 0x10c   : > { %v2903_v21 = vpop.f32.mrb[11].mxu0  ;;  %v2975_v28 = vpop.f32.mrb[11].mxu1 }
 0x10d   : > { %v4212_v44 = vadd.f32 %v2903_v21, %v2902_v50  ;;  %v4214_v46 = vadd.f32 %v2975_v28, %v2974_v17 }
 0x10e   : > { %2340 = vmatmul.mubr.bf16.gmra.mrb[116].mxu1 %v4068_v0  ;;  %3364 = vmatmul.mubr.bf16.gmra.mrb[116].mxu0 %v4039_v43  ;;  %v862_v43 = vld [vmem:[#allocation2 + $0x138] sm:$0xff] }
 0x10f   : > { %2347 = vmatprep.mubr.bf16.mxu1 %v4160_v3  ;;  %3367 = vmatprep.mubr.bf16.mxu0 %v4056_v22  ;;  %v863_v22 = vld [vmem:[#allocation2 + $0x140] sm:$0xff] }
 0x110   : > { %v883_v12 = vpack.c.bf16 %v863_v22, %v862_v43 }
 0x111   : > { %v2905_v30 = vpop.f32.mrb[12].mxu0  ;;  %v2977_v16 = vpop.f32.mrb[12].mxu1 }
 0x112   : > { %v2906_v51 = vpop.f32.mrb[13].mxu0  ;;  %v2978_v10 = vpop.f32.mrb[13].mxu1 }
 0x113   : > { %v4220_v36 = vadd.f32 %v2906_v51, %v2905_v30  ;;  %v4222_v13 = vadd.f32 %v2978_v10, %v2977_v16  ;;  %v2908_v52 = vpop.f32.mrb[14].mxu0  ;;  %v2980_v29 = vpop.f32.mrb[14].mxu1  ;;  %v866_v16 = vld [vmem:[#allocation2 + $0x168] sm:$0xff]  ;;  %v867_v51 = vld [vmem:[#allocation2 + $0x170] sm:$0xff] }
 0x114   : > { %v2909_v39 = vpop.f32.mrb[15].mxu0  ;;  %v2981_v8 = vpop.f32.mrb[15].mxu1 }
 0x115   : > { %v4224_v49 = vadd.f32 %v2909_v39, %v2908_v52  ;;  %v4226_v0 = vadd.f32 %v2981_v8, %v2980_v29  ;;  %v885_v39 = vpack.c.bf16 %v867_v51, %v866_v16 }
 0x116   : > { %2348 = vmatmul.mubr.bf16.gmra.mrb[120].mxu1 %v4105_v33  ;;  %3368 = vmatmul.mubr.bf16.gmra.mrb[120].mxu0 %v4070_v9 }
 0x117   : > { %2355 = vmatprep.mubr.bf16.mxu1 %v4166_v23  ;;  %3371 = vmatprep.mubr.bf16.mxu0 %v4078_v5 }
 0x119   : > { %v2911_v3 = vpop.f32.mrb[16].mxu0  ;;  %v2999_v55 = vpop.f32.mrb[16].mxu1 }
 0x11a   : > { %v2912_v59 = vpop.f32.mrb[17].mxu0  ;;  %v3000_v31 = vpop.f32.mrb[17].mxu1 }
 0x11b   : > { %v4232_v14 = vadd.f32 %v2912_v59, %v2911_v3  ;;  %v3001_v41 = vadd.f32 %v3000_v31, %v2999_v55  ;;  %v2914_v62 = vpop.f32.mrb[18].mxu0  ;;  %v3002_v56 = vpop.f32.mrb[18].mxu1  ;;  %v934_v31 = vld [vmem:[#allocation2 + $0x199] sm:$0xff] }
 0x11c   : > { %v2915_v58 = vpop.f32.mrb[19].mxu0  ;;  %v3003_v33 = vpop.f32.mrb[19].mxu1 }
 0x11d   : > { %v4235_v9 = vadd.f32 %v3001_v41, %v4186_v35  ;;  %v4237_v23 = vadd.f32 %v2915_v58, %v2914_v62  ;;  %v3004_v5 = vadd.f32 %v3003_v33, %v3002_v56 }
 0x11e   : > { %2356 = vmatmul.mubr.bf16.gmra.mrb[124].mxu1 %v883_v12  ;;  %3372 = vmatmul.mubr.bf16.gmra.mrb[124].mxu0 %v4091_v18  ;;  %v935_v12 = vld [vmem:[#allocation2 + $0x1a1] sm:$0xff] }
 0x11f   : > { %v4241_v4 = vadd.f32 %v3004_v5, %v4190_v26  ;;  %2363 = vmatprep.mubr.bf16.mxu1 %v4172_v24  ;;  %3375 = vmatprep.mubr.bf16.mxu0 %v4103_v32  ;;  %v951_v6 = vpack.c.bf16 %v935_v12, %v934_v31 }
 0x121   : > { %v2917_v7 = vpop.f32.mrb[20].mxu0  ;;  %v3005_v47 = vpop.f32.mrb[20].mxu1 }
 0x122   : > { %v2918_v57 = vpop.f32.mrb[21].mxu0  ;;  %v3006_v35 = vpop.f32.mrb[21].mxu1 }
 0x123   : > { %v4245_v15 = vadd.f32 %v2918_v57, %v2917_v7  ;;  %v3007_v50 = vadd.f32 %v3006_v35, %v3005_v47  ;;  %v2920_v17 = vpop.f32.mrb[22].mxu0  ;;  %v3008_v21 = vpop.f32.mrb[22].mxu1  ;;  %v870_v57 = vld [vmem:[#allocation2 + $0x198] sm:$0xff] }
 0x124   : > { %v2921_v18 = vpop.f32.mrb[23].mxu0  ;;  %v3009_v28 = vpop.f32.mrb[23].mxu1  ;;  %v998_v35 = vld [vmem:[#allocation2 + $0x19a] sm:$0xff] }
 0x125   : > { %v4248_v26 = vadd.f32 %v3007_v50, %v4197_v63  ;;  %v4250_v24 = vadd.f32 %v2921_v18, %v2920_v17  ;;  %v3010_v32 = vadd.f32 %v3009_v28, %v3008_v21  ;;  %v3488_v18 = vld [vmem:[#allocation2 + $0x8] sm:$0xff] }
 0x126   : > { %2364 = vmatmul.mubr.bf16.gmra.mrb[128].mxu1 %v884_v45  ;;  %3376 = vmatmul.mubr.bf16.gmra.mrb[128].mxu0 %v4117_v25  ;;  %v999_v45 = vld [vmem:[#allocation2 + $0x1a2] sm:$0xff]  ;;  %v887_v28 = vpack.c.bf16 %v3488_v18, %v870_v57 }
 0x127   : > { %v4254_v30 = vadd.f32 %v3010_v32, %v4201_v53  ;;  %2371 = vmatprep.mubr.bf16.mxu1 %v4178_v11  ;;  %3379 = vmatprep.mubr.bf16.mxu0 %v4126_v37  ;;  %v1015_v32 = vpack.c.bf16 %v999_v45, %v998_v35 }
 0x129   : > { %v2923_v10 = vpop.f32.mrb[24].mxu0  ;;  %v3011_v52 = vpop.f32.mrb[24].mxu1 }
 0x12a   : > { %v2924_v29 = vpop.f32.mrb[25].mxu0  ;;  %v3012_v63 = vpop.f32.mrb[25].mxu1 }
 0x12b   : > { %v4258_v8 = vadd.f32 %v2924_v29, %v2923_v10  ;;  %v3013_v43 = vadd.f32 %v3012_v63, %v3011_v52  ;;  %v2926_v22 = vpop.f32.mrb[26].mxu0  ;;  %v3014_v3 = vpop.f32.mrb[26].mxu1 }
 0x12c   : > { %v2927_v25 = vpop.f32.mrb[27].mxu0  ;;  %v3015_v55 = vpop.f32.mrb[27].mxu1 }
 0x12d   : > { %v4261_v53 = vadd.f32 %v3013_v43, %v4208_v19  ;;  %v4263_v11 = vadd.f32 %v2927_v25, %v2926_v22  ;;  %v3016_v37 = vadd.f32 %v3015_v55, %v3014_v3 }
 0x12e   : > { %2372 = vmatmul.mubr.bf16.gmra.mrb[132].mxu1 %v885_v39  ;;  %3380 = vmatmul.mubr.bf16.gmra.mrb[132].mxu0 %v4132_v27 }
 0x12f   : > { %v4267_v59 = vadd.f32 %v3016_v37, %v4212_v44  ;;  %2379 = vmatprep.mubr.bf16.mxu1 %v4072_v1  ;;  %3383 = vmatprep.mubr.bf16.mxu0 %v4138_v60 }
 0x131   : > { %v2929_v41 = vpop.f32.mrb[28].mxu0  ;;  %v3017_v62 = vpop.f32.mrb[28].mxu1 }
 0x132   : > { %v2930_v56 = vpop.f32.mrb[29].mxu0  ;;  %v3018_v19 = vpop.f32.mrb[29].mxu1 }
 0x133   : > { %v4271_v58 = vadd.f32 %v2930_v56, %v2929_v41  ;;  %v3019_v33 = vadd.f32 %v3018_v19, %v3017_v62  ;;  %v2932_v5 = vpop.f32.mrb[30].mxu0  ;;  %v3020_v20 = vpop.f32.mrb[30].mxu1 }
 0x134   : > { %v2933_v27 = vpop.f32.mrb[31].mxu0  ;;  %v3021_v7 = vpop.f32.mrb[31].mxu1 }
 0x135   : > { %v4274_v44 = vadd.f32 %v3019_v33, %v4220_v36  ;;  %v4276_v1 = vadd.f32 %v2933_v27, %v2932_v5  ;;  %v3022_v60 = vadd.f32 %v3021_v7, %v3020_v20 }
 0x136   : > { %2380 = vmatmul.mubr.bf16.gmra.mrb[136].mxu1 %v4140_v54  ;;  %3384 = vmatmul.mubr.bf16.gmra.mrb[136].mxu0 %v4146_v42 }
 0x137   : > { %v4281_v47 = vadd.f32 %v3022_v60, %v4224_v49  ;;  %2387 = vmatprep.mubr.bf16.mxu1 %v951_v6  ;;  %3387 = vmatprep.mubr.bf16.mxu0 %v4180_v34 }
 0x139   : > { %v2935_v50 = vpop.f32.mrb[32].mxu0  ;;  %v3023_v17 = vpop.f32.mrb[32].mxu1 }
 0x13a   : > { %v2936_v36 = vpop.f32.mrb[33].mxu0  ;;  %v3024_v21 = vpop.f32.mrb[33].mxu1 }
 0x13b   : > { %v4284_v16 = vadd.f32 %v2936_v36, %v2935_v50  ;;  %v3025_v54 = vadd.f32 %v3024_v21, %v3023_v17  ;;  %v2938_v42 = vpop.f32.mrb[34].mxu0  ;;  %v3026_v51 = vpop.f32.mrb[34].mxu1 }
 0x13c   : > { %v2939_v49 = vpop.f32.mrb[35].mxu0  ;;  %v3027_v10 = vpop.f32.mrb[35].mxu1 }
 0x13d   : > { %v4287_v52 = vadd.f32 %v3025_v54, %v4232_v14  ;;  %v2940_v34 = vadd.f32 %v2939_v49, %v2938_v42  ;;  %v3028_v29 = vadd.f32 %v3027_v10, %v3026_v51 }
 0x13e   : > { %2388 = vmatmul.mubr.bf16.gmra.mrb[140].mxu1 %v887_v28  ;;  %3388 = vmatmul.mubr.bf16.gmra.mrb[140].mxu0 %v1015_v32 }
 0x13f   : > { %v4290_v63 = vadd.f32 %v3028_v29, %v4237_v23 }
 0x141   : > { %v2941_v39 = vpop.f32.mrb[36].mxu0  ;;  %v3029_v43 = vpop.f32.mrb[36].mxu1 }
 0x142   : > { %v2942_v22 = vpop.f32.mrb[37].mxu0  ;;  %v3030_v3 = vpop.f32.mrb[37].mxu1 }
 0x143   : > { %v4292_v25 = vadd.f32 %v2942_v22, %v2941_v39  ;;  %v3031_v55 = vadd.f32 %v3030_v3, %v3029_v43  ;;  %v2944_v37 = vpop.f32.mrb[38].mxu0  ;;  %v3032_v31 = vpop.f32.mrb[38].mxu1 }
 0x144   : > { %v2945_v12 = vpop.f32.mrb[39].mxu0  ;;  %v3033_v41 = vpop.f32.mrb[39].mxu1 }
 0x145   : > { %v4295_v14 = vadd.f32 %v3031_v55, %v4245_v15  ;;  %v2946_v62 = vadd.f32 %v2945_v12, %v2944_v37  ;;  %v3034_v56 = vadd.f32 %v3033_v41, %v3032_v31 }
 0x147   : > { %v4298_v19 = vadd.f32 %v3034_v56, %v4250_v24 }
 0x149   : > { %v2947_v23 = vpop.f32.mrb[40].mxu0  ;;  %v3035_v33 = vpop.f32.mrb[40].mxu1 }
 0x14a   : > { %v2948_v5 = vpop.f32.mrb[41].mxu0  ;;  %v3036_v20 = vpop.f32.mrb[41].mxu1 }
 0x14b   : > { %v4300_v6 = vadd.f32 %v2948_v5, %v2947_v23  ;;  %v3037_v27 = vadd.f32 %v3036_v20, %v3035_v33  ;;  %v2950_v7 = vpop.f32.mrb[42].mxu0  ;;  %v3038_v60 = vpop.f32.mrb[42].mxu1 }
 0x14c   : > { %v2951_v57 = vpop.f32.mrb[43].mxu0  ;;  %v3039_v35 = vpop.f32.mrb[43].mxu1 }
 0x14d   : > { %v4303_v45 = vadd.f32 %v3037_v27, %v4258_v8  ;;  %v4305_v15 = vadd.f32 %v2951_v57, %v2950_v7  ;;  %v3040_v50 = vadd.f32 %v3039_v35, %v3038_v60 }
 0x14f   : > { %v4308_v24 = vadd.f32 %v3040_v50, %v4263_v11 }
 0x151   : > { %v2953_v17 = vpop.f32.mrb[44].mxu0  ;;  %v3041_v36 = vpop.f32.mrb[44].mxu1 }
 0x152   : > { %v2954_v21 = vpop.f32.mrb[45].mxu0  ;;  %v3042_v18 = vpop.f32.mrb[45].mxu1 }
 0x153   : > { %v4310_v28 = vadd.f32 %v2954_v21, %v2953_v17  ;;  %v3043_v32 = vadd.f32 %v3042_v18, %v3041_v36  ;;  %v2956_v54 = vpop.f32.mrb[46].mxu0  ;;  %v3044_v42 = vpop.f32.mrb[46].mxu1 }
 0x154   : > { %v2957_v51 = vpop.f32.mrb[47].mxu0  ;;  %v3045_v49 = vpop.f32.mrb[47].mxu1 }
 0x155   : > { %v4313_v8 = vadd.f32 %v3043_v32, %v4271_v58  ;;  %v4315_v10 = vadd.f32 %v2957_v51, %v2956_v54  ;;  %v3046_v29 = vadd.f32 %v3045_v49, %v3044_v42 }
 0x157   : > { %v4318_v11 = vadd.f32 %v3046_v29, %v4276_v1 }
 0x159   : > { %v3047_v39 = vpop.f32.mrb[48].mxu1  ;;  %v3111_v43 = vpop.f32.mrb[48].mxu0 }
 0x15a   : > { %v3048_v22 = vpop.f32.mrb[49].mxu1  ;;  %v3112_v3 = vpop.f32.mrb[49].mxu0 }
 0x15b   : > { %v3049_v55 = vadd.f32 %v3048_v22, %v3047_v39  ;;  %v3113_v37 = vadd.f32 %v3112_v3, %v3111_v43  ;;  %v3050_v31 = vpop.f32.mrb[50].mxu1  ;;  %v3114_v12 = vpop.f32.mrb[50].mxu0 }
 0x15c   : > { %v3051_v41 = vpop.f32.mrb[51].mxu1  ;;  %v3115_v56 = vpop.f32.mrb[51].mxu0 }
 0x15d   : > { %v4321_v23 = vadd.f32 %v3049_v55, %v4284_v16  ;;  %v4324_v58 = vadd.f32 %v3113_v37, %v4235_v9  ;;  %v3052_v33 = vadd.f32 %v3051_v41, %v3050_v31  ;;  %v3116_v5 = vadd.f32 %v3115_v56, %v3114_v12 }
 0x15f   : > { %v4326_v1 = vadd.f32 %v3052_v33, %v2940_v34  ;;  %v4329_v20 = vadd.f32 %v3116_v5, %v4241_v4 }
 0x161   : > { %v3053_v27 = vpop.f32.mrb[52].mxu1  ;;  %v3117_v7 = vpop.f32.mrb[52].mxu0 }
 0x162   : > { %v3054_v60 = vpop.f32.mrb[53].mxu1  ;;  %v3118_v57 = vpop.f32.mrb[53].mxu0 }
 0x163   : > { %v3055_v35 = vadd.f32 %v3054_v60, %v3053_v27  ;;  %v3119_v50 = vadd.f32 %v3118_v57, %v3117_v7  ;;  %v3056_v17 = vpop.f32.mrb[54].mxu1  ;;  %v3120_v36 = vpop.f32.mrb[54].mxu0 }
 0x164   : > { %v3057_v16 = vpop.f32.mrb[55].mxu1  ;;  %v3121_v21 = vpop.f32.mrb[55].mxu0 }
 0x165   : > { %v4332_v9 = vadd.f32 %v3055_v35, %v4292_v25  ;;  %v4335_v18 = vadd.f32 %v3119_v50, %v4248_v26  ;;  %v3058_v34 = vadd.f32 %v3057_v16, %v3056_v17  ;;  %v3122_v32 = vadd.f32 %v3121_v21, %v3120_v36 }
 0x167   : > { %v4337_v4 = vadd.f32 %v3058_v34, %v2946_v62  ;;  %v4340_v54 = vadd.f32 %v3122_v32, %v4254_v30 }
 0x169   : > { %v3059_v42 = vpop.f32.mrb[56].mxu1  ;;  %v3123_v51 = vpop.f32.mrb[56].mxu0 }
 0x16a   : > { %v3060_v49 = vpop.f32.mrb[57].mxu1  ;;  %v3124_v29 = vpop.f32.mrb[57].mxu0 }
 0x16b   : > { %v3061_v39 = vadd.f32 %v3060_v49, %v3059_v42  ;;  %v3125_v43 = vadd.f32 %v3124_v29, %v3123_v51  ;;  %v3062_v22 = vpop.f32.mrb[58].mxu1  ;;  %v3126_v3 = vpop.f32.mrb[58].mxu0 }
 0x16c   : > { %v3063_v25 = vpop.f32.mrb[59].mxu1  ;;  %v3127_v55 = vpop.f32.mrb[59].mxu0 }
 0x16d   : > { %v4343_v26 = vadd.f32 %v3061_v39, %v4300_v6  ;;  %v4346_v37 = vadd.f32 %v3125_v43, %v4261_v53  ;;  %v3064_v62 = vadd.f32 %v3063_v25, %v3062_v22  ;;  %v3128_v31 = vadd.f32 %v3127_v55, %v3126_v3 }
 0x16f   : > { %v4349_v30 = vadd.f32 %v3064_v62, %v4305_v15  ;;  %v4352_v12 = vadd.f32 %v3128_v31, %v4267_v59 }
 0x171   : > { %v3065_v41 = vpop.f32.mrb[60].mxu1  ;;  %v3129_v56 = vpop.f32.mrb[60].mxu0 }
 0x172   : > { %v3066_v33 = vpop.f32.mrb[61].mxu1  ;;  %v3130_v5 = vpop.f32.mrb[61].mxu0 }
 0x173   : > { %v3067_v27 = vadd.f32 %v3066_v33, %v3065_v41  ;;  %v3131_v7 = vadd.f32 %v3130_v5, %v3129_v56  ;;  %v3068_v60 = vpop.f32.mrb[62].mxu1  ;;  %v3132_v6 = vpop.f32.mrb[62].mxu0 }
 0x174   : > { %v3069_v57 = vpop.f32.mrb[63].mxu1  ;;  %v3133_v35 = vpop.f32.mrb[63].mxu0 }
 0x175   : > { %v4355_v53 = vadd.f32 %v3067_v27, %v4310_v28  ;;  %v4358_v50 = vadd.f32 %v3131_v7, %v4274_v44  ;;  %v3070_v15 = vadd.f32 %v3069_v57, %v3068_v60  ;;  %v3134_v17 = vadd.f32 %v3133_v35, %v3132_v6 }
 0x177   : > { %v4361_v59 = vadd.f32 %v3070_v15, %v4315_v10  ;;  %v4364_v36 = vadd.f32 %v3134_v17, %v4281_v47 }
 0x179   : > { %v3071_v16 = vpop.f32.mrb[64].mxu1  ;;  %v3135_v21 = vpop.f32.mrb[64].mxu0 }
 0x17a   : > { %v3072_v34 = vpop.f32.mrb[65].mxu1  ;;  %v3136_v32 = vpop.f32.mrb[65].mxu0 }
 0x17b   : > { %v3073_v42 = vadd.f32 %v3072_v34, %v3071_v16  ;;  %v3137_v51 = vadd.f32 %v3136_v32, %v3135_v21  ;;  %v3074_v49 = vpop.f32.mrb[66].mxu1  ;;  %v3138_v28 = vpop.f32.mrb[66].mxu0 }
 0x17c   : > { %v3075_v29 = vpop.f32.mrb[67].mxu1  ;;  %v3139_v39 = vpop.f32.mrb[67].mxu0 }
 0x17d   : > { %v4367_v44 = vadd.f32 %v3073_v42, %v4188_v38  ;;  %v4370_v43 = vadd.f32 %v3137_v51, %v4287_v52  ;;  %v3076_v10 = vadd.f32 %v3075_v29, %v3074_v49  ;;  %v3140_v22 = vadd.f32 %v3139_v39, %v3138_v28 }
 0x17f   : > { %v4373_v47 = vadd.f32 %v3076_v10, %v4192_v61  ;;  %v4376_v3 = vadd.f32 %v3140_v22, %v4290_v63 }
 0x181   : > { %v3077_v25 = vpop.f32.mrb[68].mxu1  ;;  %v3141_v55 = vpop.f32.mrb[68].mxu0 }
 0x182   : > { %v3078_v62 = vpop.f32.mrb[69].mxu1  ;;  %v3142_v31 = vpop.f32.mrb[69].mxu0 }
 0x183   : > { %v3079_v41 = vadd.f32 %v3078_v62, %v3077_v25  ;;  %v3143_v56 = vadd.f32 %v3142_v31, %v3141_v55  ;;  %v3080_v33 = vpop.f32.mrb[70].mxu1  ;;  %v3144_v38 = vpop.f32.mrb[70].mxu0 }
 0x184   : > { %v3081_v5 = vpop.f32.mrb[71].mxu1  ;;  %v3145_v27 = vpop.f32.mrb[71].mxu0 }
 0x185   : > { %v4379_v52 = vadd.f32 %v3079_v41, %v4199_v2  ;;  %v4382_v7 = vadd.f32 %v3143_v56, %v4295_v14  ;;  %v3082_v61 = vadd.f32 %v3081_v5, %v3080_v33  ;;  %v3146_v60 = vadd.f32 %v3145_v27, %v3144_v38 }
 0x187   : > { %v4385_v63 = vadd.f32 %v3082_v61, %v4203_v40  ;;  %v4388_v6 = vadd.f32 %v3146_v60, %v4298_v19 }
 0x189   : > { %v3083_v57 = vpop.f32.mrb[72].mxu1  ;;  %v3147_v35 = vpop.f32.mrb[72].mxu0 }
 0x18a   : > { %v3084_v15 = vpop.f32.mrb[73].mxu1  ;;  %v3148_v17 = vpop.f32.mrb[73].mxu0 }
 0x18b   : > { %v3085_v16 = vadd.f32 %v3084_v15, %v3083_v57  ;;  %v3149_v21 = vadd.f32 %v3148_v17, %v3147_v35  ;;  %v3086_v34 = vpop.f32.mrb[74].mxu1  ;;  %v3150_v2 = vpop.f32.mrb[74].mxu0 }
 0x18c   : > { %v3087_v32 = vpop.f32.mrb[75].mxu1  ;;  %v3151_v42 = vpop.f32.mrb[75].mxu0 }
 0x18d   : > { %v4391_v14 = vadd.f32 %v3085_v16, %v4210_v48  ;;  %v4394_v51 = vadd.f32 %v3149_v21, %v4303_v45  ;;  %v3088_v40 = vadd.f32 %v3087_v32, %v3086_v34  ;;  %v3152_v49 = vadd.f32 %v3151_v42, %v3150_v2 }
 0x18f   : > { %v4397_v19 = vadd.f32 %v3088_v40, %v4214_v46  ;;  %v4400_v28 = vadd.f32 %v3152_v49, %v4308_v24 }
 0x191   : > { %v3089_v29 = vpop.f32.mrb[76].mxu1  ;;  %v3153_v39 = vpop.f32.mrb[76].mxu0 }
 0x192   : > { %v3090_v10 = vpop.f32.mrb[77].mxu1  ;;  %v3154_v22 = vpop.f32.mrb[77].mxu0 }
 0x193   : > { %v3091_v25 = vadd.f32 %v3090_v10, %v3089_v29  ;;  %v3155_v55 = vadd.f32 %v3154_v22, %v3153_v39  ;;  %v3092_v62 = vpop.f32.mrb[78].mxu1  ;;  %v3156_v48 = vpop.f32.mrb[78].mxu0 }
 0x194   : > { %v3093_v31 = vpop.f32.mrb[79].mxu1  ;;  %v3157_v41 = vpop.f32.mrb[79].mxu0 }
 0x195   : > { %v4403_v45 = vadd.f32 %v3091_v25, %v4222_v13  ;;  %v4406_v56 = vadd.f32 %v3155_v55, %v4313_v8  ;;  %v3094_v46 = vadd.f32 %v3093_v31, %v3092_v62  ;;  %v3158_v33 = vadd.f32 %v3157_v41, %v3156_v48 }
 0x197   : > { %v4409_v24 = vadd.f32 %v3094_v46, %v4226_v0  ;;  %v4412_v38 = vadd.f32 %v3158_v33, %v4318_v11 }
 0x199   : > { %v3159_v5 = vpop.f32.mrb[80].mxu0  ;;  %v3223_v27 = vpop.f32.mrb[80].mxu1 }
 0x19a   : > { %v3160_v61 = vpop.f32.mrb[81].mxu0  ;;  %v3224_v60 = vpop.f32.mrb[81].mxu1 }
 0x19b   : > { %v3161_v57 = vadd.f32 %v3160_v61, %v3159_v5  ;;  %v3225_v35 = vadd.f32 %v3224_v60, %v3223_v27  ;;  %v3162_v15 = vpop.f32.mrb[82].mxu0  ;;  %v3226_v13 = vpop.f32.mrb[82].mxu1 }
 0x19c   : > { %v3163_v17 = vpop.f32.mrb[83].mxu0  ;;  %v3227_v16 = vpop.f32.mrb[83].mxu1 }
 0x19d   : > { %v4415_v8 = vadd.f32 %v3161_v57, %v4321_v23  ;;  %v3164_v21 = vadd.f32 %v3163_v17, %v3162_v15  ;;  %v3228_v34 = vadd.f32 %v3227_v16, %v3226_v13  ;;  %v4418_v0 = vadd.f32 %v3225_v35, %v4324_v58 }
 0x19f   : > { %v4421_v11 = vadd.f32 %v3164_v21, %v4326_v1  ;;  %v4424_v2 = vadd.f32 %v3228_v34, %v4329_v20 }
 0x1a1   : > { %v3165_v32 = vpop.f32.mrb[84].mxu0  ;;  %v3229_v42 = vpop.f32.mrb[84].mxu1 }
 0x1a2   : > { %v3166_v40 = vpop.f32.mrb[85].mxu0  ;;  %v3230_v49 = vpop.f32.mrb[85].mxu1 }
 0x1a3   : > { %v3167_v29 = vadd.f32 %v3166_v40, %v3165_v32  ;;  %v3231_v39 = vadd.f32 %v3230_v49, %v3229_v42  ;;  %v3168_v10 = vpop.f32.mrb[86].mxu0  ;;  %v3232_v23 = vpop.f32.mrb[86].mxu1 }
 0x1a4   : > { %v3169_v22 = vpop.f32.mrb[87].mxu0  ;;  %v3233_v25 = vpop.f32.mrb[87].mxu1 }
 0x1a5   : > { %v4427_v55 = vadd.f32 %v3167_v29, %v4332_v9  ;;  %v3170_v58 = vadd.f32 %v3169_v22, %v3168_v10  ;;  %v3234_v62 = vadd.f32 %v3233_v25, %v3232_v23  ;;  %v4430_v1 = vadd.f32 %v3231_v39, %v4335_v18 }
 0x1a7   : > { %v4433_v20 = vadd.f32 %v3170_v58, %v4337_v4  ;;  %v4436_v48 = vadd.f32 %v3234_v62, %v4340_v54 }
 0x1a9   : > { %v3171_v31 = vpop.f32.mrb[88].mxu0  ;;  %v3235_v41 = vpop.f32.mrb[88].mxu1 }
 0x1aa   : > { %v3172_v46 = vpop.f32.mrb[89].mxu0  ;;  %v3236_v33 = vpop.f32.mrb[89].mxu1 }
 0x1ab   : > { %v3173_v5 = vadd.f32 %v3172_v46, %v3171_v31  ;;  %v3237_v27 = vadd.f32 %v3236_v33, %v3235_v41  ;;  %v3174_v61 = vpop.f32.mrb[90].mxu0  ;;  %v3238_v9 = vpop.f32.mrb[90].mxu1 }
 0x1ac   : > { %v3175_v60 = vpop.f32.mrb[91].mxu0  ;;  %v3239_v57 = vpop.f32.mrb[91].mxu1 }
 0x1ad   : > { %v4439_v35 = vadd.f32 %v3173_v5, %v4343_v26  ;;  %v3176_v18 = vadd.f32 %v3175_v60, %v3174_v61  ;;  %v3240_v15 = vadd.f32 %v3239_v57, %v3238_v9  ;;  %v4442_v4 = vadd.f32 %v3237_v27, %v4346_v37 }
 0x1af   : > { %v4445_v54 = vadd.f32 %v3176_v18, %v4349_v30  ;;  %v4448_v13 = vadd.f32 %v3240_v15, %v4352_v12 }
 0x1b1   : > { %v3177_v17 = vpop.f32.mrb[92].mxu0  ;;  %v3241_v16 = vpop.f32.mrb[92].mxu1 }
 0x1b2   : > { %v3178_v21 = vpop.f32.mrb[93].mxu0  ;;  %v3242_v34 = vpop.f32.mrb[93].mxu1 }
 0x1b3   : > { %v3179_v32 = vadd.f32 %v3178_v21, %v3177_v17  ;;  %v3243_v42 = vadd.f32 %v3242_v34, %v3241_v16  ;;  %v3180_v40 = vpop.f32.mrb[94].mxu0  ;;  %v3244_v26 = vpop.f32.mrb[94].mxu1 }
 0x1b4   : > { %v3181_v49 = vpop.f32.mrb[95].mxu0  ;;  %v3245_v29 = vpop.f32.mrb[95].mxu1 }
 0x1b5   : > { %v4451_v39 = vadd.f32 %v3179_v32, %v4355_v53  ;;  %v3182_v37 = vadd.f32 %v3181_v49, %v3180_v40  ;;  %v3246_v10 = vadd.f32 %v3245_v29, %v3244_v26  ;;  %v4454_v30 = vadd.f32 %v3243_v42, %v4358_v50 }
 0x1b7   : > { %v4457_v12 = vadd.f32 %v3182_v37, %v4361_v59  ;;  %v4460_v23 = vadd.f32 %v3246_v10, %v4364_v36 }
 0x1b9   : > { %v3183_v22 = vpop.f32.mrb[96].mxu0  ;;  %v3247_v25 = vpop.f32.mrb[96].mxu1 }
 0x1ba   : > { %v3184_v58 = vpop.f32.mrb[97].mxu0  ;;  %v3248_v62 = vpop.f32.mrb[97].mxu1 }
 0x1bb   : > { %v3185_v31 = vadd.f32 %v3184_v58, %v3183_v22  ;;  %v3249_v41 = vadd.f32 %v3248_v62, %v3247_v25  ;;  %v3186_v46 = vpop.f32.mrb[98].mxu0  ;;  %v3250_v53 = vpop.f32.mrb[98].mxu1 }
 0x1bc   : > { %v3187_v33 = vpop.f32.mrb[99].mxu0  ;;  %v3251_v5 = vpop.f32.mrb[99].mxu1 }
 0x1bd   : > { %v4463_v27 = vadd.f32 %v3185_v31, %v4367_v44  ;;  %v3188_v50 = vadd.f32 %v3187_v33, %v3186_v46  ;;  %v3252_v61 = vadd.f32 %v3251_v5, %v3250_v53  ;;  %v4466_v59 = vadd.f32 %v3249_v41, %v4370_v43 }
 0x1bf   : > { %v4469_v36 = vadd.f32 %v3188_v50, %v4373_v47  ;;  %v4472_v9 = vadd.f32 %v3252_v61, %v4376_v3 }
 0x1c1   : > { %v3189_v60 = vpop.f32.mrb[100].mxu0  ;;  %v3253_v57 = vpop.f32.mrb[100].mxu1 }
 0x1c2   : > { %v3190_v18 = vpop.f32.mrb[101].mxu0  ;;  %v3254_v15 = vpop.f32.mrb[101].mxu1 }
 0x1c3   : > { %v3191_v17 = vadd.f32 %v3190_v18, %v3189_v60  ;;  %v3255_v16 = vadd.f32 %v3254_v15, %v3253_v57  ;;  %v3192_v21 = vpop.f32.mrb[102].mxu0  ;;  %v3256_v44 = vpop.f32.mrb[102].mxu1 }
 0x1c4   : > { %v3193_v34 = vpop.f32.mrb[103].mxu0  ;;  %v3257_v32 = vpop.f32.mrb[103].mxu1 }
 0x1c5   : > { %v4475_v42 = vadd.f32 %v3191_v17, %v4379_v52  ;;  %v3194_v43 = vadd.f32 %v3193_v34, %v3192_v21  ;;  %v3258_v40 = vadd.f32 %v3257_v32, %v3256_v44  ;;  %v4478_v47 = vadd.f32 %v3255_v16, %v4382_v7 }
 0x1c7   : > { %v4481_v3 = vadd.f32 %v3194_v43, %v4385_v63  ;;  %v4484_v26 = vadd.f32 %v3258_v40, %v4388_v6 }
 0x1c9   : > { %v3195_v49 = vpop.f32.mrb[104].mxu0  ;;  %v3259_v29 = vpop.f32.mrb[104].mxu1 }
 0x1ca   : > { %v3196_v37 = vpop.f32.mrb[105].mxu0  ;;  %v3260_v10 = vpop.f32.mrb[105].mxu1 }
 0x1cb   : > { %v3197_v22 = vadd.f32 %v3196_v37, %v3195_v49  ;;  %v3261_v25 = vadd.f32 %v3260_v10, %v3259_v29  ;;  %v3198_v58 = vpop.f32.mrb[106].mxu0  ;;  %v3262_v52 = vpop.f32.mrb[106].mxu1 }
 0x1cc   : > { %v3199_v62 = vpop.f32.mrb[107].mxu0  ;;  %v3263_v31 = vpop.f32.mrb[107].mxu1 }
 0x1cd   : > { %v4487_v41 = vadd.f32 %v3197_v22, %v4391_v14  ;;  %v3200_v7 = vadd.f32 %v3199_v62, %v3198_v58  ;;  %v3264_v46 = vadd.f32 %v3263_v31, %v3262_v52  ;;  %v4490_v63 = vadd.f32 %v3261_v25, %v4394_v51 }
 0x1cf   : > { %v4493_v6 = vadd.f32 %v3200_v7, %v4397_v19  ;;  %v4496_v53 = vadd.f32 %v3264_v46, %v4400_v28 }
 0x1d1   : > { %v3201_v33 = vpop.f32.mrb[108].mxu0  ;;  %v3265_v5 = vpop.f32.mrb[108].mxu1 }
 0x1d2   : > { %v3202_v50 = vpop.f32.mrb[109].mxu0  ;;  %v3266_v61 = vpop.f32.mrb[109].mxu1 }
 0x1d3   : > { %v3203_v60 = vadd.f32 %v3202_v50, %v3201_v33  ;;  %v3267_v57 = vadd.f32 %v3266_v61, %v3265_v5  ;;  %v3204_v14 = vpop.f32.mrb[110].mxu0  ;;  %v3268_v18 = vpop.f32.mrb[110].mxu1 }
 0x1d4   : > { %v3205_v15 = vpop.f32.mrb[111].mxu0  ;;  %v3269_v17 = vpop.f32.mrb[111].mxu1 }
 0x1d5   : > { %v4499_v51 = vadd.f32 %v3203_v60, %v4403_v45  ;;  %v3206_v16 = vadd.f32 %v3205_v15, %v3204_v14  ;;  %v3270_v19 = vadd.f32 %v3269_v17, %v3268_v18  ;;  %v4502_v21 = vadd.f32 %v3267_v57, %v4406_v56 }
 0x1d7   : > { %v4505_v28 = vadd.f32 %v3206_v16, %v4409_v24  ;;  %v4508_v44 = vadd.f32 %v3270_v19, %v4412_v38 }
 0x1d9   : > { %v3271_v34 = vpop.f32.mrb[112].mxu1  ;;  %v3361_v45 = vpop.f32.mrb[112].mxu0 }
 0x1da   : > { %v2439_v56 = vadd.f32 %v3361_v45, %v4430_v1  ;;  %v3272_v32 = vpop.f32.mrb[113].mxu1  ;;  %v2430_v24 = vpop.f32.mrb[113].mxu0 }
 0x1db   : > { %v3273_v43 = vadd.f32 %v3272_v32, %v3271_v34  ;;  %v2431_v38 = vadd.f32 %v2430_v24, %v4418_v0  ;;  %v3274_v40 = vpop.f32.mrb[114].mxu1  ;;  %v3362_v49 = vpop.f32.mrb[114].mxu0 }
 0x1dc   : > { %2559 = vst [vmem:[%s4515_s24 + $0x10] sm:$0xff] %v2439_v56  ;;  %v2442_v29 = vadd.f32 %v3362_v49, %v4436_v48  ;;  %v3275_v37 = vpop.f32.mrb[115].mxu1  ;;  %v2433_v10 = vpop.f32.mrb[115].mxu0  ;;  %v2629_v31 = vmul.f32 %v2439_v56, %v2439_v56 }
 0x1dd   : > { %2557 = vst [vmem:[%s4515_s24] sm:$0xff] %v2431_v38  ;;  %v3276_v22 = vadd.f32 %v3275_v37, %v3274_v40  ;;  %v2434_v25 = vadd.f32 %v2433_v10, %v4424_v2  ;;  %v4524_v58 = vadd.f32 %v3273_v43, %v4415_v8  ;;  %v2627_v1 = vmul.f32 %v2431_v38, %v2431_v38 }
 0x1de   : > { %2560 = vst [vmem:[%s4515_s24 + $0x18] sm:$0xff] %v2442_v29  ;;  %v2630_v5 = vmul.f32 %v2442_v29, %v2442_v29 }
 0x1df   : > { %2558 = vst [vmem:[%s4515_s24 + $0x8] sm:$0xff] %v2434_v25  ;;  %v2589_v52 = vadd.f32 %v2434_v25, %v2431_v38  ;;  %v2628_v62 = vmul.f32 %v2434_v25, %v2434_v25  ;;  %v4529_v0 = vadd.f32 %v3276_v22, %v4421_v11 }
 0x1e1   : > { %v2590_v48 = vadd.f32 %v2589_v52, %v2439_v56  ;;  %v2659_v7 = vadd.f32 %v2628_v62, %v2627_v1  ;;  %v3277_v46 = vpop.f32.mrb[116].mxu1  ;;  %v3365_v33 = vpop.f32.mrb[116].mxu0 }
 0x1e2   : > { %v2455_v2 = vadd.f32 %v3365_v33, %v4454_v30  ;;  %v3278_v8 = vpop.f32.mrb[117].mxu1  ;;  %v2446_v50 = vpop.f32.mrb[117].mxu0 }
 0x1e3   : > { %v2660_v61 = vadd.f32 %v2659_v7, %v2629_v31  ;;  %v3279_v60 = vadd.f32 %v3278_v8, %v3277_v46  ;;  %v2447_v57 = vadd.f32 %v2446_v50, %v4442_v4  ;;  %v2591_v14 = vadd.f32 %v2590_v48, %v2442_v29  ;;  %v3280_v11 = vpop.f32.mrb[118].mxu1  ;;  %v3366_v18 = vpop.f32.mrb[118].mxu0 }
 0x1e4   : > { %2563 = vst [vmem:[%s4515_s24 + $0x30] sm:$0xff] %v2455_v2  ;;  %v2458_v15 = vadd.f32 %v3366_v18, %v4460_v23  ;;  %v3281_v17 = vpop.f32.mrb[119].mxu1  ;;  %v2449_v16 = vpop.f32.mrb[119].mxu0  ;;  %v2633_v49 = vmul.f32 %v2455_v2, %v2455_v2 }
 0x1e5   : > { %2561 = vst [vmem:[%s4515_s24 + $0x20] sm:$0xff] %v2447_v57  ;;  %v2592_v19 = vadd.f32 %v2591_v14, %v2447_v57  ;;  %v2631_v34 = vmul.f32 %v2447_v57, %v2447_v57  ;;  %v2661_v30 = vadd.f32 %v2660_v61, %v2630_v5  ;;  %v3282_v45 = vadd.f32 %v3281_v17, %v3280_v11 }
 0x1e6   : > { %2564 = vst [vmem:[%s4515_s24 + $0x38] sm:$0xff] %v2458_v15  ;;  %v2450_v56 = vadd.f32 %v2449_v16, %v4448_v13  ;;  %v4539_v32 = vadd.f32 %v3279_v60, %v4427_v55  ;;  %v2634_v52 = vmul.f32 %v2458_v15, %v2458_v15 }
 0x1e7   : > { %v2662_v4 = vadd.f32 %v2661_v30, %v2631_v34  ;;  %v4542_v24 = vadd.f32 %v3282_v45, %v4433_v20 }
 0x1e8   : > { %2562 = vst [vmem:[%s4515_s24 + $0x28] sm:$0xff] %v2450_v56  ;;  %v2593_v43 = vadd.f32 %v2592_v19, %v2450_v56  ;;  %v2632_v23 = vmul.f32 %v2450_v56, %v2450_v56 }
 0x1e9   : > { %v3283_v38 = vpop.f32.mrb[120].mxu1  ;;  %v3369_v40 = vpop.f32.mrb[120].mxu0 }
 0x1ea   : > { %v2594_v29 = vadd.f32 %v2593_v43, %v2455_v2  ;;  %v2663_v37 = vadd.f32 %v2662_v4, %v2632_v23  ;;  %v2471_v10 = vadd.f32 %v3369_v40, %v4478_v47  ;;  %v3284_v13 = vpop.f32.mrb[121].mxu1  ;;  %v2462_v22 = vpop.f32.mrb[121].mxu0 }
 0x1eb   : > { %v3285_v55 = vadd.f32 %v3284_v13, %v3283_v38  ;;  %v2463_v25 = vadd.f32 %v2462_v22, %v4466_v59  ;;  %v3286_v1 = vpop.f32.mrb[122].mxu1  ;;  %v3370_v20 = vpop.f32.mrb[122].mxu0 }
 0x1ec   : > { %v2664_v62 = vadd.f32 %v2663_v37, %v2633_v49  ;;  %2567 = vst [vmem:[%s4515_s24 + $0x50] sm:$0xff] %v2471_v10  ;;  %v2595_v31 = vadd.f32 %v2594_v29, %v2458_v15  ;;  %v2474_v48 = vadd.f32 %v3370_v20, %v4484_v26  ;;  %v3287_v7 = vpop.f32.mrb[123].mxu1  ;;  %v2465_v46 = vpop.f32.mrb[123].mxu0  ;;  %v2637_v11 = vmul.f32 %v2471_v10, %v2471_v10 }
 0x1ed   : > { %2565 = vst [vmem:[%s4515_s24 + $0x40] sm:$0xff] %v2463_v25  ;;  %v2635_v33 = vmul.f32 %v2463_v25, %v2463_v25  ;;  %v3288_v47 = vadd.f32 %v3287_v7, %v3286_v1  ;;  %v2466_v5 = vadd.f32 %v2465_v46, %v4472_v9  ;;  %v4552_v2 = vadd.f32 %v3285_v55, %v4439_v35 }
 0x1ee   : > { %v2596_v59 = vadd.f32 %v2595_v31, %v2463_v25  ;;  %v2665_v8 = vadd.f32 %v2664_v62, %v2634_v52  ;;  %2568 = vst [vmem:[%s4515_s24 + $0x58] sm:$0xff] %v2474_v48  ;;  %v2638_v30 = vmul.f32 %v2474_v48, %v2474_v48 }
 0x1ef   : > { %2566 = vst [vmem:[%s4515_s24 + $0x48] sm:$0xff] %v2466_v5  ;;  %v2636_v50 = vmul.f32 %v2466_v5, %v2466_v5  ;;  %v4557_v61 = vadd.f32 %v3288_v47, %v4445_v54 }
 0x1f0   : > { %v2666_v60 = vadd.f32 %v2665_v8, %v2635_v33  ;;  %v2597_v26 = vadd.f32 %v2596_v59, %v2466_v5 }
 0x1f1   : > { %v3289_v57 = vpop.f32.mrb[124].mxu1  ;;  %v3373_v14 = vpop.f32.mrb[124].mxu0 }
 0x1f2   : > { %v2598_v18 = vadd.f32 %v2597_v26, %v2471_v10  ;;  %v2667_v9 = vadd.f32 %v2666_v60, %v2636_v50  ;;  %v2487_v35 = vadd.f32 %v3373_v14, %v4502_v21  ;;  %v3290_v15 = vpop.f32.mrb[125].mxu1  ;;  %v2478_v17 = vpop.f32.mrb[125].mxu0 }
 0x1f3   : > { %v3291_v16 = vadd.f32 %v3290_v15, %v3289_v57  ;;  %v2479_v19 = vadd.f32 %v2478_v17, %v4490_v63  ;;  %v3292_v34 = vpop.f32.mrb[126].mxu1  ;;  %v3374_v54 = vpop.f32.mrb[126].mxu0 }
 0x1f4   : > { %v2668_v45 = vadd.f32 %v2667_v9, %v2637_v11  ;;  %2571 = vst [vmem:[%s4515_s24 + $0x70] sm:$0xff] %v2487_v35  ;;  %v2599_v56 = vadd.f32 %v2598_v18, %v2474_v48  ;;  %v2490_v4 = vadd.f32 %v3374_v54, %v4508_v44  ;;  %v3293_v43 = vpop.f32.mrb[127].mxu1  ;;  %v2481_v23 = vpop.f32.mrb[127].mxu0  ;;  %v2641_v25 = vmul.f32 %v2487_v35, %v2487_v35 }
 0x1f5   : > { %2569 = vst [vmem:[%s4515_s24 + $0x60] sm:$0xff] %v2479_v19  ;;  %v2639_v38 = vmul.f32 %v2479_v19, %v2479_v19  ;;  %v3294_v21 = vadd.f32 %v3293_v43, %v3292_v34  ;;  %v2482_v40 = vadd.f32 %v2481_v23, %v4496_v53  ;;  %v2358_v49 = vadd.f32 %v3291_v16, %v4451_v39 }
 0x1f6   : > { %v2600_v63 = vadd.f32 %v2599_v56, %v2479_v19  ;;  %v2669_v29 = vadd.f32 %v2668_v45, %v2638_v30  ;;  %2572 = vst [vmem:[%s4515_s24 + $0x78] sm:$0xff] %v2490_v4 }
 0x1f7   : > { %2570 = vst [vmem:[%s4515_s24 + $0x68] sm:$0xff] %v2482_v40  ;;  %v2640_v37 = vmul.f32 %v2482_v40, %v2482_v40  ;;  %v2361_v10 = vadd.f32 %v3294_v21, %v4457_v12  ;;  %v2642_v12 = vmul.f32 %v2490_v4, %v2490_v4 }
 0x1f8   : > { %v2670_v13 = vadd.f32 %v2669_v29, %v2639_v38  ;;  %v2601_v22 = vadd.f32 %v2600_v63, %v2482_v40 }
 0x1f9   : > { %v3295_v44 = vpop.f32.mrb[128].mxu1  ;;  %v3377_v55 = vpop.f32.mrb[128].mxu0 }
 0x1fa   : > { %v2602_v1 = vadd.f32 %v2601_v22, %v2487_v35  ;;  %v2671_v20 = vadd.f32 %v2670_v13, %v2640_v37  ;;  %v2503_v53 = vadd.f32 %v3377_v55, %v4539_v32  ;;  %v3296_v52 = vpop.f32.mrb[129].mxu1  ;;  %v2494_v39 = vpop.f32.mrb[129].mxu0 }
 0x1fb   : > { %v3297_v62 = vadd.f32 %v3296_v52, %v3295_v44  ;;  %v2495_v31 = vadd.f32 %v2494_v39, %v4524_v58  ;;  %v3298_v48 = vpop.f32.mrb[130].mxu1  ;;  %v3378_v7 = vpop.f32.mrb[130].mxu0 }
 0x1fc   : > { %v2672_v46 = vadd.f32 %v2671_v20, %v2641_v25  ;;  %2575 = vst [vmem:[%s4515_s24 + $0x90] sm:$0xff] %v2503_v53  ;;  %v2603_v33 = vadd.f32 %v2602_v1, %v2490_v4  ;;  %v2506_v47 = vadd.f32 %v3378_v7, %v4542_v24  ;;  %v3299_v5 = vpop.f32.mrb[131].mxu1  ;;  %v2497_v59 = vpop.f32.mrb[131].mxu0  ;;  %v2645_v35 = vmul.f32 %v2503_v53, %v2503_v53 }
 0x1fd   : > { %2573 = vst [vmem:[%s4515_s24 + $0x80] sm:$0xff] %v2495_v31  ;;  %v2643_v8 = vmul.f32 %v2495_v31, %v2495_v31  ;;  %v3300_v32 = vadd.f32 %v3299_v5, %v3298_v48  ;;  %v2498_v50 = vadd.f32 %v2497_v59, %v4529_v0  ;;  %v2366_v60 = vadd.f32 %v3297_v62, %v4463_v27 }
 0x1fe   : > { %v2604_v58 = vadd.f32 %v2603_v33, %v2495_v31  ;;  %v2673_v26 = vadd.f32 %v2672_v46, %v2642_v12  ;;  %2576 = vst [vmem:[%s4515_s24 + $0x98] sm:$0xff] %v2506_v47 }
 0x1ff   : > { %2574 = vst [vmem:[%s4515_s24 + $0x88] sm:$0xff] %v2498_v50  ;;  %v2644_v57 = vmul.f32 %v2498_v50, %v2498_v50  ;;  %v2369_v14 = vadd.f32 %v3300_v32, %v4469_v36  ;;  %v2646_v36 = vmul.f32 %v2506_v47, %v2506_v47 }
 0x200   : > { %v2674_v11 = vadd.f32 %v2673_v26, %v2643_v8  ;;  %v2605_v18 = vadd.f32 %v2604_v58, %v2498_v50 }
 0x201   : > { %v3301_v24 = vpop.f32.mrb[132].mxu1  ;;  %v3381_v9 = vpop.f32.mrb[132].mxu0 }
 0x202   : > { %v2606_v15 = vadd.f32 %v2605_v18, %v2503_v53  ;;  %v2675_v17 = vadd.f32 %v2674_v11, %v2644_v57  ;;  %v2519_v16 = vadd.f32 %v3381_v9, %v2358_v49  ;;  %v3302_v0 = vpop.f32.mrb[133].mxu1  ;;  %v2510_v19 = vpop.f32.mrb[133].mxu0 }
 0x203   : > { %v3303_v27 = vadd.f32 %v3302_v0, %v3301_v24  ;;  %v2511_v34 = vadd.f32 %v2510_v19, %v4552_v2  ;;  %v3304_v54 = vpop.f32.mrb[134].mxu1  ;;  %v3382_v30 = vpop.f32.mrb[134].mxu0 }
 0x204   : > { %v2676_v45 = vadd.f32 %v2675_v17, %v2645_v35  ;;  %2579 = vst [vmem:[%s4515_s24 + $0xb0] sm:$0xff] %v2519_v16  ;;  %v2607_v56 = vadd.f32 %v2606_v15, %v2506_v47  ;;  %v2522_v4 = vadd.f32 %v3382_v30, %v2361_v10  ;;  %v3305_v43 = vpop.f32.mrb[135].mxu1  ;;  %v2513_v23 = vpop.f32.mrb[135].mxu0  ;;  %v2649_v55 = vmul.f32 %v2519_v16, %v2519_v16 }
 0x205   : > { %2577 = vst [vmem:[%s4515_s24 + $0xa0] sm:$0xff] %v2511_v34  ;;  %v2647_v38 = vmul.f32 %v2511_v34, %v2511_v34  ;;  %v3306_v21 = vadd.f32 %v3305_v43, %v3304_v54  ;;  %v2514_v40 = vadd.f32 %v2513_v23, %v4557_v61  ;;  %v2374_v49 = vadd.f32 %v3303_v27, %v4475_v42 }
 0x206   : > { %v2608_v63 = vadd.f32 %v2607_v56, %v2511_v34  ;;  %v2677_v2 = vadd.f32 %v2676_v45, %v2646_v36  ;;  %2580 = vst [vmem:[%s4515_s24 + $0xb8] sm:$0xff] %v2522_v4  ;;  %v2650_v31 = vmul.f32 %v2522_v4, %v2522_v4 }
 0x207   : > { %2578 = vst [vmem:[%s4515_s24 + $0xa8] sm:$0xff] %v2514_v40  ;;  %v2648_v29 = vmul.f32 %v2514_v40, %v2514_v40  ;;  %v2377_v37 = vadd.f32 %v3306_v21, %v4481_v3 }
 0x208   : > { %v2678_v13 = vadd.f32 %v2677_v2, %v2647_v38  ;;  %v2609_v22 = vadd.f32 %v2608_v63, %v2514_v40 }
 0x209   : > { %v3307_v10 = vpop.f32.mrb[136].mxu1  ;;  %v3385_v44 = vpop.f32.mrb[136].mxu0 }
 0x20a   : > { %v2610_v25 = vadd.f32 %v2609_v22, %v2519_v16  ;;  %v2679_v1 = vadd.f32 %v2678_v13, %v2648_v29  ;;  %v2535_v20 = vadd.f32 %v3385_v44, %v2374_v49  ;;  %v3308_v61 = vpop.f32.mrb[137].mxu1  ;;  %v2526_v53 = vpop.f32.mrb[137].mxu0 }
 0x20b   : > { %v3309_v42 = vadd.f32 %v3308_v61, %v3307_v10  ;;  %v2527_v52 = vadd.f32 %v2526_v53, %v2366_v60  ;;  %v3310_v39 = vpop.f32.mrb[138].mxu1  ;;  %v3386_v62 = vpop.f32.mrb[138].mxu0 }
 0x20c   : > { %v2680_v3 = vadd.f32 %v2679_v1, %v2649_v55  ;;  %2583 = vst [vmem:[%s4515_s24 + $0xd0] sm:$0xff] %v2535_v20  ;;  %v2611_v48 = vadd.f32 %v2610_v25, %v2522_v4  ;;  %v2538_v7 = vadd.f32 %v3386_v62, %v2377_v37  ;;  %v3311_v12 = vpop.f32.mrb[139].mxu1  ;;  %v2529_v46 = vpop.f32.mrb[139].mxu0  ;;  %v2653_v18 = vmul.f32 %v2535_v20, %v2535_v20 }
 0x20d   : > { %2581 = vst [vmem:[%s4515_s24 + $0xc0] sm:$0xff] %v2527_v52  ;;  %v2651_v33 = vmul.f32 %v2527_v52, %v2527_v52  ;;  %v3312_v47 = vadd.f32 %v3311_v12, %v3310_v39  ;;  %v2530_v5 = vadd.f32 %v2529_v46, %v2369_v14  ;;  %v2382_v59 = vadd.f32 %v3309_v42, %v4487_v41 }
 0x20e   : > { %v2612_v8 = vadd.f32 %v2611_v48, %v2527_v52  ;;  %v2681_v32 = vadd.f32 %v2680_v3, %v2650_v31  ;;  %2584 = vst [vmem:[%s4515_s24 + $0xd8] sm:$0xff] %v2538_v7  ;;  %v2654_v0 = vmul.f32 %v2538_v7, %v2538_v7 }
 0x20f   : > { %2582 = vst [vmem:[%s4515_s24 + $0xc8] sm:$0xff] %v2530_v5  ;;  %v2652_v50 = vmul.f32 %v2530_v5, %v2530_v5  ;;  %v2385_v60 = vadd.f32 %v3312_v47, %v4493_v6 }
 0x210   : > { %v2682_v58 = vadd.f32 %v2681_v32, %v2651_v33  ;;  %v2613_v26 = vadd.f32 %v2612_v8, %v2530_v5 }
 0x211   : > { %v3313_v57 = vpop.f32.mrb[140].mxu1  ;;  %v3389_v11 = vpop.f32.mrb[140].mxu0 }
 0x212   : > { %v2614_v24 = vadd.f32 %v2613_v26, %v2535_v20  ;;  %v2683_v9 = vadd.f32 %v2682_v58, %v2652_v50  ;;  %v3314_v35 = vpop.f32.mrb[141].mxu1  ;;  %v2542_v15 = vpop.f32.mrb[141].mxu0 }
 0x213   : > { %v3315_v14 = vadd.f32 %v3314_v35, %v3313_v57  ;;  %v2543_v17 = vadd.f32 %v2542_v15, %v2382_v59  ;;  %v3316_v41 = vpop.f32.mrb[142].mxu1  ;;  %v3390_v16 = vpop.f32.mrb[142].mxu0 }
 0x214   : > { %v2684_v19 = vadd.f32 %v2683_v9, %v2653_v18  ;;  %v2615_v27 = vadd.f32 %v2614_v24, %v2538_v7  ;;  %v3317_v6 = vpop.f32.mrb[143].mxu1  ;;  %v2545_v34 = vpop.f32.mrb[143].mxu0 }
 0x215   : > { %v2390_v54 = vadd.f32 %v3315_v14, %v4499_v51  ;;  %2585 = vst [vmem:[%s4515_s24 + $0xe0] sm:$0xff] %v2543_v17  ;;  %v2655_v30 = vmul.f32 %v2543_v17, %v2543_v17  ;;  %v3318_v36 = vadd.f32 %v3317_v6, %v3316_v41  ;;  %v2546_v45 = vadd.f32 %v2545_v34, %v2385_v60 }
 0x216   : > { %v2616_v56 = vadd.f32 %v2615_v27, %v2543_v17  ;;  %v2685_v4 = vadd.f32 %v2684_v19, %v2654_v0 }
 0x217   : > { %v2551_v43 = vadd.f32 %v3389_v11, %v2390_v54  ;;  %v2393_v23 = vadd.f32 %v3318_v36, %v4505_v28  ;;  %2586 = vst [vmem:[%s4515_s24 + $0xe8] sm:$0xff] %v2546_v45  ;;  %v2656_v38 = vmul.f32 %v2546_v45, %v2546_v45 }
 0x218   : > { %v2686_v21 = vadd.f32 %v2685_v4, %v2655_v30  ;;  %v2617_v40 = vadd.f32 %v2616_v56, %v2546_v45 }
 0x219   : > { %2587 = vst [vmem:[%s4515_s24 + $0xf0] sm:$0xff] %v2551_v43  ;;  %v2657_v49 = vmul.f32 %v2551_v43, %v2551_v43  ;;  %v2554_v63 = vadd.f32 %v3390_v16, %v2393_v23 }
 0x21a   : > { %v2618_v2 = vadd.f32 %v2617_v40, %v2551_v43  ;;  %v2687_v51 = vadd.f32 %v2686_v21, %v2656_v38 }
 0x21b   : > { %2588 = vst [vmem:[%s4515_s24 + $0xf8] sm:$0xff] %v2554_v63  ;;  %v2658_v29 = vmul.f32 %v2554_v63, %v2554_v63 }
 0x21c   : > { %v2619_v37 = vadd.f32 %v2618_v2, %v2554_v63  ;;  %v2688_v13 = vadd.f32 %v2687_v51, %v2657_v49 }
 0x21e   : > { %v2620_v22 = vrot.slane %v2619_v37, 4  ;;  %v2689_v10 = vadd.f32 %v2688_v13, %v2658_v29 }
 0x220   : > { %v2621_v44 = vadd.f32 %v2620_v22, %v2619_v37  ;;  %v2690_v55 = vrot.slane %v2689_v10, 4 }
 0x222   : > { %v2622_v25 = vrot.slane %v2621_v44, 2  ;;  %v2691_v28 = vadd.f32 %v2690_v55, %v2689_v10 }
 0x224   : > { %v2623_v1 = vadd.f32 %v2622_v25, %v2621_v44  ;;  %v2692_v20 = vrot.slane %v2691_v28, 2 }
 0x226   : > { %v2624_v61 = vrot.slane %v2623_v1, 1  ;;  %v2693_v53 = vadd.f32 %v2692_v20, %v2691_v28 }
 0x228   : > { %v2625_v42 = vadd.f32 %v2624_v61, %v2623_v1  ;;  %v2694_v52 = vrot.slane %v2693_v53, 1 }
 0x22a   : > { %2626 = vst [vmem:[%s235_s27] sm:$0x1] %v2625_v42  ;;  %v2695_v39 = vadd.f32 %v2694_v52, %v2693_v53 }
 0x22c   : > { %2696 = vst [vmem:[%s235_s27 + $0x1] sm:$0x1] %v2695_v39 }
 0x22d PF: > { %s16_s18 = sadd.s32 1, %s3495_s18  }
 0x22e   : > { %p13_p4 = scmp.ge.s32.totalorder %s16_s18, 4  }
 0x230   :  { %15 = sbr.rel (!%p13_p4) target bundleno = 1 (0x1), region = 81 }

</bundles_post_ra>
